<compile_context>
chip_gen: v7x
topology: tpu7x:2x2x1
jax: 0.10.0
libtpu: 0.0.40
codegen_flags: <defaults>
</compile_context>

<pallas_src>
import functools
import math

import jax
import jax.numpy as jnp
from jax.experimental import pallas as pl
from jax.experimental.pallas import tpu as pltpu

BF16 = jnp.bfloat16
F32 = jnp.float32


# ----------------------------------------------------------------------------
# Fused kernel: dual encoders + multi-head-attention roi_heads + mask head.
# One grid step per batch element; all intermediates VMEM/vreg-resident.
# ----------------------------------------------------------------------------
def _rfmask_fused_kernel(
    hcols_ref, vcols_ref,
    enc_w1_ref, enc_w2_ref, wqo_ref, wkv_ref, bias_ref,
    masks_ref, pooled_ref,
    pad_ref,
    *, num_heads, head_dim, Wf, P):
  S = hcols_ref.shape[1]          # number of spatial positions (Hf * Wf)
  D = enc_w1_ref.shape[2]         # hidden channels

  # One consolidated (10, D) f32 bias/small-weight pack (one DMA descriptor).
  b = bias_ref[...]
  hb1, hb2 = b[0:1, :], b[1:2, :]
  vb1, vb2 = b[2:3, :], b[3:4, :]
  bq, bk, bv, bo = b[4:5, :], b[5:6, :], b[6:7, :], b[7:8, :]
  mw, mb = b[8:9, :], b[9:10, 0:1]

  # conv2 column-edge validity (x == 0 / x == Wf-1), computed without integer
  # div/mod: f32 iota + floor((p+0.5)/Wf); the +0.5 keeps the quotient away
  # from integer rounding boundaries.
  pos = jax.lax.broadcasted_iota(jnp.int32, (S, 1), 0).astype(F32)
  col = pos - jnp.floor((pos + 0.5) * (1.0 / Wf)) * Wf
  left_ok = col > 0.5
  right_ok = col < (Wf - 1.5)

  # Zero the padded feature buffer once; pad rows stay zero for both branches.
  pad_ref[...] = jnp.zeros_like(pad_ref)

  def encoder(cols, w1, b1, w2, b2):
    # conv1 (3x3, stride 2) on pre-gathered patches: one MXU matmul.
    h1 = jnp.dot(cols, w1, preferred_element_type=F32) + b1
    h1 = jnp.maximum(h1, 0.0)                                   # (S, D) f32
    # conv2 (3x3, stride 1, pad 1): the 9 spatial shifts are offset slices of
    # the zero-padded VMEM buffer (no (9,S,S) shift matmuls / O(S^2) MXU work);
    # row wraparound is handled by the zero pad, column wraparound by masks.
    pad_ref[P:P + S, :] = h1
    taps = []
    for di in (-1, 0, 1):
      for dj in (-1, 0, 1):                  # tap order must match w2 layout
        start = P + di * Wf + dj
        tap = pad_ref[start:start + S, :]
        if dj == -1:
          tap = jnp.where(left_ok, tap, jnp.zeros_like(tap))
        elif dj == 1:
          tap = jnp.where(right_ok, tap, jnp.zeros_like(tap))
        taps.append(tap)
    # Single lane-dense contraction with K = 9*D instead of 9 tiny matmuls
    # plus a cross-sublane reduce.
    patches = jnp.concatenate(taps, axis=-1).astype(BF16)       # (S, 9D)
    h2 = jnp.dot(patches, w2, preferred_element_type=F32) + b2
    return jnp.maximum(h2, 0.0)                                  # (S, D) f32

  hf = encoder(hcols_ref[0], enc_w1_ref[0], hb1, enc_w2_ref[0], hb2)
  vf = encoder(vcols_ref[0], enc_w1_ref[1], vb1, enc_w2_ref[1], vb2)

  # roi_heads, fuse='multi-head': h-features attend to v-features.  q and the
  # fused k|v projections are single lane-dense matmuls (1/sqrt(hd) folded
  # into wq at init); heads split afterwards via cheap static lane slices.
  hf16 = hf.astype(BF16)
  vf16 = vf.astype(BF16)
  q_cat = jnp.dot(hf16, wqo_ref[0], preferred_element_type=F32) + bq   # (S, D)
  kv = jnp.dot(vf16, wkv_ref[...], preferred_element_type=F32)         # (S, 2D)
  k_cat = kv[:, :D] + bk
  v_cat = kv[:, D:] + bv

  attn_heads = []
  for h in range(num_heads):
    lo = h * head_dim
    hi = lo + head_dim
    qh = q_cat[:, lo:hi].astype(BF16)
    kh = k_cat[:, lo:hi].astype(BF16)
    vh = v_cat[:, lo:hi].astype(BF16)
    s = jax.lax.dot_general(qh, kh, (((1,), (1,)), ((), ())),
                            preferred_element_type=F32)                # (S, S)
    s = s - jnp.max(s, axis=-1, keepdims=True)
    p = jnp.exp(s)
    p = p * pl.reciprocal(jnp.sum(p, axis=-1, keepdims=True), approx=True)
    attn_heads.append(jnp.dot(p.astype(BF16), vh,
                              preferred_element_type=F32))             # (S, hd)

  # Per-head output projections + head sum collapsed into one K=H*hd matmul,
  # feeding the residual directly (lane-dense (S, D) result).
  attn_cat = jnp.concatenate(attn_heads, axis=-1).astype(BF16)         # (S, D)
  fused = jnp.dot(attn_cat, wqo_ref[1], preferred_element_type=F32) + bo + hf

  # mask head: logits produced directly as a lane-dense (1, S) row -> 64-wide
  # unmasked stores instead of 1-lane partial stores.
  mlogit = jax.lax.dot_general(mw, fused, (((1,), (1,)), ((), ())),
                               preferred_element_type=F32) + mb        # (1, S)
  masks_ref[0] = jax.nn.sigmoid(mlogit)

  # mean-pooled fused features; the tiny box/cls heads run in plain XLA.
  pooled_ref[0] = jnp.mean(fused, axis=0, keepdims=True)


def _fused_forward_call(p, hcols, vcols, Wf, num_heads, head_dim):
  B, S, _ = hcols.shape
  D = p["enc_w1"].shape[2]
  # Sublane-aligned top/bottom zero padding (>= Wf + 1 rows each side so the
  # corner taps stay in bounds; rounded to 8 so the h1 store is aligned).
  P = ((Wf + 1 + 7) // 8) * 8

  def full_spec(arr):
    nd = arr.ndim
    def imap(b):
      return (0,) * nd
    return pl.BlockSpec(arr.shape, imap)

  def batch_spec(shape):
    nd = len(shape)
    def imap(b):
      return (b,) + (0,) * (nd - 1)
    return pl.BlockSpec(shape, imap)

  weight_args = (p["enc_w1"], p["enc_w2"], p["w_qo"], p["w_kv"], p["bias_pack"])
  in_specs = ([batch_spec((1, S, hcols.shape[2])),
               batch_spec((1, S, vcols.shape[2]))]
              + [full_spec(w) for w in weight_args])
  out_shape = (jax.ShapeDtypeStruct((B, 1, S), F32),
               jax.ShapeDtypeStruct((B, 1, D), F32))
  out_specs = [batch_spec((1, 1, S)), batch_spec((1, 1, D))]

  kernel = functools.partial(_rfmask_fused_kernel, num_heads=num_heads,
                             head_dim=head_dim, Wf=Wf, P=P)
  masks, pooled = pl.pallas_call(
      kernel,
      out_shape=out_shape,
      grid_spec=pltpu.PrefetchScalarGridSpec(
          num_scalar_prefetch=0,
          grid=(B,),
          in_specs=in_specs,
          out_specs=out_specs,
          scratch_shapes=[pltpu.VMEM((S + 2 * P, D), F32)]),
      compiler_params=pltpu.CompilerParams(
          dimension_semantics=("parallel",),      # v7x: batch across both TCs
          vmem_limit_bytes=32 * 1024 * 1024),
  )(hcols, vcols, *weight_args)
  return masks, pooled


# ----------------------------------------------------------------------------
# Wrapper-side layout plumbing (XLA): stride-2 patch gather for conv1.
# Tap order (i, j) row-major must match the w1 row layout (tap-major,
# channel-minor) when porting real conv weights.
# ----------------------------------------------------------------------------
def _im2col_stride2(x):
  B, H, W, C = x.shape
  Ho = (H + 2 - 3) // 2 + 1
  Wo = (W + 2 - 3) // 2 + 1
  xp = jnp.pad(x, ((0, 0), (1, 1), (1, 1), (0, 0)))
  cols = [xp[:, i:i + 2 * Ho:2, j:j + 2 * Wo:2, :]
          for i in range(3) for j in range(3)]
  cols = jnp.concatenate(cols, axis=-1)
  return cols.reshape(B, Ho * Wo, 9 * C), Ho, Wo


# ----------------------------------------------------------------------------
# Deterministic parameter init (synthetic weights, stored in kernel layouts):
# bf16 matmul weights packed per role, all small f32 biases + mask-head weight
# packed into one (10, D) array.
# ----------------------------------------------------------------------------
def init_params(key, in_ch=4, hid=32, num_heads=4, num_classes=2):
  head_dim = hid // num_heads
  keys = jax.random.split(key, 10)

  def w(k, shape, fan_in):
    return jax.random.normal(k, shape, F32) * (1.0 / math.sqrt(fan_in))

  p = {}
  # encoders: [0]=horizontal branch, [1]=vertical branch
  p["enc_w1"] = jnp.stack([w(keys[0], (9 * in_ch, hid), 9 * in_ch),
                           w(keys[1], (9 * in_ch, hid), 9 * in_ch)]).astype(BF16)
  p["enc_w2"] = jnp.stack([w(keys[2], (9 * hid, hid), 9 * hid),
                           w(keys[3], (9 * hid, hid), 9 * hid)]).astype(BF16)
  # attention: wq with 1/sqrt(head_dim) folded in; wo rows ordered
  # head-major / head_dim-minor (matches the in-kernel head concat).
  scale = 1.0 / math.sqrt(head_dim)
  wq = w(keys[4], (hid, num_heads * head_dim), hid) * scale
  wo = w(keys[5], (num_heads * head_dim, hid), hid)
  p["w_qo"] = jnp.stack([wq, wo]).astype(BF16)
  p["w_kv"] = w(keys[6], (hid, 2 * num_heads * head_dim), hid).astype(BF16)
  # bias pack rows: 0 hb1, 1 hb2, 2 vb1, 3 vb2, 4 bq(*scale), 5 bk, 6 bv,
  #                 7 bo, 8 mask_w, 9 mask_b (broadcast, element 0 used)
  bias = jnp.zeros((10, hid), F32)
  bias = bias.at[8, :].set(w(keys[7], (hid,), hid))
  p["bias_pack"] = bias
  # box (4) | cls (num_classes) heads fused into one tiny matrix (run in XLA)
  p["head_w"] = w(keys[8], (hid, 4 + num_classes), hid)
  p["head_b"] = jnp.zeros((4 + num_classes,), F32)
  return p


# ----------------------------------------------------------------------------
# RFMask forward (inference path: targets=None)
# ----------------------------------------------------------------------------
@functools.partial(jax.jit, static_argnames=("num_heads",))
def _rfmask_impl(weights, hor, ver, num_heads=4):
  # NCHW -> NHWC, bf16 activations (fp32 accumulation on the MXU).
  hor = jnp.transpose(hor, (0, 2, 3, 1)).astype(BF16)
  ver = jnp.transpose(ver, (0, 2, 3, 1)).astype(BF16)

  hcols, Hf, Wf = _im2col_stride2(hor)
  vcols, _, _ = _im2col_stride2(ver)

  D = weights["enc_w1"].shape[2]
  head_dim = D // num_heads
  masks, pooled = _fused_forward_call(weights, hcols, vcols, Wf,
                                      num_heads, head_dim)

  B = masks.shape[0]
  masks = masks.reshape(B, 1, Hf, Wf)          # (B, 1, Hf, Wf), feature res.
  pooled = pooled.reshape(B, D)

  # tiny box|cls heads on mean-pooled fused features (plain XLA)
  head = pooled @ weights["head_w"] + weights["head_b"]
  boxes = head[:, :4]
  logits = head[:, 4:]
  scores = jax.nn.softmax(logits, axis=-1)
  labels = jnp.argmax(logits, axis=-1)
  return masks, boxes, scores, labels


def rfmask_forward(weights, hor, ver, view_params, num_heads=4):
  del view_params  # TODO(synk): camera-parameter lookup not modeled
  masks, boxes, scores, labels = _rfmask_impl(weights, hor, ver,
                                              num_heads=num_heads)
  B = masks.shape[0]
  result = [{"boxes": boxes[i], "labels": labels[i], "scores": scores[i],
             "masks": masks[i]} for i in range(B)]
  losses = {}  # inference mode (targets=None)
  return result, losses


if __name__ == "__main__":
  key = jax.random.PRNGKey(0)
  k_h, k_v, k_p = jax.random.split(key, 3)
  B, C, H, W = 2, 4, 16, 16
  hor = jax.random.normal(k_h, (B, C, H, W), F32)
  ver = jax.random.normal(k_v, (B, C, H, W), F32)
  view_params = jnp.zeros((B,), jnp.int32)

  weights = init_params(k_p, in_ch=C, hid=32, num_heads=4)
  result, losses = rfmask_forward(weights, hor, ver, view_params)

  for r in result:
    jax.block_until_ready(r["masks"])
    jax.block_until_ready(r["boxes"])
    jax.block_until_ready(r["scores"])
  print("KERNEL_OK")
</pallas_src>

<mosaic_0001>
module attributes {stable_mosaic.version = 11 : i64} {
  func.func @_rfmask_fused_kernel(%arg0: i32, %arg1: memref<1x64x36xbf16, #tpu.memory_space<vmem>>, %arg2: memref<1x64x36xbf16, #tpu.memory_space<vmem>>, %arg3: memref<2x36x32xbf16, #tpu.memory_space<vmem>>, %arg4: memref<2x288x32xbf16, #tpu.memory_space<vmem>>, %arg5: memref<2x32x32xbf16, #tpu.memory_space<vmem>>, %arg6: memref<32x64xbf16, #tpu.memory_space<vmem>>, %arg7: memref<10x32xf32, #tpu.memory_space<vmem>>, %arg8: memref<1x1x64xf32, #tpu.memory_space<vmem>>, %arg9: memref<1x1x32xf32, #tpu.memory_space<vmem>>, %arg10: memref<96x32xf32, #tpu.memory_space<vmem>>) attributes {dimension_semantics = [#tpu.dimension_semantics<parallel>], iteration_bounds = array<i64: 2>, scalar_prefetch = 0 : i64, scratch_operands = 1 : i64, tpu.core_type = #tpu.core_type<tc>, window_params = [{transform_indices = @transform_0, window_bounds = array<i64: 1, 64, 36>}, {transform_indices = @transform_1, window_bounds = array<i64: 1, 64, 36>}, {pipeline_mode = #tpu.pipeline_mode<synchronous>, transform_indices = @transform_2, window_bounds = array<i64: 2, 36, 32>}, {pipeline_mode = #tpu.pipeline_mode<synchronous>, transform_indices = @transform_3, window_bounds = array<i64: 2, 288, 32>}, {pipeline_mode = #tpu.pipeline_mode<synchronous>, transform_indices = @transform_4, window_bounds = array<i64: 2, 32, 32>}, {pipeline_mode = #tpu.pipeline_mode<synchronous>, transform_indices = @transform_5, window_bounds = array<i64: 32, 64>}, {pipeline_mode = #tpu.pipeline_mode<synchronous>, transform_indices = @transform_6, window_bounds = array<i64: 10, 32>}, {transform_indices = @transform_7, window_bounds = array<i64: 1, 1, 64>}, {transform_indices = @transform_8, window_bounds = array<i64: 1, 1, 32>}]} {
    %c0 = arith.constant 0 : index
    %c0_0 = arith.constant 0 : index
    %0 = vector.load %arg7[%c0, %c0_0] : memref<10x32xf32, #tpu.memory_space<vmem>>, vector<10x32xf32>
    %1 = vector.extract_strided_slice %0 {offsets = [0, 0], sizes = [1, 32], strides = [1, 1]} : vector<10x32xf32> to vector<1x32xf32>
    %2 = vector.extract_strided_slice %0 {offsets = [1, 0], sizes = [1, 32], strides = [1, 1]} : vector<10x32xf32> to vector<1x32xf32>
    %3 = vector.extract_strided_slice %0 {offsets = [2, 0], sizes = [1, 32], strides = [1, 1]} : vector<10x32xf32> to vector<1x32xf32>
    %4 = vector.extract_strided_slice %0 {offsets = [3, 0], sizes = [1, 32], strides = [1, 1]} : vector<10x32xf32> to vector<1x32xf32>
    %5 = vector.extract_strided_slice %0 {offsets = [4, 0], sizes = [1, 32], strides = [1, 1]} : vector<10x32xf32> to vector<1x32xf32>
    %6 = vector.extract_strided_slice %0 {offsets = [5, 0], sizes = [1, 32], strides = [1, 1]} : vector<10x32xf32> to vector<1x32xf32>
    %7 = vector.extract_strided_slice %0 {offsets = [6, 0], sizes = [1, 32], strides = [1, 1]} : vector<10x32xf32> to vector<1x32xf32>
    %8 = vector.extract_strided_slice %0 {offsets = [7, 0], sizes = [1, 32], strides = [1, 1]} : vector<10x32xf32> to vector<1x32xf32>
    %9 = vector.extract_strided_slice %0 {offsets = [8, 0], sizes = [1, 32], strides = [1, 1]} : vector<10x32xf32> to vector<1x32xf32>
    %10 = vector.extract_strided_slice %0 {offsets = [9, 0], sizes = [1, 1], strides = [1, 1]} : vector<10x32xf32> to vector<1x1xf32>
    %11 = tpu.iota {dimensions = array<i32: 0>} : vector<64x1xi32>
    %12 = arith.sitofp %11 : vector<64x1xi32> to vector<64x1xf32>
    %cst = arith.constant 5.000000e-01 : f32
    %13 = vector.broadcast %cst : f32 to vector<64x1xf32>
    %14 = arith.addf %12, %13 : vector<64x1xf32>
    %cst_1 = arith.constant 1.250000e-01 : f32
    %15 = vector.broadcast %cst_1 : f32 to vector<64x1xf32>
    %16 = arith.mulf %14, %15 : vector<64x1xf32>
    %17 = math.floor %16 : vector<64x1xf32>
    %cst_2 = arith.constant 8.000000e+00 : f32
    %18 = vector.broadcast %cst_2 : f32 to vector<64x1xf32>
    %19 = arith.mulf %17, %18 : vector<64x1xf32>
    %20 = arith.subf %12, %19 : vector<64x1xf32>
    %cst_3 = arith.constant 5.000000e-01 : f32
    %21 = vector.broadcast %cst_3 : f32 to vector<64x1xf32>
    %22 = arith.cmpf ogt, %20, %21 : vector<64x1xf32>
    %cst_4 = arith.constant 6.500000e+00 : f32
    %23 = vector.broadcast %cst_4 : f32 to vector<64x1xf32>
    %24 = arith.cmpf olt, %20, %23 : vector<64x1xf32>
    %cst_5 = arith.constant 0.000000e+00 : f32
    %25 = vector.broadcast %cst_5 : f32 to vector<96x32xf32>
    %c0_6 = arith.constant 0 : index
    %c0_7 = arith.constant 0 : index
    %26 = vector.load %arg10[%c0_6, %c0_7] : memref<96x32xf32, #tpu.memory_space<vmem>>, vector<96x32xf32>
    tpu.vector_store %arg10[%c0_6, %c0_7], %25 {strides = array<i32>} : memref<96x32xf32, #tpu.memory_space<vmem>>, vector<96x32xf32>,
    %c0_8 = arith.constant 0 : index
    %c0_9 = arith.constant 0 : index
    %c0_10 = arith.constant 0 : index
    %27 = vector.load %arg1[%c0_8, %c0_9, %c0_10] : memref<1x64x36xbf16, #tpu.memory_space<vmem>>, vector<1x64x36xbf16>
    %28 = vector.shape_cast %27 : vector<1x64x36xbf16> to vector<64x36xbf16>
    %c0_11 = arith.constant 0 : index
    %c0_12 = arith.constant 0 : index
    %c0_13 = arith.constant 0 : index
    %29 = vector.load %arg3[%c0_11, %c0_12, %c0_13] : memref<2x36x32xbf16, #tpu.memory_space<vmem>>, vector<1x36x32xbf16>
    %30 = vector.shape_cast %29 : vector<1x36x32xbf16> to vector<36x32xbf16>
    %c0_14 = arith.constant 0 : index
    %c0_15 = arith.constant 0 : index
    %c0_16 = arith.constant 0 : index
    %31 = vector.load %arg4[%c0_14, %c0_15, %c0_16] : memref<2x288x32xbf16, #tpu.memory_space<vmem>>, vector<1x288x32xbf16>
    %32 = vector.shape_cast %31 : vector<1x288x32xbf16> to vector<288x32xbf16>
    %cst_17 = arith.constant dense<0.000000e+00> : vector<64x32xf32>
    %33 = tpu.matmul %28, %30, %cst_17 {dimension_numbers = #tpu.dot_dimension_numbers<[1], [0], [0], [1], [0, 0, 1, 1], [], []>} : vector<64x36xbf16>, vector<36x32xbf16>, vector<64x32xf32> -> vector<64x32xf32>
    %34 = vector.broadcast %1 : vector<1x32xf32> to vector<64x32xf32>
    %35 = arith.addf %33, %34 : vector<64x32xf32>
    %cst_18 = arith.constant 0.000000e+00 : f32
    %36 = vector.broadcast %cst_18 : f32 to vector<64x32xf32>
    %37 = arith.maximumf %35, %36 : vector<64x32xf32>
    %c16 = arith.constant 16 : index
    %c0_19 = arith.constant 0 : index
    %38 = vector.load %arg10[%c16, %c0_19] : memref<96x32xf32, #tpu.memory_space<vmem>>, vector<64x32xf32>
    tpu.vector_store %arg10[%c16, %c0_19], %37 {strides = array<i32>} : memref<96x32xf32, #tpu.memory_space<vmem>>, vector<64x32xf32>,
    %c7 = arith.constant 7 : index
    %c0_20 = arith.constant 0 : index
    %39 = vector.load %arg10[%c7, %c0_20] : memref<96x32xf32, #tpu.memory_space<vmem>>, vector<64x32xf32>
    %cst_21 = arith.constant 0.000000e+00 : f32
    %40 = vector.broadcast %cst_21 : f32 to vector<64x32xf32>
    %41 = vector.shape_cast %22 : vector<64x1xi1> to vector<64x1xi1>
    %42 = vector.broadcast %41 : vector<64x1xi1> to vector<64x32xi1>
    %43 = arith.select %42, %39, %40 : vector<64x32xi1>, vector<64x32xf32>
    %c8 = arith.constant 8 : index
    %c0_22 = arith.constant 0 : index
    %44 = vector.load %arg10[%c8, %c0_22] : memref<96x32xf32, #tpu.memory_space<vmem>>, vector<64x32xf32>
    %c9 = arith.constant 9 : index
    %c0_23 = arith.constant 0 : index
    %45 = vector.load %arg10[%c9, %c0_23] : memref<96x32xf32, #tpu.memory_space<vmem>>, vector<64x32xf32>
    %cst_24 = arith.constant 0.000000e+00 : f32
    %46 = vector.broadcast %cst_24 : f32 to vector<64x32xf32>
    %47 = vector.shape_cast %24 : vector<64x1xi1> to vector<64x1xi1>
    %48 = vector.broadcast %47 : vector<64x1xi1> to vector<64x32xi1>
    %49 = arith.select %48, %45, %46 : vector<64x32xi1>, vector<64x32xf32>
    %c15 = arith.constant 15 : index
    %c0_25 = arith.constant 0 : index
    %50 = vector.load %arg10[%c15, %c0_25] : memref<96x32xf32, #tpu.memory_space<vmem>>, vector<64x32xf32>
    %cst_26 = arith.constant 0.000000e+00 : f32
    %51 = vector.broadcast %cst_26 : f32 to vector<64x32xf32>
    %52 = vector.shape_cast %22 : vector<64x1xi1> to vector<64x1xi1>
    %53 = vector.broadcast %52 : vector<64x1xi1> to vector<64x32xi1>
    %54 = arith.select %53, %50, %51 : vector<64x32xi1>, vector<64x32xf32>
    %c16_27 = arith.constant 16 : index
    %c0_28 = arith.constant 0 : index
    %55 = vector.load %arg10[%c16_27, %c0_28] : memref<96x32xf32, #tpu.memory_space<vmem>>, vector<64x32xf32>
    %c17 = arith.constant 17 : index
    %c0_29 = arith.constant 0 : index
    %56 = vector.load %arg10[%c17, %c0_29] : memref<96x32xf32, #tpu.memory_space<vmem>>, vector<64x32xf32>
    %cst_30 = arith.constant 0.000000e+00 : f32
    %57 = vector.broadcast %cst_30 : f32 to vector<64x32xf32>
    %58 = vector.shape_cast %24 : vector<64x1xi1> to vector<64x1xi1>
    %59 = vector.broadcast %58 : vector<64x1xi1> to vector<64x32xi1>
    %60 = arith.select %59, %56, %57 : vector<64x32xi1>, vector<64x32xf32>
    %c23 = arith.constant 23 : index
    %c0_31 = arith.constant 0 : index
    %61 = vector.load %arg10[%c23, %c0_31] : memref<96x32xf32, #tpu.memory_space<vmem>>, vector<64x32xf32>
    %cst_32 = arith.constant 0.000000e+00 : f32
    %62 = vector.broadcast %cst_32 : f32 to vector<64x32xf32>
    %63 = vector.shape_cast %22 : vector<64x1xi1> to vector<64x1xi1>
    %64 = vector.broadcast %63 : vector<64x1xi1> to vector<64x32xi1>
    %65 = arith.select %64, %61, %62 : vector<64x32xi1>, vector<64x32xf32>
    %c24 = arith.constant 24 : index
    %c0_33 = arith.constant 0 : index
    %66 = vector.load %arg10[%c24, %c0_33] : memref<96x32xf32, #tpu.memory_space<vmem>>, vector<64x32xf32>
    %c25 = arith.constant 25 : index
    %c0_34 = arith.constant 0 : index
    %67 = vector.load %arg10[%c25, %c0_34] : memref<96x32xf32, #tpu.memory_space<vmem>>, vector<64x32xf32>
    %cst_35 = arith.constant 0.000000e+00 : f32
    %68 = vector.broadcast %cst_35 : f32 to vector<64x32xf32>
    %69 = vector.shape_cast %24 : vector<64x1xi1> to vector<64x1xi1>
    %70 = vector.broadcast %69 : vector<64x1xi1> to vector<64x32xi1>
    %71 = arith.select %70, %67, %68 : vector<64x32xi1>, vector<64x32xf32>
    %72 = tpu.concatenate %43, %44, %49, %54, %55, %60, %65, %66, %71 in 1 : vector<64x32xf32>, vector<64x32xf32>, vector<64x32xf32>, vector<64x32xf32>, vector<64x32xf32>, vector<64x32xf32>, vector<64x32xf32>, vector<64x32xf32>, vector<64x32xf32> -> vector<64x288xf32>
    %73 = arith.truncf %72 : vector<64x288xf32> to vector<64x288xbf16>
    %cst_36 = arith.constant dense<0.000000e+00> : vector<64x32xf32>
    %74 = tpu.matmul %73, %32, %cst_36 {dimension_numbers = #tpu.dot_dimension_numbers<[1], [0], [0], [1], [0, 0, 1, 1], [], []>} : vector<64x288xbf16>, vector<288x32xbf16>, vector<64x32xf32> -> vector<64x32xf32>
    %75 = vector.broadcast %2 : vector<1x32xf32> to vector<64x32xf32>
    %76 = arith.addf %74, %75 : vector<64x32xf32>
    %cst_37 = arith.constant 0.000000e+00 : f32
    %77 = vector.broadcast %cst_37 : f32 to vector<64x32xf32>
    %78 = arith.maximumf %76, %77 : vector<64x32xf32>
    %c0_38 = arith.constant 0 : index
    %c0_39 = arith.constant 0 : index
    %c0_40 = arith.constant 0 : index
    %79 = vector.load %arg2[%c0_38, %c0_39, %c0_40] : memref<1x64x36xbf16, #tpu.memory_space<vmem>>, vector<1x64x36xbf16>
    %80 = vector.shape_cast %79 : vector<1x64x36xbf16> to vector<64x36xbf16>
    %c1 = arith.constant 1 : index
    %c0_41 = arith.constant 0 : index
    %c0_42 = arith.constant 0 : index
    %81 = vector.load %arg3[%c1, %c0_41, %c0_42] : memref<2x36x32xbf16, #tpu.memory_space<vmem>>, vector<1x36x32xbf16>
    %82 = vector.shape_cast %81 : vector<1x36x32xbf16> to vector<36x32xbf16>
    %c1_43 = arith.constant 1 : index
    %c0_44 = arith.constant 0 : index
    %c0_45 = arith.constant 0 : index
    %83 = vector.load %arg4[%c1_43, %c0_44, %c0_45] : memref<2x288x32xbf16, #tpu.memory_space<vmem>>, vector<1x288x32xbf16>
    %84 = vector.shape_cast %83 : vector<1x288x32xbf16> to vector<288x32xbf16>
    %cst_46 = arith.constant dense<0.000000e+00> : vector<64x32xf32>
    %85 = tpu.matmul %80, %82, %cst_46 {dimension_numbers = #tpu.dot_dimension_numbers<[1], [0], [0], [1], [0, 0, 1, 1], [], []>} : vector<64x36xbf16>, vector<36x32xbf16>, vector<64x32xf32> -> vector<64x32xf32>
    %86 = vector.broadcast %3 : vector<1x32xf32> to vector<64x32xf32>
    %87 = arith.addf %85, %86 : vector<64x32xf32>
    %cst_47 = arith.constant 0.000000e+00 : f32
    %88 = vector.broadcast %cst_47 : f32 to vector<64x32xf32>
    %89 = arith.maximumf %87, %88 : vector<64x32xf32>
    %c16_48 = arith.constant 16 : index
    %c0_49 = arith.constant 0 : index
    %90 = vector.load %arg10[%c16_48, %c0_49] : memref<96x32xf32, #tpu.memory_space<vmem>>, vector<64x32xf32>
    tpu.vector_store %arg10[%c16_48, %c0_49], %89 {strides = array<i32>} : memref<96x32xf32, #tpu.memory_space<vmem>>, vector<64x32xf32>,
    %c7_50 = arith.constant 7 : index
    %c0_51 = arith.constant 0 : index
    %91 = vector.load %arg10[%c7_50, %c0_51] : memref<96x32xf32, #tpu.memory_space<vmem>>, vector<64x32xf32>
    %cst_52 = arith.constant 0.000000e+00 : f32
    %92 = vector.broadcast %cst_52 : f32 to vector<64x32xf32>
    %93 = vector.shape_cast %22 : vector<64x1xi1> to vector<64x1xi1>
    %94 = vector.broadcast %93 : vector<64x1xi1> to vector<64x32xi1>
    %95 = arith.select %94, %91, %92 : vector<64x32xi1>, vector<64x32xf32>
    %c8_53 = arith.constant 8 : index
    %c0_54 = arith.constant 0 : index
    %96 = vector.load %arg10[%c8_53, %c0_54] : memref<96x32xf32, #tpu.memory_space<vmem>>, vector<64x32xf32>
    %c9_55 = arith.constant 9 : index
    %c0_56 = arith.constant 0 : index
    %97 = vector.load %arg10[%c9_55, %c0_56] : memref<96x32xf32, #tpu.memory_space<vmem>>, vector<64x32xf32>
    %cst_57 = arith.constant 0.000000e+00 : f32
    %98 = vector.broadcast %cst_57 : f32 to vector<64x32xf32>
    %99 = vector.shape_cast %24 : vector<64x1xi1> to vector<64x1xi1>
    %100 = vector.broadcast %99 : vector<64x1xi1> to vector<64x32xi1>
    %101 = arith.select %100, %97, %98 : vector<64x32xi1>, vector<64x32xf32>
    %c15_58 = arith.constant 15 : index
    %c0_59 = arith.constant 0 : index
    %102 = vector.load %arg10[%c15_58, %c0_59] : memref<96x32xf32, #tpu.memory_space<vmem>>, vector<64x32xf32>
    %cst_60 = arith.constant 0.000000e+00 : f32
    %103 = vector.broadcast %cst_60 : f32 to vector<64x32xf32>
    %104 = vector.shape_cast %22 : vector<64x1xi1> to vector<64x1xi1>
    %105 = vector.broadcast %104 : vector<64x1xi1> to vector<64x32xi1>
    %106 = arith.select %105, %102, %103 : vector<64x32xi1>, vector<64x32xf32>
    %c16_61 = arith.constant 16 : index
    %c0_62 = arith.constant 0 : index
    %107 = vector.load %arg10[%c16_61, %c0_62] : memref<96x32xf32, #tpu.memory_space<vmem>>, vector<64x32xf32>
    %c17_63 = arith.constant 17 : index
    %c0_64 = arith.constant 0 : index
    %108 = vector.load %arg10[%c17_63, %c0_64] : memref<96x32xf32, #tpu.memory_space<vmem>>, vector<64x32xf32>
    %cst_65 = arith.constant 0.000000e+00 : f32
    %109 = vector.broadcast %cst_65 : f32 to vector<64x32xf32>
    %110 = vector.shape_cast %24 : vector<64x1xi1> to vector<64x1xi1>
    %111 = vector.broadcast %110 : vector<64x1xi1> to vector<64x32xi1>
    %112 = arith.select %111, %108, %109 : vector<64x32xi1>, vector<64x32xf32>
    %c23_66 = arith.constant 23 : index
    %c0_67 = arith.constant 0 : index
    %113 = vector.load %arg10[%c23_66, %c0_67] : memref<96x32xf32, #tpu.memory_space<vmem>>, vector<64x32xf32>
    %cst_68 = arith.constant 0.000000e+00 : f32
    %114 = vector.broadcast %cst_68 : f32 to vector<64x32xf32>
    %115 = vector.shape_cast %22 : vector<64x1xi1> to vector<64x1xi1>
    %116 = vector.broadcast %115 : vector<64x1xi1> to vector<64x32xi1>
    %117 = arith.select %116, %113, %114 : vector<64x32xi1>, vector<64x32xf32>
    %c24_69 = arith.constant 24 : index
    %c0_70 = arith.constant 0 : index
    %118 = vector.load %arg10[%c24_69, %c0_70] : memref<96x32xf32, #tpu.memory_space<vmem>>, vector<64x32xf32>
    %c25_71 = arith.constant 25 : index
    %c0_72 = arith.constant 0 : index
    %119 = vector.load %arg10[%c25_71, %c0_72] : memref<96x32xf32, #tpu.memory_space<vmem>>, vector<64x32xf32>
    %cst_73 = arith.constant 0.000000e+00 : f32
    %120 = vector.broadcast %cst_73 : f32 to vector<64x32xf32>
    %121 = vector.shape_cast %24 : vector<64x1xi1> to vector<64x1xi1>
    %122 = vector.broadcast %121 : vector<64x1xi1> to vector<64x32xi1>
    %123 = arith.select %122, %119, %120 : vector<64x32xi1>, vector<64x32xf32>
    %124 = tpu.concatenate %95, %96, %101, %106, %107, %112, %117, %118, %123 in 1 : vector<64x32xf32>, vector<64x32xf32>, vector<64x32xf32>, vector<64x32xf32>, vector<64x32xf32>, vector<64x32xf32>, vector<64x32xf32>, vector<64x32xf32>, vector<64x32xf32> -> vector<64x288xf32>
    %125 = arith.truncf %124 : vector<64x288xf32> to vector<64x288xbf16>
    %cst_74 = arith.constant dense<0.000000e+00> : vector<64x32xf32>
    %126 = tpu.matmul %125, %84, %cst_74 {dimension_numbers = #tpu.dot_dimension_numbers<[1], [0], [0], [1], [0, 0, 1, 1], [], []>} : vector<64x288xbf16>, vector<288x32xbf16>, vector<64x32xf32> -> vector<64x32xf32>
    %127 = vector.broadcast %4 : vector<1x32xf32> to vector<64x32xf32>
    %128 = arith.addf %126, %127 : vector<64x32xf32>
    %cst_75 = arith.constant 0.000000e+00 : f32
    %129 = vector.broadcast %cst_75 : f32 to vector<64x32xf32>
    %130 = arith.maximumf %128, %129 : vector<64x32xf32>
    %131 = arith.truncf %78 : vector<64x32xf32> to vector<64x32xbf16>
    %132 = arith.truncf %130 : vector<64x32xf32> to vector<64x32xbf16>
    %c0_76 = arith.constant 0 : index
    %c0_77 = arith.constant 0 : index
    %c0_78 = arith.constant 0 : index
    %133 = vector.load %arg5[%c0_76, %c0_77, %c0_78] : memref<2x32x32xbf16, #tpu.memory_space<vmem>>, vector<1x32x32xbf16>
    %134 = vector.shape_cast %133 : vector<1x32x32xbf16> to vector<32x32xbf16>
    %cst_79 = arith.constant dense<0.000000e+00> : vector<64x32xf32>
    %135 = tpu.matmul %131, %134, %cst_79 {dimension_numbers = #tpu.dot_dimension_numbers<[1], [0], [0], [1], [0, 0, 1, 1], [], []>} : vector<64x32xbf16>, vector<32x32xbf16>, vector<64x32xf32> -> vector<64x32xf32>
    %136 = vector.broadcast %5 : vector<1x32xf32> to vector<64x32xf32>
    %137 = arith.addf %135, %136 : vector<64x32xf32>
    %c0_80 = arith.constant 0 : index
    %c0_81 = arith.constant 0 : index
    %138 = vector.load %arg6[%c0_80, %c0_81] : memref<32x64xbf16, #tpu.memory_space<vmem>>, vector<32x64xbf16>
    %cst_82 = arith.constant dense<0.000000e+00> : vector<64x64xf32>
    %139 = tpu.matmul %132, %138, %cst_82 {dimension_numbers = #tpu.dot_dimension_numbers<[1], [0], [0], [1], [0, 0, 1, 1], [], []>} : vector<64x32xbf16>, vector<32x64xbf16>, vector<64x64xf32> -> vector<64x64xf32>
    %140 = vector.extract_strided_slice %139 {offsets = [0, 0], sizes = [64, 32], strides = [1, 1]} : vector<64x64xf32> to vector<64x32xf32>
    %141 = vector.broadcast %6 : vector<1x32xf32> to vector<64x32xf32>
    %142 = arith.addf %140, %141 : vector<64x32xf32>
    %143 = vector.extract_strided_slice %139 {offsets = [0, 32], sizes = [64, 32], strides = [1, 1]} : vector<64x64xf32> to vector<64x32xf32>
    %144 = vector.broadcast %7 : vector<1x32xf32> to vector<64x32xf32>
    %145 = arith.addf %143, %144 : vector<64x32xf32>
    %146 = vector.extract_strided_slice %137 {offsets = [0, 0], sizes = [64, 8], strides = [1, 1]} : vector<64x32xf32> to vector<64x8xf32>
    %147 = arith.truncf %146 : vector<64x8xf32> to vector<64x8xbf16>
    %148 = vector.extract_strided_slice %142 {offsets = [0, 0], sizes = [64, 8], strides = [1, 1]} : vector<64x32xf32> to vector<64x8xf32>
    %149 = arith.truncf %148 : vector<64x8xf32> to vector<64x8xbf16>
    %150 = vector.extract_strided_slice %145 {offsets = [0, 0], sizes = [64, 8], strides = [1, 1]} : vector<64x32xf32> to vector<64x8xf32>
    %151 = arith.truncf %150 : vector<64x8xf32> to vector<64x8xbf16>
    %cst_83 = arith.constant dense<0.000000e+00> : vector<64x64xf32>
    %152 = tpu.matmul %147, %149, %cst_83 {dimension_numbers = #tpu.dot_dimension_numbers<[1], [1], [0], [0], [0, 0, 1, 0], [], []>} : vector<64x8xbf16>, vector<64x8xbf16>, vector<64x64xf32> -> vector<64x64xf32>
    %cst_84 = arith.constant dense<0xFF800000> : vector<64xf32>
    %153 = vector.multi_reduction <maximumf>, %152, %cst_84 [1] : vector<64x64xf32> to vector<64xf32>
    %154 = vector.shape_cast %153 : vector<64xf32> to vector<64x1xf32>
    %155 = vector.broadcast %154 : vector<64x1xf32> to vector<64x64xf32>
    %156 = arith.subf %152, %155 : vector<64x64xf32>
    %157 = math.exp %156 : vector<64x64xf32>
    %cst_85 = arith.constant dense<0.000000e+00> : vector<64xf32>
    %158 = vector.multi_reduction <add>, %157, %cst_85 [1] : vector<64x64xf32> to vector<64xf32>
    %159 = vector.shape_cast %158 : vector<64xf32> to vector<64x1xf32>
    %160 = tpu.reciprocal %159 {approx = true} : vector<64x1xf32> -> vector<64x1xf32>
    %161 = vector.broadcast %160 : vector<64x1xf32> to vector<64x64xf32>
    %162 = arith.mulf %157, %161 : vector<64x64xf32>
    %163 = arith.truncf %162 : vector<64x64xf32> to vector<64x64xbf16>
    %cst_86 = arith.constant dense<0.000000e+00> : vector<64x8xf32>
    %164 = tpu.matmul %163, %151, %cst_86 {dimension_numbers = #tpu.dot_dimension_numbers<[1], [0], [0], [1], [0, 0, 1, 1], [], []>} : vector<64x64xbf16>, vector<64x8xbf16>, vector<64x8xf32> -> vector<64x8xf32>
    %165 = vector.extract_strided_slice %137 {offsets = [0, 8], sizes = [64, 8], strides = [1, 1]} : vector<64x32xf32> to vector<64x8xf32>
    %166 = arith.truncf %165 : vector<64x8xf32> to vector<64x8xbf16>
    %167 = vector.extract_strided_slice %142 {offsets = [0, 8], sizes = [64, 8], strides = [1, 1]} : vector<64x32xf32> to vector<64x8xf32>
    %168 = arith.truncf %167 : vector<64x8xf32> to vector<64x8xbf16>
    %169 = vector.extract_strided_slice %145 {offsets = [0, 8], sizes = [64, 8], strides = [1, 1]} : vector<64x32xf32> to vector<64x8xf32>
    %170 = arith.truncf %169 : vector<64x8xf32> to vector<64x8xbf16>
    %cst_87 = arith.constant dense<0.000000e+00> : vector<64x64xf32>
    %171 = tpu.matmul %166, %168, %cst_87 {dimension_numbers = #tpu.dot_dimension_numbers<[1], [1], [0], [0], [0, 0, 1, 0], [], []>} : vector<64x8xbf16>, vector<64x8xbf16>, vector<64x64xf32> -> vector<64x64xf32>
    %cst_88 = arith.constant dense<0xFF800000> : vector<64xf32>
    %172 = vector.multi_reduction <maximumf>, %171, %cst_88 [1] : vector<64x64xf32> to vector<64xf32>
    %173 = vector.shape_cast %172 : vector<64xf32> to vector<64x1xf32>
    %174 = vector.broadcast %173 : vector<64x1xf32> to vector<64x64xf32>
    %175 = arith.subf %171, %174 : vector<64x64xf32>
    %176 = math.exp %175 : vector<64x64xf32>
    %cst_89 = arith.constant dense<0.000000e+00> : vector<64xf32>
    %177 = vector.multi_reduction <add>, %176, %cst_89 [1] : vector<64x64xf32> to vector<64xf32>
    %178 = vector.shape_cast %177 : vector<64xf32> to vector<64x1xf32>
    %179 = tpu.reciprocal %178 {approx = true} : vector<64x1xf32> -> vector<64x1xf32>
    %180 = vector.broadcast %179 : vector<64x1xf32> to vector<64x64xf32>
    %181 = arith.mulf %176, %180 : vector<64x64xf32>
    %182 = arith.truncf %181 : vector<64x64xf32> to vector<64x64xbf16>
    %cst_90 = arith.constant dense<0.000000e+00> : vector<64x8xf32>
    %183 = tpu.matmul %182, %170, %cst_90 {dimension_numbers = #tpu.dot_dimension_numbers<[1], [0], [0], [1], [0, 0, 1, 1], [], []>} : vector<64x64xbf16>, vector<64x8xbf16>, vector<64x8xf32> -> vector<64x8xf32>
    %184 = vector.extract_strided_slice %137 {offsets = [0, 16], sizes = [64, 8], strides = [1, 1]} : vector<64x32xf32> to vector<64x8xf32>
    %185 = arith.truncf %184 : vector<64x8xf32> to vector<64x8xbf16>
    %186 = vector.extract_strided_slice %142 {offsets = [0, 16], sizes = [64, 8], strides = [1, 1]} : vector<64x32xf32> to vector<64x8xf32>
    %187 = arith.truncf %186 : vector<64x8xf32> to vector<64x8xbf16>
    %188 = vector.extract_strided_slice %145 {offsets = [0, 16], sizes = [64, 8], strides = [1, 1]} : vector<64x32xf32> to vector<64x8xf32>
    %189 = arith.truncf %188 : vector<64x8xf32> to vector<64x8xbf16>
    %cst_91 = arith.constant dense<0.000000e+00> : vector<64x64xf32>
    %190 = tpu.matmul %185, %187, %cst_91 {dimension_numbers = #tpu.dot_dimension_numbers<[1], [1], [0], [0], [0, 0, 1, 0], [], []>} : vector<64x8xbf16>, vector<64x8xbf16>, vector<64x64xf32> -> vector<64x64xf32>
    %cst_92 = arith.constant dense<0xFF800000> : vector<64xf32>
    %191 = vector.multi_reduction <maximumf>, %190, %cst_92 [1] : vector<64x64xf32> to vector<64xf32>
    %192 = vector.shape_cast %191 : vector<64xf32> to vector<64x1xf32>
    %193 = vector.broadcast %192 : vector<64x1xf32> to vector<64x64xf32>
    %194 = arith.subf %190, %193 : vector<64x64xf32>
    %195 = math.exp %194 : vector<64x64xf32>
    %cst_93 = arith.constant dense<0.000000e+00> : vector<64xf32>
    %196 = vector.multi_reduction <add>, %195, %cst_93 [1] : vector<64x64xf32> to vector<64xf32>
    %197 = vector.shape_cast %196 : vector<64xf32> to vector<64x1xf32>
    %198 = tpu.reciprocal %197 {approx = true} : vector<64x1xf32> -> vector<64x1xf32>
    %199 = vector.broadcast %198 : vector<64x1xf32> to vector<64x64xf32>
    %200 = arith.mulf %195, %199 : vector<64x64xf32>
    %201 = arith.truncf %200 : vector<64x64xf32> to vector<64x64xbf16>
    %cst_94 = arith.constant dense<0.000000e+00> : vector<64x8xf32>
    %202 = tpu.matmul %201, %189, %cst_94 {dimension_numbers = #tpu.dot_dimension_numbers<[1], [0], [0], [1], [0, 0, 1, 1], [], []>} : vector<64x64xbf16>, vector<64x8xbf16>, vector<64x8xf32> -> vector<64x8xf32>
    %203 = vector.extract_strided_slice %137 {offsets = [0, 24], sizes = [64, 8], strides = [1, 1]} : vector<64x32xf32> to vector<64x8xf32>
    %204 = arith.truncf %203 : vector<64x8xf32> to vector<64x8xbf16>
    %205 = vector.extract_strided_slice %142 {offsets = [0, 24], sizes = [64, 8], strides = [1, 1]} : vector<64x32xf32> to vector<64x8xf32>
    %206 = arith.truncf %205 : vector<64x8xf32> to vector<64x8xbf16>
    %207 = vector.extract_strided_slice %145 {offsets = [0, 24], sizes = [64, 8], strides = [1, 1]} : vector<64x32xf32> to vector<64x8xf32>
    %208 = arith.truncf %207 : vector<64x8xf32> to vector<64x8xbf16>
    %cst_95 = arith.constant dense<0.000000e+00> : vector<64x64xf32>
    %209 = tpu.matmul %204, %206, %cst_95 {dimension_numbers = #tpu.dot_dimension_numbers<[1], [1], [0], [0], [0, 0, 1, 0], [], []>} : vector<64x8xbf16>, vector<64x8xbf16>, vector<64x64xf32> -> vector<64x64xf32>
    %cst_96 = arith.constant dense<0xFF800000> : vector<64xf32>
    %210 = vector.multi_reduction <maximumf>, %209, %cst_96 [1] : vector<64x64xf32> to vector<64xf32>
    %211 = vector.shape_cast %210 : vector<64xf32> to vector<64x1xf32>
    %212 = vector.broadcast %211 : vector<64x1xf32> to vector<64x64xf32>
    %213 = arith.subf %209, %212 : vector<64x64xf32>
    %214 = math.exp %213 : vector<64x64xf32>
    %cst_97 = arith.constant dense<0.000000e+00> : vector<64xf32>
    %215 = vector.multi_reduction <add>, %214, %cst_97 [1] : vector<64x64xf32> to vector<64xf32>
    %216 = vector.shape_cast %215 : vector<64xf32> to vector<64x1xf32>
    %217 = tpu.reciprocal %216 {approx = true} : vector<64x1xf32> -> vector<64x1xf32>
    %218 = vector.broadcast %217 : vector<64x1xf32> to vector<64x64xf32>
    %219 = arith.mulf %214, %218 : vector<64x64xf32>
    %220 = arith.truncf %219 : vector<64x64xf32> to vector<64x64xbf16>
    %cst_98 = arith.constant dense<0.000000e+00> : vector<64x8xf32>
    %221 = tpu.matmul %220, %208, %cst_98 {dimension_numbers = #tpu.dot_dimension_numbers<[1], [0], [0], [1], [0, 0, 1, 1], [], []>} : vector<64x64xbf16>, vector<64x8xbf16>, vector<64x8xf32> -> vector<64x8xf32>
    %222 = tpu.concatenate %164, %183, %202, %221 in 1 : vector<64x8xf32>, vector<64x8xf32>, vector<64x8xf32>, vector<64x8xf32> -> vector<64x32xf32>
    %223 = arith.truncf %222 : vector<64x32xf32> to vector<64x32xbf16>
    %c1_99 = arith.constant 1 : index
    %c0_100 = arith.constant 0 : index
    %c0_101 = arith.constant 0 : index
    %224 = vector.load %arg5[%c1_99, %c0_100, %c0_101] : memref<2x32x32xbf16, #tpu.memory_space<vmem>>, vector<1x32x32xbf16>
    %225 = vector.shape_cast %224 : vector<1x32x32xbf16> to vector<32x32xbf16>
    %cst_102 = arith.constant dense<0.000000e+00> : vector<64x32xf32>
    %226 = tpu.matmul %223, %225, %cst_102 {dimension_numbers = #tpu.dot_dimension_numbers<[1], [0], [0], [1], [0, 0, 1, 1], [], []>} : vector<64x32xbf16>, vector<32x32xbf16>, vector<64x32xf32> -> vector<64x32xf32>
    %227 = vector.broadcast %8 : vector<1x32xf32> to vector<64x32xf32>
    %228 = arith.addf %226, %227 : vector<64x32xf32>
    %229 = arith.addf %228, %78 : vector<64x32xf32>
    %cst_103 = arith.constant dense<0.000000e+00> : vector<1x64xf32>
    %230 = tpu.matmul %9, %229, %cst_103 {dimension_numbers = #tpu.dot_dimension_numbers<[1], [1], [0], [0], [0, 0, 1, 0], [], []>} : vector<1x32xf32>, vector<64x32xf32>, vector<1x64xf32> -> vector<1x64xf32>
    %231 = vector.broadcast %10 : vector<1x1xf32> to vector<1x64xf32>
    %232 = arith.addf %230, %231 : vector<1x64xf32>
    %233 = arith.negf %232 : vector<1x64xf32>
    %234 = math.exp %233 : vector<1x64xf32>
    %cst_104 = arith.constant 1.000000e+00 : f32
    %235 = vector.broadcast %cst_104 : f32 to vector<1x64xf32>
    %236 = arith.addf %235, %234 : vector<1x64xf32>
    %237 = arith.divf %235, %236 : vector<1x64xf32>
    %c0_105 = arith.constant 0 : index
    %c0_106 = arith.constant 0 : index
    %c0_107 = arith.constant 0 : index
    %238 = vector.load %arg8[%c0_105, %c0_106, %c0_107] : memref<1x1x64xf32, #tpu.memory_space<vmem>>, vector<1x1x64xf32>
    %239 = vector.shape_cast %238 : vector<1x1x64xf32> to vector<1x64xf32>
    %240 = vector.shape_cast %237 : vector<1x64xf32> to vector<1x1x64xf32>
    tpu.vector_store %arg8[%c0_105, %c0_106, %c0_107], %240 {strides = array<i32>} : memref<1x1x64xf32, #tpu.memory_space<vmem>>, vector<1x1x64xf32>,
    %cst_108 = arith.constant dense<0.000000e+00> : vector<32xf32>
    %241 = vector.multi_reduction <add>, %229, %cst_108 [0] : vector<64x32xf32> to vector<32xf32>
    %242 = vector.shape_cast %241 : vector<32xf32> to vector<1x32xf32>
    %cst_109 = arith.constant 6.400000e+01 : f32
    %243 = vector.broadcast %cst_109 : f32 to vector<1x32xf32>
    %244 = arith.divf %242, %243 : vector<1x32xf32>
    %c0_110 = arith.constant 0 : index
    %c0_111 = arith.constant 0 : index
    %c0_112 = arith.constant 0 : index
    %245 = vector.load %arg9[%c0_110, %c0_111, %c0_112] : memref<1x1x32xf32, #tpu.memory_space<vmem>>, vector<1x1x32xf32>
    %246 = vector.shape_cast %245 : vector<1x1x32xf32> to vector<1x32xf32>
    %247 = vector.shape_cast %244 : vector<1x32xf32> to vector<1x1x32xf32>
    tpu.vector_store %arg9[%c0_110, %c0_111, %c0_112], %247 {strides = array<i32>} : memref<1x1x32xf32, #tpu.memory_space<vmem>>, vector<1x1x32xf32>,
    return
  }
  func.func @transform_0(%arg0: i32) -> (i32, i32, i32) {
    %c0_i32 = arith.constant 0 : i32
    %c0_i32_0 = arith.constant 0 : i32
    %c0_i32_1 = arith.constant 0 : i32
    return %arg0, %c0_i32, %c0_i32_0 : i32, i32, i32
  }
  func.func @transform_1(%arg0: i32) -> (i32, i32, i32) {
    %c0_i32 = arith.constant 0 : i32
    %c0_i32_0 = arith.constant 0 : i32
    %c0_i32_1 = arith.constant 0 : i32
    return %arg0, %c0_i32, %c0_i32_0 : i32, i32, i32
  }
  func.func @transform_2(%arg0: i32) -> (i32, i32, i32) {
    %c0_i32 = arith.constant 0 : i32
    %c0_i32_0 = arith.constant 0 : i32
    %c0_i32_1 = arith.constant 0 : i32
    %c0_i32_2 = arith.constant 0 : i32
    return %c0_i32, %c0_i32_0, %c0_i32_1 : i32, i32, i32
  }
  func.func @transform_3(%arg0: i32) -> (i32, i32, i32) {
    %c0_i32 = arith.constant 0 : i32
    %c0_i32_0 = arith.constant 0 : i32
    %c0_i32_1 = arith.constant 0 : i32
    %c0_i32_2 = arith.constant 0 : i32
    return %c0_i32, %c0_i32_0, %c0_i32_1 : i32, i32, i32
  }
  func.func @transform_4(%arg0: i32) -> (i32, i32, i32) {
    %c0_i32 = arith.constant 0 : i32
    %c0_i32_0 = arith.constant 0 : i32
    %c0_i32_1 = arith.constant 0 : i32
    %c0_i32_2 = arith.constant 0 : i32
    return %c0_i32, %c0_i32_0, %c0_i32_1 : i32, i32, i32
  }
  func.func @transform_5(%arg0: i32) -> (i32, i32) {
    %c0_i32 = arith.constant 0 : i32
    %c0_i32_0 = arith.constant 0 : i32
    %c0_i32_1 = arith.constant 0 : i32
    return %c0_i32, %c0_i32_0 : i32, i32
  }
  func.func @transform_6(%arg0: i32) -> (i32, i32) {
    %c0_i32 = arith.constant 0 : i32
    %c0_i32_0 = arith.constant 0 : i32
    %c0_i32_1 = arith.constant 0 : i32
    return %c0_i32, %c0_i32_0 : i32, i32
  }
  func.func @transform_7(%arg0: i32) -> (i32, i32, i32) {
    %c0_i32 = arith.constant 0 : i32
    %c0_i32_0 = arith.constant 0 : i32
    %c0_i32_1 = arith.constant 0 : i32
    return %arg0, %c0_i32, %c0_i32_0 : i32, i32, i32
  }
  func.func @transform_8(%arg0: i32) -> (i32, i32, i32) {
    %c0_i32 = arith.constant 0 : i32
    %c0_i32_0 = arith.constant 0 : i32
    %c0_i32_1 = arith.constant 0 : i32
    return %arg0, %c0_i32, %c0_i32_0 : i32, i32, i32
  }
}

</mosaic_0001>

<bundles_post_ra>
// kernel: _rfmask_impl.1
= control target key start
LH: loop header
LB: loop body
LE: loop exit
PB: predicated region body
PF: predicated region fallthrough
CT: control target
= control target key end

     0   :  { %s5062_s27 = smov 0   ;;  %s6662_s0 = inlined_call_operand.vmem [shape: bf16[2,64,36], index: 0, kind: input, shape index: {}]   ;;  %s6663_s1 = inlined_call_operand.vmem [shape: bf16[2,64,36], index: 1, kind: input, shape index: {}]   ;;  %s6664_s2 = inlined_call_operand.vmem [shape: bf16[2,36,32], index: 2, kind: input, shape index: {}]   ;;  %s6665_s3 = inlined_call_operand.vmem [shape: bf16[2,288,32], index: 3, kind: input, shape index: {}]   ;;  %s6666_s4 = inlined_call_operand.vmem [shape: bf16[2,32,32], index: 4, kind: input, shape index: {}]   ;;  %s6667_s5 = inlined_call_operand.vmem [shape: bf16[32,64], index: 5, kind: input, shape index: {}]   ;;  %s6668_s6 = inlined_call_operand.vmem [shape: f32[10,32], index: 6, kind: input, shape index: {}]   ;;  %s6669_s7 = inlined_call_operand.vmem [shape: f32[2,1,64], index: 7, kind: output, shape index: {0}]   ;;  %s6670_s8 = inlined_call_operand.vmem [shape: f32[2,1,32], index: 8, kind: output, shape index: {1}]  }
   0x1 LB: > { %s3828_s28 = sadd.s32 4294967295, %s4999_s27   ;;  %p3832_p0 = scmp.ge.s32.totalorder %s4999_s27, 1  ;;  %s4999_s27 = sphi %s5062_s27, %s19_s27  }
   0x2   : > { %p275_p1 = scmp.lt.s32.totalorder %s4999_s27, 3 }
   0x4   : > { %p276_p2 = pnand %p3832_p0, %p275_p1 }
   0x5   : > { %v4803_v0 = vld [vmem:[%s6664_s2] sm:$0xff] (!%p276_p2)   ;;  %v4804_v1 = vld [vmem:[%s6664_s2 + $0x8] sm:$0xff] (!%p276_p2)   ;;  %p315_p3 = scmp.lt.s32.totalorder (!%p276_p2), %s3828_s28, 1  ;;  %v4805_v2 = vld [vmem:[%s6664_s2 + $0x10] ss:$0 sps:$4 sm:$0x33] (!%p276_p2)   ;;  %v334_v19 = vlaneseq (!%p276_p2) }
   0x6   : > { %279 = sbr.rel (%p276_p2) target bundleno = 3816 (0xee8), region = 48  ;;  %4209 = vmatprep.subr.bf16.mxu0 (!%p276_p2), %v4803_v0  ;;  %vm407_vm0 = vcmask (!%p276_p2), 261120   ;;  %vm521_vm1 = vcmask (!%p276_p2), 1041408   ;;  %v6682_v3 = vmov (!%p276_p2), 0.0   ;;  %vm508_vm2 = vcmask (!%p276_p2), 293888   ;;  %v4810_v9 = vld [vmem:[%s6665_s3 + $0x80] sm:$0xff] (!%p276_p2)  }
   0x7   : > { %4210 = vmatpush3.bf16.msra.mxu0 (!%p276_p2), %v4803_v0  ;;  %412 = vst.msk [vmem:[#allocation2 + $0x20] sm:$0xff] (!%p276_p2), %vm407_vm0, %v6682_v3  ;;  %408 = vst.msk [vmem:[#allocation2] sm:$0xff] (!%p276_p2), %vm407_vm0, %v6682_v3  ;;  %v523_v5 = vsel (!%p276_p2), %vm521_vm1, %v4805_v2, 0  ;;  %v4811_v10 = vld [vmem:[%s6665_s3 + $0x88] sm:$0xff] (!%p276_p2)   ;;  %v5129_v11 = vld [vmem:[%s6664_s2 + $0x14] sm:$0xff] (!%p276_p2)   ;;  %v5153_v20 = vshrl.u32 (!%p276_p2), %v334_v19, 7 }
   0x8   : > { %4211 = vmatprep.subr.bf16.mxu0 (!%p276_p2), %v4804_v1  ;;  %409 = vst.msk [vmem:[#allocation2 + $0x8] sm:$0xff] (!%p276_p2), %vm407_vm0, %v6682_v3  ;;  %410 = vst.msk [vmem:[#allocation2 + $0x10] sm:$0xff] (!%p276_p2), %vm407_vm0, %v6682_v3  ;;  %v4819_v12 = vld [vmem:[%s6665_s3 + $0x40] sm:$0xff] (!%p276_p2)   ;;  %v4821_v14 = vld [vmem:[%s6665_s3 + $0x48] sm:$0xff] (!%p276_p2)   ;;  %s5003_s21 = smov (!%p276_p2), 96   ;;  %s5004_s22 = smov (!%p276_p2), 64  }
   0x9   : > { %411 = vst.msk [vmem:[#allocation2 + $0x18] sm:$0xff] (!%p276_p2), %vm407_vm0, %v6682_v3  ;;  %413 = vst.msk [vmem:[#allocation2 + $0x28] sm:$0xff] (!%p276_p2), %vm407_vm0, %v6682_v3  ;;  %v4820_v13 = vld [vmem:[%s6665_s3] sm:$0xff] (!%p276_p2)   ;;  %4019 = vmatprep.subr.bf16.mxu1 (!%p276_p2), %v4819_v12  ;;  %v4822_v15 = vld [vmem:[%s6665_s3 + $0x8] sm:$0xff] (!%p276_p2)   ;;  %v336_v21 = vadd.s32 (!%p276_p2), 8, %v5153_v20  ;;  %v343_v23 = vcvt.s32.f32 (!%p276_p2), %v5153_v20  ;;  %v5158_v25 = vadd.s32 (!%p276_p2), 40, %v5153_v20 }
   0xa   : > { %414 = vst.msk [vmem:[#allocation2 + $0x30] sm:$0xff] (!%p276_p2), %vm407_vm0, %v6682_v3  ;;  %415 = vst.msk [vmem:[#allocation2 + $0x38] sm:$0xff] (!%p276_p2), %vm407_vm0, %v6682_v3  ;;  %4020 = vmatpush3.bf16.msra.mxu1 (!%p276_p2), %v4820_v13  ;;  %v4823_v16 = vld [vmem:[%s6665_s3 + $0x50] sm:$0xff] (!%p276_p2)   ;;  %v4825_v18 = vld [vmem:[%s6665_s3 + $0x58] sm:$0xff] (!%p276_p2)   ;;  %v471_v26 = vsub.s32 (!%p276_p2), 0, %v5153_v20  ;;  %v5162_v27 = vadd.s32 (!%p276_p2), 16, %v5153_v20 }
   0xb   : > { %416 = vst.msk [vmem:[#allocation2 + $0x40] sm:$0xff] (!%p276_p2), %vm407_vm0, %v6682_v3  ;;  %417 = vst.msk [vmem:[#allocation2 + $0x48] sm:$0xff] (!%p276_p2), %vm407_vm0, %v6682_v3  ;;  %4212 = vmatpush3.bf16.msra.mxu0 (!%p276_p2), %v4804_v1  ;;  %4021 = vmatprep.subr.bf16.mxu1 (!%p276_p2), %v4821_v14  ;;  %v4824_v17 = vld [vmem:[%s6665_s3 + $0x10] sm:$0xff] (!%p276_p2)   ;;  %v344_v22 = vcvt.s32.f32 (!%p276_p2), %v336_v21  ;;  %v5165_v28 = vadd.s32 (!%p276_p2), 24, %v5153_v20  ;;  %v5170_v29 = vld [vmem:[%s6668_s6] sm:$0xff] (!%p276_p2)  ;;  %v351_v30 = vadd.f32 (!%p276_p2), 0.5, %v343_v23  ;;  %v348_v33 = vcvt.s32.f32 (!%p276_p2), %v5158_v25 }
   0xc   : > { %418 = vst.msk [vmem:[#allocation2 + $0x50] sm:$0xff] (!%p276_p2), %vm407_vm0, %v6682_v3  ;;  %419 = vst.msk [vmem:[#allocation2 + $0x58] sm:$0xff] (!%p276_p2), %vm407_vm0, %v6682_v3  ;;  %4460 = vmatprep.subr.msk.bf16.mxu0 (!%p276_p2), %vm521_vm1, %v4805_v2  ;;  %v5175_v31 = vadd.s32 (!%p276_p2), 32, %v5153_v20  ;;  %v5179_v34 = vrot.slane (!%p276_p2), %v5170_v29, %v471_v26  ;;  %v345_v35 = vcvt.s32.f32 (!%p276_p2), %v5162_v27  ;;  %v5185_v39 = vadd.s32 (!%p276_p2), 48, %v5153_v20  ;;  %v4826_v0 = vld [vmem:[%s6665_s3 + $0x18] sm:$0xff] (!%p276_p2)   ;;  %s5005_s23 = smov (!%p276_p2), 120  }
   0xd   : > { %s6707_s28 = smov (!%p315_p3, %s3828_s28), 1  ;;  %v352_v24 = vadd.f32 0.5, %v344_v22  ;;  %v346_v36 = vcvt.s32.f32 %v5165_v28  ;;  %v359_v37 = vmul.f32 0.125, %v351_v30  ;;  %v5188_v40 = vadd.s32 56, %v5153_v20  ;;  %v4833_v25 = vld [vmem:[%s6665_s3 + $0x78] sm:$0xff]   ;;  %s5008_s24 = smov 80  }
   0xe   : > { %s4010_s13 = sshll.u32 %s6707_s28, 5  ;;  %4022 = vmatpush3.bf16.msra.mxu1 %v4822_v15  ;;  %v347_v38 = vcvt.s32.f32 %v5175_v31  ;;  %v356_v43 = vadd.f32 0.5, %v348_v33  ;;  %v353_v46 = vadd.f32 0.5, %v345_v35  ;;  %v349_v55 = vcvt.s32.f32 %v5185_v39  ;;  %s5009_s25 = smov 104  }
   0xf   : > { %s319_s16 = scalar_lea.vmem %s6662_s0, %s4010_s13  ;;  %s5115_s19 = scalar_lea.vmem %s6663_s1, %s4010_s13  ;;  %4214 = vmatpush3.bf16.msra.mxu0 %v523_v5  ;;  %4023 = vmatprep.subr.bf16.mxu1 %v4823_v16  ;;  %v360_v32 = vmul.f32 0.125, %v352_v24  ;;  %v354_v47 = vadd.f32 0.5, %v346_v36  ;;  %v367_v50 = vfloor.f32 %v359_v37  ;;  %v350_v56 = vcvt.s32.f32 %v5188_v40 }
  0x10   : > { %v4806_v4 = vld [vmem:[%s319_s16] sm:$0xff]   ;;  %v4807_v6 = vld [vmem:[%s319_s16 + $0x8] sm:$0xff]   ;;  %v4808_v7 = vld [vmem:[%s319_s16 + $0x10] sm:$0xff]   ;;  %4223 = vmatprep.subr.bf16.mxu0 %v4810_v9  ;;  %v355_v51 = vadd.f32 0.5, %v347_v38  ;;  %v364_v60 = vmul.f32 0.125, %v356_v43  ;;  %v361_v62 = vmul.f32 0.125, %v353_v46  ;;  %s330_s20 = scalar_lea.vmem %s6670_s8, %s6707_s28 }
  0x11   : > { %4215 = vmatprep.mubr.msk.bf16.mxu0 %vm508_vm2, %v4806_v4  ;;  %v4809_v8 = vld [vmem:[%s319_s16 + $0x18] sm:$0xff]   ;;  %v368_v42 = vfloor.f32 %v360_v32  ;;  %v362_v63 = vmul.f32 0.125, %v354_v47  ;;  %v375_v2 = vmul.f32 8.0, %v367_v50  ;;  %v357_v5 = vadd.f32 0.5, %v349_v55  ;;  %v5233_v32 = vld [vmem:[#allocation2 + $0x8] sm:$0xff]  ;;  %s5002_s13 = smov 32  }
  0x12   : > { %4216 = vmatmul.mubr.msk.bf16.vlgmr.msra.gmra.mrb[0].mxu0 %vm508_vm2, %v4807_v6  ;;  %4024 = vmatpush3.bf16.msra.mxu1 %v4824_v17  ;;  %v363_v4 = vmul.f32 0.125, %v355_v51  ;;  %v358_v6 = vadd.f32 0.5, %v350_v56  ;;  %v372_v12 = vfloor.f32 %v364_v60  ;;  %v369_v15 = vfloor.f32 %v361_v62  ;;  %v4829_v17 = vld [vmem:[%s6665_s3 + $0x68] sm:$0xff]   ;;  %s5010_s26 = smov 72   ;;  %s5011_s29 = smov 8  }
  0x13   : > { %4219 = vmatprep.mubr.msk.bf16.mxu0 %vm508_vm2, %v4808_v7  ;;  %4224 = vmatpush3.bf16.msra.mxu0 %v4810_v9  ;;  %v376_v59 = vmul.f32 8.0, %v368_v42  ;;  %v4827_v7 = vld [vmem:[%s6665_s3 + $0x60] sm:$0xff]   ;;  %v370_v16 = vfloor.f32 %v362_v63  ;;  %v5230_v21 = vsub.f32 %v343_v23, %v375_v2  ;;  %v365_v37 = vmul.f32 0.125, %v357_v5  ;;  %v4830_v42 = vld [vmem:[%s6665_s3 + $0x28] sm:$0xff]   ;;  %v4831_v2 = vld [vmem:[%s6665_s3 + $0x70] sm:$0xff]   ;;  %s5012_s30 = smov 16  }
  0x14   : > { %4225 = vmatprep.subr.bf16.mxu0 %v4811_v10  ;;  %4025 = vmatprep.subr.bf16.mxu1 %v4825_v18  ;;  %v380_v23 = vmul.f32 8.0, %v372_v12  ;;  %v377_v47 = vmul.f32 8.0, %v369_v15  ;;  %s5013_s12 = smov 24  }
  0x15   : > { %vm399_vm4 = vcmp.lt.f32.partialorder %v5230_v21, 6.5  ;;  %vm391_vm5 = vcmp.gt.f32.partialorder %v5230_v21, 0.5 }
  0x16   : > { %4026 = vmatpush3.bf16.msra.mxu1 %v4826_v0 }
  0x17   : > { %4226 = vmatpush3.bf16.msra.mxu0 %v4811_v10  ;;  %v5221_v10 = vsub.f32 %v344_v22, %v376_v59  ;;  %4027 = vmatprep.subr.bf16.mxu1 %v4827_v7  ;;  %v371_v22 = vfloor.f32 %v363_v4  ;;  %v373_v59 = vfloor.f32 %v365_v37  ;;  %v4832_v7 = vld [vmem:[%s6665_s3 + $0x30] sm:$0xff]  }
  0x18   : > { %4235 = vmatprep.subr.bf16.mxu0 %v5129_v11 }
  0x19   : > { %vm400_vm3 = vcmp.lt.f32.partialorder %v5221_v10, 6.5  ;;  %vm392_vm6 = vcmp.gt.f32.partialorder %v5221_v10, 0.5 }
  0x1a   : > { %4220 = vmatmul.mubr.msk.bf16.gmra.mrb[4].mxu0 %vm508_vm2, %v4809_v8  ;;  %v4828_v8 = vld [vmem:[%s6665_s3 + $0x20] sm:$0xff]  }
  0x1b   : > { %4028 = vmatpush3.bf16.msra.mxu1 %v4828_v8 }
  0x1c   : > { %4029 = vmatprep.subr.bf16.mxu1 %v4829_v17 }
  0x1f   : > { %4030 = vmatpush3.bf16.msra.mxu1 %v4830_v42 }
  0x20   : > { %4031 = vmatprep.subr.bf16.mxu1 %v4831_v2 }
  0x23   : > { %4032 = vmatpush3.bf16.msra.mxu1 %v4832_v7 }
  0x24   : > { %4033 = vmatprep.subr.bf16.mxu1 %v4833_v25 }
  0xe5   : > { %v4217_v41 = vpop.f32.mrb[0].mxu0 }
  0xe6   : > { %v568_v44 = vadd.f32 %v4217_v41, %v5179_v34  ;;  %v559_v45 = vpop.f32.mrb[1].mxu0  ;;  %v366_v41 = vmul.f32 0.125, %v358_v6 }
  0xe7   : > { %v560_v48 = vadd.f32 %v559_v45, %v5179_v34  ;;  %v4218_v49 = vpop.f32.mrb[2].mxu0 }
  0xe8   : > { %v592_v52 = vmax.f32 %v568_v44, 0.0  ;;  %v571_v53 = vadd.f32 %v4218_v49, %v5179_v34  ;;  %v562_v54 = vpop.f32.mrb[3].mxu0  ;;  %v374_v60 = vfloor.f32 %v366_v41 }
  0xe9   : > { %v590_v57 = vmax.f32 %v560_v48, 0.0  ;;  %v563_v58 = vadd.f32 %v562_v54, %v5179_v34  ;;  %v378_v48 = vmul.f32 8.0, %v370_v16 }
  0xea   : > { %600 = vst.msk [vmem:[#allocation2 + $0x20] sm:$0xff] %vm407_vm0, %v592_v52  ;;  %v593_v61 = vmax.f32 %v571_v53, 0.0  ;;  %v379_v52 = vmul.f32 8.0, %v371_v22 }
  0xeb   : > { %598 = vst.msk [vmem:[#allocation2 + $0x10] sm:$0xff] %vm407_vm0, %v590_v57  ;;  %v591_v1 = vmax.f32 %v563_v58, 0.0  ;;  %v5298_v8 = vsub.f32 %v346_v36, %v378_v48 }
  0xec   : > { %601 = vst.msk [vmem:[#allocation2 + $0x28] sm:$0xff] %vm407_vm0, %v593_v61 }
  0xed   : > { %599 = vst.msk [vmem:[#allocation2 + $0x18] sm:$0xff] %vm407_vm0, %v591_v1  ;;  %v4221_v9 = vpop.f32.mrb[4].mxu0  ;;  %v5274_v1 = vsub.f32 %v348_v33, %v380_v23  ;;  %v5294_v33 = vsub.f32 %v345_v35, %v377_v47  ;;  %v5309_v35 = vsub.f32 %v347_v38, %v379_v52  ;;  %vm6671_vm9 = vcmp.lt.f32.partialorder %v5298_v8, 6.5 }
  0xee   : > { %v584_v13 = vadd.f32 %v4221_v9, %v5179_v34  ;;  %v575_v14 = vpop.f32.mrb[5].mxu0  ;;  %vm394_vm14 = vcmp.gt.f32.partialorder %v5298_v8, 0.5 }
  0xef   : > { %v576_v18 = vadd.f32 %v575_v14, %v5179_v34  ;;  %v4222_v19 = vpop.f32.mrb[6].mxu0  ;;  %v382_v14 = vmul.f32 8.0, %v374_v60  ;;  %vm404_vm7 = vcmp.lt.f32.partialorder %v5274_v1, 6.5  ;;  %vm6672_vm8 = vcmp.lt.f32.partialorder %v5294_v33, 6.5 }
  0xf0   : > { %v596_v24 = vmax.f32 %v584_v13, 0.0  ;;  %v587_v26 = vadd.f32 %v4222_v19, %v5179_v34  ;;  %v578_v30 = vpop.f32.mrb[7].mxu0  ;;  %v381_v13 = vmul.f32 8.0, %v373_v59  ;;  %vm403_vm10 = vcmp.lt.f32.partialorder %v5309_v35, 6.5 }
  0xf1   : > { %v594_v43 = vmax.f32 %v576_v18, 0.0  ;;  %v579_v44 = vadd.f32 %v578_v30, %v5179_v34  ;;  %v5246_v51 = vld [vmem:[#allocation2 + $0x20] sm:$0xff]  ;;  %vm393_vm13 = vcmp.gt.f32.partialorder %v5294_v33, 0.5 }
  0xf2   : > { %604 = vst.msk [vmem:[#allocation2 + $0x40] sm:$0xff] %vm407_vm0, %v596_v24  ;;  %v597_v45 = vmax.f32 %v587_v26, 0.0  ;;  %v5241_v46 = vld [vmem:[#allocation2 + $0x10] sm:$0xff]  ;;  %v5333_v22 = vsub.f32 %v349_v55, %v381_v13  ;;  %v5337_v24 = vsub.f32 %v350_v56, %v382_v14  ;;  %v4814_v60 = vld [vmem:[%s6664_s2 + $0x24] ss:$0 sps:$4 sm:$0x33]  }
  0xf3   : > { %602 = vst.msk [vmem:[#allocation2 + $0x30] sm:$0xff] %vm407_vm0, %v594_v43  ;;  %v595_v49 = vmax.f32 %v579_v44, 0.0  ;;  %v4502_v50 = vpack.i.bf16 %v5241_v46, %v5233_v32  ;;  %v5249_v34 = vld [vmem:[#allocation2 + $0x21] sm:$0xff]  ;;  %v646_v28 = vld [vmem:[#allocation2 + $0x9] sm:$0xff]  ;;  %v4834_v44 = vld [vmem:[%s6665_s3 + $0x38] sm:$0xff]  }
  0xf4   : > { %605 = vst.msk [vmem:[#allocation2 + $0x48] sm:$0xff] %vm407_vm0, %v597_v45  ;;  %v5252_v53 = vld [vmem:[#allocation2 + $0x18] sm:$0xff]  ;;  %v709_v57 = vsel %vm400_vm3, %v5249_v34, 0.0  ;;  %v670_v38 = vsel %vm399_vm4, %v646_v28, 0.0  ;;  %v5351_v40 = vld [vmem:[#allocation2 + $0xf] sm:$0xff]  ;;  %vm405_vm11 = vcmp.lt.f32.partialorder %v5333_v22, 6.5  ;;  %4034 = vmatpush3.bf16.msra.mxu1 %v4834_v44 }
  0xf5   : > { %v5254_v54 = vld [vmem:[#allocation2 + $0x19] sm:$0xff]  ;;  %603 = vst.msk [vmem:[#allocation2 + $0x38] sm:$0xff] %vm407_vm0, %v595_v49  ;;  %4503 = vrot.lane.b32.xlu0 %v4502_v50, %s5002_s13  ;;  %v4512_v61 = vpack.i.bf16 %v5246_v51, %v5252_v53  ;;  %v647_v0 = vld [vmem:[#allocation2 + $0x11] sm:$0xff]  ;;  %v5363_v23 = vld [vmem:[#allocation2 + $0x28] sm:$0xff]  ;;  %v679_v47 = vsel %vm391_vm5, %v5351_v40, 0.0  ;;  %vm6673_vm12 = vcmp.lt.f32.partialorder %v5337_v24, 6.5 }
  0xf6   : > { %v5260_v58 = vld [vmem:[#allocation2 + $0x17] sm:$0xff]  ;;  %v708_v62 = vsel %vm399_vm4, %v5254_v54, 0.0  ;;  %v5270_v63 = vld [vmem:[#allocation2 + $0x1f] sm:$0xff]  ;;  %v689_v9 = vsel %vm399_vm4, %v647_v0, 0.0  ;;  %v690_v12 = vsel %vm400_vm3, %v5254_v54, 0.0  ;;  %v671_v36 = vsel %vm400_vm3, %v647_v0, 0.0 }
  0xf7   : > { %v954_v4 = vpack.c.bf16 %v709_v57, %v708_v62  ;;  %v698_v5 = vsel %vm391_vm5, %v5260_v58, 0.0  ;;  %v699_v6 = vsel %vm392_vm6, %v5270_v63, 0.0  ;;  %4513 = vrot.lane.b32.xlu1 %v4512_v61, %s5002_s13  ;;  %v4517_v16 = vpack.i.bf16 %v690_v12, %v689_v9  ;;  %v4813_v43 = vld [vmem:[%s6664_s2 + $0x1c] sm:$0xff]   ;;  %v707_v49 = vld [vmem:[#allocation2 + $0x51] sm:$0xff]  ;;  %v5402_v0 = vld [vmem:[#allocation2 + $0x27] sm:$0xff] }
  0xf8   : > { %v4522_v27 = vpack.i.bf16 %v699_v6, %v698_v5  ;;  %v4527_v26 = vpack.i.bf16 %v671_v36, %v670_v38  ;;  %v680_v42 = vsel %vm392_vm6, %v5260_v58, 0.0  ;;  %v672_v57 = vsel %vm6672_vm8, %v5254_v54, 0.0  ;;  %v4815_v6 = vld [vmem:[%s5115_s19] sm:$0xff]   ;;  %v5425_v28 = vld [vmem:[#allocation2 + $0x50] sm:$0xff] }
  0xf9   : > { %4227 = vmatprep.mubr.msk.bf16.mxu0 %vm407_vm0, %v954_v4  ;;  %4508 = vrot.lane.b32.xlu0 %v4512_v61, %s5003_s21  ;;  %v4532_v50 = vpack.i.bf16 %v680_v42, %v679_v47  ;;  %v673_v59 = vsel %vm6671_vm9, %v5249_v34, 0.0  ;;  %v691_v61 = vsel %vm6672_vm8, %v5249_v34, 0.0  ;;  %v5399_v54 = vsel %vm6673_vm12, %v707_v49, 0.0  ;;  %v4818_v47 = vld [vmem:[%s5115_s19 + $0x18] sm:$0xff]  }
  0xfa   : > { %v5314_v15 = vld [vmem:[#allocation2 + $0x29] sm:$0xff]  ;;  %v4537_v4 = vpack.i.bf16 %v673_v59, %v672_v57  ;;  %v681_v7 = vsel %vm393_vm13, %v5270_v63, 0.0  ;;  %v682_v25 = vsel %vm394_vm14, %v5402_v0, 0.0  ;;  %v1329_v9 = vsel %vm521_vm1, %v4814_v60, 0 }
  0xfb   : > { %4523 = vrot.lane.b32.xlu1 %v4522_v27, %s5004_s22  ;;  %v5320_v31 = vld [vmem:[#allocation2 + $0x41] sm:$0xff]  ;;  %v710_v30 = vsel %vm6672_vm8, %v5314_v15, 0.0  ;;  %v5349_v55 = vld [vmem:[#allocation2 + $0x30] sm:$0xff]  ;;  %v692_v52 = vsel %vm6671_vm9, %v5314_v15, 0.0  ;;  %v700_v12 = vsel %vm393_vm13, %v5402_v0, 0.0  ;;  %v4542_v14 = vpack.i.bf16 %v682_v25, %v681_v7 }
  0xfc   : > { %v5324_v17 = vld [vmem:[#allocation2 + $0x31] sm:$0xff]  ;;  %v5326_v18 = vld [vmem:[#allocation2 + $0x39] sm:$0xff]  ;;  %v713_v19 = vsel %vm404_vm7, %v5320_v31, 0.0  ;;  %v4547_v45 = vpack.i.bf16 %v5349_v55, %v5363_v23  ;;  %v688_v48 = vld [vmem:[#allocation2 + $0x49] sm:$0xff]  ;;  %v4557_v2 = vpack.i.bf16 %v692_v52, %v691_v61  ;;  %vm397_vm15 = vcmp.gt.f32.partialorder %v5333_v22, 0.5 }
  0xfd   : > { %4518 = vrot.lane.b32.xlu0 %v4517_v16, %s5002_s13  ;;  %v711_v37 = vsel %vm6671_vm9, %v5324_v17, 0.0  ;;  %v712_v39 = vsel %vm403_vm10, %v5326_v18, 0.0  ;;  %v714_v62 = vsel %vm405_vm11, %v688_v48, 0.0  ;;  %v5423_v27 = vld [vmem:[#allocation2 + $0x48] sm:$0xff]  ;;  %v5433_v38 = vld [vmem:[#allocation2 + $0x38] sm:$0xff]  ;;  %vm396_vm9 = vcmp.gt.f32.partialorder %v5274_v1, 0.5 }
  0xfe   : > { %v957_v56 = vpack.c.bf16 %v711_v37, %v710_v30  ;;  %v960_v41 = vpack.c.bf16 %v713_v19, %v712_v39  ;;  %v963_v34 = vpack.c.bf16 %v5399_v54, %v714_v62  ;;  %v4567_v36 = vpack.i.bf16 %v5425_v28, %v5423_v27  ;;  %v4816_v16 = vld [vmem:[%s5115_s19 + $0x8] sm:$0xff]   ;;  %v4817_v19 = vld [vmem:[%s5115_s19 + $0x10] sm:$0xff]  }
  0xff   : > { %4528 = vrot.lane.b32.xlu1 %v4527_v26, %s5004_s22  ;;  %v5438_v26 = vld [vmem:[#allocation2 + $0x40] sm:$0xff]  ;;  %v695_v37 = vsel %vm405_vm11, %v5320_v31, 0.0  ;;  %v696_v39 = vsel %vm6673_vm12, %v688_v48, 0.0  ;;  %v697_v42 = vld [vmem:[#allocation2 + $0x4f] sm:$0xff]  ;;  %vm395_vm8 = vcmp.gt.f32.partialorder %v5309_v35, 0.5  ;;  %v694_v61 = vsel %vm404_vm7, %v5326_v18, 0.0 }
 0x100   : > { %4228 = vmatmul.mubr.msk.bf16.vlgmr.msra.gmra.mrb[8].mxu0 %vm407_vm0, %v957_v56  ;;  %v4572_v30 = vpack.i.bf16 %v5438_v26, %v5433_v38  ;;  %v675_v56 = vsel %vm404_vm7, %v5324_v17, 0.0  ;;  %v4577_v44 = vpack.i.bf16 %v696_v39, %v695_v37  ;;  %v676_v62 = vsel %vm405_vm11, %v5326_v18, 0.0 }
 0x101   : > { %4231 = vmatprep.mubr.msk.bf16.mxu0 %vm407_vm0, %v960_v41  ;;  %4236 = vmatpush3.bf16.msra.mxu0 %v5129_v11  ;;  %v5386_v11 = vld [vmem:[#allocation2 + $0x2f] sm:$0xff]  ;;  %v678_v41 = vld [vmem:[#allocation2 + $0x47] sm:$0xff] }
 0x102   : > { %4548 = vrot.lane.b32.xlu0 %v4547_v45, %s5003_s21  ;;  %4237 = vmatprep.subr.bf16.mxu0 %v4813_v43  ;;  %v701_v5 = vsel %vm394_vm14, %v5386_v11, 0.0  ;;  %v704_v49 = vsel %vm397_vm15, %v678_v41, 0.0  ;;  %v683_v57 = vsel %vm395_vm8, %v5386_v11, 0.0 }
 0x103   : > { %4533 = vrot.lane.b32.xlu1 %v4532_v50, %s5003_s21  ;;  %v4562_v13 = vpack.i.bf16 %v701_v5, %v700_v12 }
 0x105   : > { %4238 = vmatpush3.bf16.msra.mxu0 %v4813_v43  ;;  %v5456_v43 = vld [vmem:[#allocation2 + $0x37] sm:$0xff] }
 0x106   : > { %4558 = vrot.lane.b32.xlu0 %v4557_v2, %s5002_s13  ;;  %4461 = vmatprep.subr.msk.bf16.mxu0 %vm521_vm1, %v4814_v60  ;;  %vm398_vm1 = vcmp.gt.f32.partialorder %v5337_v24, 0.5  ;;  %v684_v52 = vsel %vm396_vm9, %v5456_v43, 0.0  ;;  %v693_v60 = vsel %vm403_vm10, %v5324_v17, 0.0  ;;  %v677_v2 = vsel %vm6673_vm12, %v5320_v31, 0.0 }
 0x107   : > { %4538 = vrot.lane.b32.xlu1 %v4537_v4, %s5004_s22  ;;  %v705_v50 = vsel %vm398_vm1, %v697_v42, 0.0  ;;  %v4607_v59 = vpack.i.bf16 %v684_v52, %v683_v57  ;;  %v5490_v4 = vld [vmem:[#allocation2 + $0x3f] sm:$0xff]  ;;  %v4592_v5 = vpack.i.bf16 %v694_v61, %v693_v60  ;;  %v4612_v17 = vpack.i.bf16 %v677_v2, %v676_v62 }
 0x108   : > { %4232 = vmatmul.mubr.msk.bf16.gmra.mrb[12].mxu0 %vm407_vm0, %v963_v34  ;;  %v703_v34 = vsel %vm396_vm9, %v5490_v4, 0.0  ;;  %v685_v31 = vsel %vm397_vm15, %v5490_v4, 0.0  ;;  %v686_v18 = vsel %vm398_vm1, %v678_v41, 0.0  ;;  %vm919_vm12 = vcmask 785408  }
 0x109   : > { %4240 = vmatpush3.bf16.msra.mxu0 %v1329_v9  ;;  %4241 = vmatprep.mubr.msk.bf16.mxu0 %vm508_vm2, %v4815_v6  ;;  %v702_v6 = vsel %vm395_vm8, %v5456_v43, 0.0  ;;  %v4617_v25 = vpack.i.bf16 %v686_v18, %v685_v31  ;;  %v631_v62 = vsel %vm392_vm6, %v5351_v40, 0.0 }
 0x10a   : > { %4563 = vrot.lane.b32.xlu0 %v4562_v13, %s5004_s22  ;;  %v4597_v7 = vpack.i.bf16 %v703_v34, %v702_v6 }
 0x10b   : > { %4543 = vrot.lane.b32.xlu1 %v4542_v14, %s5003_s21  ;;  %v606_v14 = vld [vmem:[#allocation2 + $0x7] sm:$0xff] }
 0x10e   : > { %4568 = vrot.lane.b32.xlu0 %v4567_v36, %s5003_s21 }
 0x10f   : > { %4553 = vrot.lane.b32.xlu1 %v4547_v45, %s5002_s13  ;;  %v674_v45 = vsel %vm403_vm10, %v5314_v15, 0.0  ;;  %v4587_v15 = vpack.i.bf16 %v705_v50, %v704_v49 }
 0x110   : > { %4242 = vmatmul.mubr.msk.bf16.vlgmr.msra.gmra.mrb[16].mxu0 %vm508_vm2, %v4816_v16  ;;  %v4602_v48 = vpack.i.bf16 %v675_v56, %v674_v45  ;;  %v5510_v16 = vsel %vm391_vm5, %v606_v14, 0.0 }
 0x111   : > { %4245 = vmatprep.mubr.msk.bf16.mxu0 %vm508_vm2, %v4817_v19 }
 0x112   : > { %4573 = vrot.lane.b32.xlu0 %v4572_v30, %s5003_s21 }
 0x113   : > { %4583 = vrot.lane.b32.xlu1 %v4572_v30, %s5002_s13 }
 0x116   : > { %4578 = vrot.lane.b32.xlu0 %v4577_v44, %s5002_s13 }
 0x117   : > { %4603 = vrot.lane.b32.xlu1 %v4602_v48, %s5004_s22 }
 0x118   : > { %4246 = vmatmul.mubr.msk.bf16.gmra.mrb[20].mxu0 %vm508_vm2, %v4818_v47  ;;  %vm910_vm2 = vcmask 523264  }
 0x11a   : > { %4588 = vrot.lane.b32.xlu0 %v4587_v15, %s5004_s22 }
 0x11b   : > { %4608 = vrot.lane.b32.xlu1 %v4607_v59, %s5003_s21 }
 0x11e   : > { %4593 = vrot.lane.b32.xlu0 %v4592_v5, %s5002_s13 }
 0x11f   : > { %4613 = vrot.lane.b32.xlu1 %v4612_v17, %s5004_s22 }
 0x122   : > { %4598 = vrot.lane.b32.xlu0 %v4597_v7, %s5004_s22 }
 0x123   : > { %4618 = vrot.lane.b32.xlu1 %v4617_v25, %s5003_s21 }
 0x167   : > { %v4504_v9 = vpop.permute.xlu0 %4503 }
 0x168   : > { %v4506_v39 = vunpack.i.h.bf16 %v4504_v9  ;;  %v4505_v56 = vunpack.i.l.bf16 %v4504_v9 }
 0x169   : > { %v4514_v12 = vpop.permute.xlu1 %4513 }
 0x16a   : > { %v902_v5 = vsel %vm407_vm0, %v5510_v16, %v4505_v56  ;;  %v903_v17 = vsel %vm407_vm0, %v631_v62, %v4506_v39  ;;  %v4516_v40 = vunpack.i.h.bf16 %v4514_v12  ;;  %v4515_v7 = vunpack.i.l.bf16 %v4514_v12 }
 0x16b   : > { %v4509_v13 = vpop.permute.xlu0 %4508  ;;  %v632_v39 = vsel %vm393_vm13, %v5260_v58, 0.0  ;;  %v633_v12 = vsel %vm394_vm14, %v5270_v63, 0.0 }
 0x16c   : > { %v4511_v45 = vunpack.i.h.bf16 %v4509_v13  ;;  %v4510_v47 = vunpack.i.l.bf16 %v4509_v13 }
 0x16d   : > { %v4524_v36 = vpop.permute.xlu1 %4523 }
 0x16e   : > { %v4526_v41 = vunpack.i.h.bf16 %v4524_v36  ;;  %v4525_v42 = vunpack.i.l.bf16 %v4524_v36 }
 0x16f   : > { %v4519_v19 = vpop.permute.xlu0 %4518 }
 0x170   : > { %v4521_v30 = vunpack.i.h.bf16 %v4519_v19  ;;  %v4520_v37 = vunpack.i.l.bf16 %v4519_v19  ;;  %v4836_v19 = vld [vmem:[%s6665_s3 + $0x118] sm:$0xff]  }
 0x171   : > { %v4529_v44 = vpop.permute.xlu1 %4528 }
 0x172   : > { %v928_v48 = vsel %vm407_vm0, %v5241_v46, %v4520_v37  ;;  %v929_v49 = vsel %vm407_vm0, %v5252_v53, %v4521_v30  ;;  %v4531_v50 = vunpack.i.h.bf16 %v4529_v44  ;;  %v4530_v52 = vunpack.i.l.bf16 %v4529_v44  ;;  %v4835_v53 = vld [vmem:[%s6665_s3 + $0x110] sm:$0xff]  }
 0x173   : > { %v936_v15 = vsel %vm910_vm2, %v928_v48, %v4525_v42  ;;  %v937_v57 = vsel %vm910_vm2, %v929_v49, %v4526_v41  ;;  %4249 = vmatprep.subr.bf16.mxu0 %v4835_v53  ;;  %v904_v42 = vsel %vm407_vm0, %v632_v39, %v4515_v7  ;;  %v905_v44 = vsel %vm407_vm0, %v633_v12, %v4516_v40 }
 0x174   : > { %v4549_v59 = vpop.permute.xlu0 %4548  ;;  %v944_v60 = vsel %vm919_vm12, %v936_v15, %v4510_v47  ;;  %v945_v61 = vsel %vm919_vm12, %v937_v57, %v4511_v45  ;;  %v911_v31 = vsel %vm910_vm2, %v902_v5, %v4530_v52  ;;  %v912_v18 = vsel %vm910_vm2, %v903_v17, %v4531_v50  ;;  %4250 = vmatpush3.bf16.msra.mxu0 %v4835_v53 }
 0x175   : > { %v4534_v2 = vpop.permute.xlu1 %4533  ;;  %v953_v46 = vpack.c.bf16 %v945_v61, %v944_v60  ;;  %4251 = vmatprep.subr.bf16.mxu0 %v4836_v19  ;;  %v4551_v47 = vunpack.i.h.bf16 %v4549_v59  ;;  %v4550_v48 = vunpack.i.l.bf16 %v4549_v59 }
 0x176   : > { %v4536_v6 = vunpack.i.h.bf16 %v4534_v2  ;;  %v4535_v34 = vunpack.i.l.bf16 %v4534_v2 }
 0x177   : > { %1120 = vmatprep.mubr.bf16.mxu1 %v953_v46 }
 0x178   : > { %v4559_v25 = vpop.permute.xlu0 %4558  ;;  %v920_v9 = vsel %vm919_vm12, %v911_v31, %v4535_v34  ;;  %v921_v13 = vsel %vm919_vm12, %v912_v18, %v4536_v6  ;;  %4252 = vmatpush3.bf16.msra.mxu0 %v4836_v19 }
 0x179   : > { %v4539_v14 = vpop.permute.xlu1 %4538  ;;  %v952_v36 = vpack.c.bf16 %v921_v13, %v920_v9  ;;  %v4561_v30 = vunpack.i.h.bf16 %v4559_v25  ;;  %v4560_v37 = vunpack.i.l.bf16 %v4559_v25 }
 0x17a   : > { %v4541_v56 = vunpack.i.h.bf16 %v4539_v14  ;;  %v4540_v41 = vunpack.i.l.bf16 %v4539_v14  ;;  %v634_v14 = vsel %vm395_vm8, %v5402_v0, 0.0 }
 0x17b   : > { %1121 = vmatmul.mubr.bf16.vlgmr.msra.gmra.mrb[0].mxu1 %v952_v36  ;;  %v931_v58 = vsel %vm407_vm0, %v5363_v23, %v4561_v30  ;;  %v930_v63 = vsel %vm407_vm0, %v5246_v51, %v4560_v37  ;;  %v635_v36 = vsel %vm396_vm9, %v5386_v11, 0.0 }
 0x17c   : > { %v4564_v45 = vpop.permute.xlu0 %4563  ;;  %v913_v62 = vsel %vm910_vm2, %v904_v42, %v4540_v41  ;;  %v914_v2 = vsel %vm910_vm2, %v905_v44, %v4541_v56 }
 0x17d   : > { %v4566_v49 = vunpack.i.h.bf16 %v4564_v45  ;;  %v4565_v50 = vunpack.i.l.bf16 %v4564_v45  ;;  %v4544_v52 = vpop.permute.xlu1 %4543 }
 0x17e   : > { %v4546_v15 = vunpack.i.h.bf16 %v4544_v52  ;;  %v4545_v57 = vunpack.i.l.bf16 %v4544_v52 }
 0x17f   : > { %v938_v60 = vsel %vm910_vm2, %v930_v63, %v4565_v50  ;;  %v939_v61 = vsel %vm910_vm2, %v931_v58, %v4566_v49 }
 0x180   : > { %v4569_v59 = vpop.permute.xlu0 %4568  ;;  %v946_v46 = vsel %vm919_vm12, %v938_v60, %v4550_v48  ;;  %v947_v53 = vsel %vm919_vm12, %v939_v61, %v4551_v47  ;;  %v922_v23 = vsel %vm919_vm12, %v913_v62, %v4545_v57  ;;  %v923_v5 = vsel %vm919_vm12, %v914_v2, %v4546_v15 }
 0x181   : > { %v4554_v51 = vpop.permute.xlu1 %4553  ;;  %v956_v17 = vpack.c.bf16 %v947_v53, %v946_v46  ;;  %v955_v6 = vpack.c.bf16 %v923_v5, %v922_v23  ;;  %v4571_v39 = vunpack.i.h.bf16 %v4569_v59  ;;  %v4570_v12 = vunpack.i.l.bf16 %v4569_v59 }
 0x182   : > { %v4556_v9 = vunpack.i.h.bf16 %v4554_v51  ;;  %v4555_v13 = vunpack.i.l.bf16 %v4554_v51 }
 0x183   : > { %1128 = vmatprep.mubr.bf16.mxu1 %v956_v17 }
 0x184   : > { %v4574_v34 = vpop.permute.xlu0 %4573  ;;  %1129 = vmatmul.mubr.bf16.gmra.mrb[4].mxu1 %v955_v6  ;;  %v907_v49 = vsel %vm407_vm0, %v635_v36, %v4556_v9  ;;  %v906_v0 = vsel %vm407_vm0, %v634_v14, %v4555_v13 }
 0x185   : > { %v5556_v31 = vpop.permute.xlu1 %4583  ;;  %v4576_v58 = vunpack.i.h.bf16 %v4574_v34  ;;  %v4575_v11 = vunpack.i.l.bf16 %v4574_v34 }
 0x188   : > { %v4579_v18 = vpop.permute.xlu0 %4578 }
 0x189   : > { %v4604_v40 = vpop.permute.xlu1 %4603  ;;  %v4581_v19 = vunpack.i.h.bf16 %v4579_v18  ;;  %v4580_v30 = vunpack.i.l.bf16 %v4579_v18  ;;  %v4586_v18 = vunpack.i.h.bf16 %v5556_v31 }
 0x18a   : > { %v4606_v42 = vunpack.i.h.bf16 %v4604_v40  ;;  %v4605_v44 = vunpack.i.l.bf16 %v4604_v40  ;;  %v4585_v40 = vunpack.i.l.bf16 %v5556_v31 }
 0x18b   : > { %v935_v63 = vsel %vm407_vm0, %v5423_v27, %v4581_v19  ;;  %v934_v15 = vsel %vm407_vm0, %v5438_v26, %v4580_v30  ;;  %v636_v30 = vsel %vm397_vm15, %v5456_v43, 0.0 }
 0x18c   : > { %v4589_v7 = vpop.permute.xlu0 %4588  ;;  %v915_v53 = vsel %vm910_vm2, %v906_v0, %v4605_v44  ;;  %v916_v27 = vsel %vm910_vm2, %v907_v49, %v4606_v42  ;;  %v908_v31 = vsel %vm407_vm0, %v636_v30, %v4585_v40  ;;  %v1279_v0 = vsub.s32 2, %v5153_v20 }
 0x18d   : > { %v4609_v25 = vpop.permute.xlu1 %4608  ;;  %v4591_v56 = vunpack.i.h.bf16 %v4589_v7  ;;  %v4590_v41 = vunpack.i.l.bf16 %v4589_v7 }
 0x18e   : > { %v4611_v50 = vunpack.i.h.bf16 %v4609_v25  ;;  %v4610_v52 = vunpack.i.l.bf16 %v4609_v25 }
 0x18f   : > { %v942_v62 = vsel %vm910_vm2, %v934_v15, %v4590_v41  ;;  %v943_v2 = vsel %vm910_vm2, %v935_v63, %v4591_v56  ;;  %v1280_v63 = vrot.slane %v5170_v29, %v1279_v0  ;;  %v4842_v29 = vld [vmem:[%s6665_s3 + $0xe0] sm:$0xff]   ;;  %v4850_v0 = vld [vmem:[%s6665_s3 + $0xb8] sm:$0xff]  }
 0x190   : > { %v4594_v37 = vpop.permute.xlu0 %4593  ;;  %v924_v5 = vsel %vm919_vm12, %v915_v53, %v4610_v52  ;;  %v925_v51 = vsel %vm919_vm12, %v916_v27, %v4611_v50  ;;  %v950_v34 = vsel %vm919_vm12, %v942_v62, %v4570_v12 }
 0x191   : > { %v4596_v45 = vunpack.i.h.bf16 %v4594_v37  ;;  %v4595_v47 = vunpack.i.l.bf16 %v4594_v37  ;;  %v4614_v48 = vpop.permute.xlu1 %4613  ;;  %v958_v13 = vpack.c.bf16 %v925_v51, %v924_v5  ;;  %v637_v37 = vsel %vm398_vm1, %v5490_v4, 0.0 }
 0x192   : > { %v4616_v25 = vunpack.i.h.bf16 %v4614_v48  ;;  %v4615_v9 = vunpack.i.l.bf16 %v4614_v48 }
 0x193   : > { %v933_v59 = vsel %vm407_vm0, %v5433_v38, %v4596_v45  ;;  %v932_v46 = vsel %vm407_vm0, %v5349_v55, %v4595_v47  ;;  %v951_v55 = vsel %vm919_vm12, %v943_v2, %v4571_v39  ;;  %v909_v39 = vsel %vm407_vm0, %v637_v37, %v4586_v18  ;;  %v4847_v18 = vld [vmem:[%s6665_s3 + $0xf0] sm:$0xff]  }
 0x194   : > { %v4599_v57 = vpop.permute.xlu0 %4598  ;;  %v962_v19 = vpack.c.bf16 %v951_v55, %v950_v34  ;;  %v917_v12 = vsel %vm910_vm2, %v908_v31, %v4615_v9  ;;  %v918_v56 = vsel %vm910_vm2, %v909_v39, %v4616_v25  ;;  %v4846_v34 = vld [vmem:[%s6665_s3 + $0xa8] sm:$0xff]   ;;  %v4849_v39 = vld [vmem:[%s6665_s3 + $0xf8] sm:$0xff]  }
 0x195   : > { %v4601_v60 = vunpack.i.h.bf16 %v4599_v57  ;;  %v4600_v61 = vunpack.i.l.bf16 %v4599_v57  ;;  %v4619_v17 = vpop.permute.xlu1 %4618  ;;  %v4839_v57 = vld [vmem:[%s6665_s3 + $0xd8] sm:$0xff]  }
 0x196   : > { %v4621_v14 = vunpack.i.h.bf16 %v4619_v17  ;;  %v4620_v36 = vunpack.i.l.bf16 %v4619_v17  ;;  %v4845_v17 = vld [vmem:[%s6665_s3 + $0xe8] sm:$0xff]  }
 0x197   : > { %v940_v23 = vsel %vm910_vm2, %v932_v46, %v4600_v61  ;;  %v941_v26 = vsel %vm910_vm2, %v933_v59, %v4601_v60  ;;  %v4840_v60 = vld [vmem:[%s6665_s3 + $0x98] sm:$0xff]   ;;  %v5633_v61 = vld [vmem:[%s6666_s4] sm:$0xff]  }
 0x198   : > { %v948_v6 = vsel %vm919_vm12, %v940_v23, %v4575_v11  ;;  %v949_v38 = vsel %vm919_vm12, %v941_v26, %v4576_v58  ;;  %v926_v41 = vsel %vm919_vm12, %v917_v12, %v4620_v36  ;;  %v927_v42 = vsel %vm919_vm12, %v918_v56, %v4621_v14  ;;  %v4837_v58 = vld [vmem:[%s6665_s3 + $0xd0] sm:$0xff]   ;;  %4261 = vmatprep.subr.bf16.mxu0 %v5633_v61  ;;  %v4843_v26 = vld [vmem:[%s6665_s3 + $0xa0] sm:$0xff]  }
 0x199   : > { %v959_v7 = vpack.c.bf16 %v949_v38, %v948_v6  ;;  %v961_v44 = vpack.c.bf16 %v927_v42, %v926_v41  ;;  %v4838_v11 = vld [vmem:[%s6665_s3 + $0x90] sm:$0xff]   ;;  %4072 = vmatprep.subr.bf16.mxu1 %v4837_v58 }
 0x19a   : > { %4073 = vmatpush3.bf16.msra.mxu1 %v4838_v11 }
 0x19b   : > { %1136 = vmatprep.mubr.bf16.mxu1 %v959_v7  ;;  %4074 = vmatprep.subr.bf16.mxu1 %v4839_v57 }
 0x19c   : > { %1137 = vmatmul.mubr.bf16.gmra.mrb[8].mxu1 %v958_v13 }
 0x19d   : > { %1144 = vmatprep.mubr.bf16.mxu1 %v962_v19  ;;  %v4848_v19 = vld [vmem:[%s6665_s3 + $0xb0] sm:$0xff]  }
 0x19e   : > { %4075 = vmatpush3.bf16.msra.mxu1 %v4840_v60 }
 0x19f   : > { %4076 = vmatprep.subr.bf16.mxu1 %v4842_v29 }
 0x1a2   : > { %4077 = vmatpush3.bf16.msra.mxu1 %v4843_v26  ;;  %v4852_v26 = vld [vmem:[%s6665_s3 + $0xc0] sm:$0xff]  }
 0x1a3   : > { %4078 = vmatprep.subr.bf16.mxu1 %v4845_v17 }
 0x1a4   : > { %1145 = vmatmul.mubr.bf16.gmra.mrb[12].mxu1 %v961_v44 }
 0x1a6   : > { %4079 = vmatpush3.bf16.msra.mxu1 %v4846_v34 }
 0x1a7   : > { %4080 = vmatprep.subr.bf16.mxu1 %v4847_v18 }
 0x1aa   : > { %4081 = vmatpush3.bf16.msra.mxu1 %v4848_v19 }
 0x1ab   : > { %4082 = vmatprep.subr.bf16.mxu1 %v4849_v39 }
 0x1ae   : > { %4083 = vmatpush3.bf16.msra.mxu1 %v4850_v0  ;;  %v4844_v0 = vld [vmem:[%s6666_s4 + $0x8] sm:$0xff]  }
 0x1d3   : > { %v5600_v43 = vpop.f32.mrb[8].mxu0 }
 0x1d4   : > { %v5602_v45 = vpop.f32.mrb[9].mxu0 }
 0x1d5   : > { %v5604_v4 = vpop.f32.mrb[10].mxu0 }
 0x1d6   : > { %v5606_v47 = vpop.f32.mrb[11].mxu0 }
 0x1db   : > { %v5608_v48 = vpop.f32.mrb[12].mxu0 }
 0x1dc   : > { %v5610_v49 = vpop.f32.mrb[13].mxu0 }
 0x1dd   : > { %v5613_v50 = vpop.f32.mrb[14].mxu0 }
 0x1de   : > { %v5615_v52 = vpop.f32.mrb[15].mxu0 }
 0x1e3   : > { %v4243_v15 = vpop.f32.mrb[16].mxu0 }
 0x1e4   : > { %v1374_v62 = vadd.f32 %v4243_v15, %v1280_v63  ;;  %v1365_v2 = vpop.f32.mrb[17].mxu0 }
 0x1e5   : > { %v1366_v59 = vadd.f32 %v1365_v2, %v1280_v63  ;;  %v4244_v46 = vpop.f32.mrb[18].mxu0 }
 0x1e6   : > { %v1398_v53 = vmax.f32 %v1374_v62, 0.0  ;;  %v1377_v27 = vadd.f32 %v4244_v46, %v1280_v63  ;;  %v1368_v23 = vpop.f32.mrb[19].mxu0 }
 0x1e7   : > { %v1396_v5 = vmax.f32 %v1366_v59, 0.0  ;;  %v1369_v51 = vadd.f32 %v1368_v23, %v1280_v63  ;;  %v4851_v23 = vld [vmem:[%s6665_s3 + $0x100] sm:$0xff]  }
 0x1e8   : > { %1406 = vst.msk [vmem:[#allocation2 + $0x20] sm:$0xff] %vm407_vm0, %v1398_v53  ;;  %v1399_v6 = vmax.f32 %v1377_v27, 0.0  ;;  %4084 = vmatprep.subr.bf16.mxu1 %v4851_v23 }
 0x1e9   : > { %1404 = vst.msk [vmem:[#allocation2 + $0x10] sm:$0xff] %vm407_vm0, %v1396_v5  ;;  %v1397_v38 = vmax.f32 %v1369_v51, 0.0  ;;  %4085 = vmatpush3.bf16.msra.mxu1 %v4852_v26 }
 0x1ea   : > { %1407 = vst.msk [vmem:[#allocation2 + $0x28] sm:$0xff] %vm407_vm0, %v1399_v6 }
 0x1eb   : > { %1405 = vst.msk [vmem:[#allocation2 + $0x18] sm:$0xff] %vm407_vm0, %v1397_v38  ;;  %v4247_v55 = vpop.f32.mrb[20].mxu0 }
 0x1ec   : > { %v1390_v40 = vadd.f32 %v4247_v55, %v1280_v63  ;;  %v1381_v7 = vpop.f32.mrb[21].mxu0 }
 0x1ed   : > { %v1382_v25 = vadd.f32 %v1381_v7, %v1280_v63  ;;  %v4248_v9 = vpop.f32.mrb[22].mxu0 }
 0x1ee   : > { %v1402_v13 = vmax.f32 %v1390_v40, 0.0  ;;  %v1393_v14 = vadd.f32 %v4248_v9, %v1280_v63  ;;  %v1384_v36 = vpop.f32.mrb[23].mxu0 }
 0x1ef   : > { %v1400_v30 = vmax.f32 %v1382_v25, 0.0  ;;  %v1385_v37 = vadd.f32 %v1384_v36, %v1280_v63  ;;  %v5667_v42 = vld [vmem:[#allocation2 + $0x20] sm:$0xff] }
 0x1f0   : > { %1410 = vst.msk [vmem:[#allocation2 + $0x40] sm:$0xff] %vm407_vm0, %v1402_v13  ;;  %v1403_v31 = vmax.f32 %v1393_v14, 0.0  ;;  %v5662_v12 = vld [vmem:[#allocation2 + $0x10] sm:$0xff] }
 0x1f1   : > { %1408 = vst.msk [vmem:[#allocation2 + $0x30] sm:$0xff] %vm407_vm0, %v1400_v30  ;;  %v1401_v56 = vmax.f32 %v1385_v37, 0.0  ;;  %v4622_v41 = vpack.i.bf16 %v5662_v12, %v5233_v32  ;;  %v5669_v44 = vld [vmem:[#allocation2 + $0x21] sm:$0xff]  ;;  %v1436_v29 = vld [vmem:[#allocation2 + $0x9] sm:$0xff] }
 0x1f2   : > { %1411 = vst.msk [vmem:[#allocation2 + $0x48] sm:$0xff] %vm407_vm0, %v1403_v31  ;;  %v5675_v58 = vld [vmem:[#allocation2 + $0x18] sm:$0xff]  ;;  %v1483_v63 = vsel %vm400_vm3, %v5669_v44, 0.0  ;;  %v1444_v5 = vsel %vm399_vm4, %v1436_v29, 0.0  ;;  %v5716_v34 = vld [vmem:[#allocation2 + $0xf] sm:$0xff] }
 0x1f3   : > { %v1438_v11 = vld [vmem:[#allocation2 + $0x19] sm:$0xff]  ;;  %v1437_v15 = vld [vmem:[#allocation2 + $0x11] sm:$0xff]  ;;  %1409 = vst.msk [vmem:[#allocation2 + $0x38] sm:$0xff] %vm407_vm0, %v1401_v56  ;;  %4623 = vrot.lane.b32.xlu1 %v4622_v41, %s5002_s13  ;;  %v4627_v32 = vpack.i.bf16 %v5667_v42, %v5675_v58  ;;  %v1453_v30 = vsel %vm391_vm5, %v5716_v34, 0.0  ;;  %v4853_v31 = vld [vmem:[%s6665_s3 + $0x108] sm:$0xff]  }
 0x1f4   : > { %v1482_v57 = vsel %vm399_vm4, %v1438_v11, 0.0  ;;  %v1463_v62 = vsel %vm399_vm4, %v1437_v15, 0.0  ;;  %v1464_v2 = vsel %vm400_vm3, %v1438_v11, 0.0  ;;  %v5691_v59 = vld [vmem:[#allocation2 + $0x17] sm:$0xff]  ;;  %v5693_v46 = vld [vmem:[#allocation2 + $0x1f] sm:$0xff]  ;;  %v1445_v53 = vsel %vm400_vm3, %v1437_v15, 0.0  ;;  %4086 = vmatprep.subr.bf16.mxu1 %v4853_v31 }
 0x1f5   : > { %v1726_v60 = vpack.c.bf16 %v1483_v63, %v1482_v57  ;;  %4628 = vrot.lane.b32.xlu0 %v4627_v32, %s5003_s21  ;;  %v4637_v27 = vpack.i.bf16 %v1464_v2, %v1463_v62  ;;  %v1472_v51 = vsel %vm391_vm5, %v5691_v59, 0.0  ;;  %v1473_v17 = vsel %vm392_vm6, %v5693_v46, 0.0  ;;  %v4854_v56 = vld [vmem:[%s6665_s3 + $0xc8] sm:$0xff]  }
 0x1f6   : > { %v4647_v38 = vpack.i.bf16 %v1445_v53, %v1444_v5  ;;  %v1454_v40 = vsel %vm392_vm6, %v5691_v59, 0.0  ;;  %v4642_v9 = vpack.i.bf16 %v1473_v17, %v1472_v51  ;;  %vm6683_vm3 = vcmp.lt.f32.partialorder %v5294_v33, 6.5  ;;  %v5753_v21 = vld [vmem:[#allocation2 + $0x28] sm:$0xff]  ;;  %4087 = vmatpush3.bf16.msra.mxu1 %v4854_v56 }
 0x1f7   : > { %4253 = vmatprep.mubr.msk.bf16.mxu0 %vm407_vm0, %v1726_v60  ;;  %4633 = vrot.lane.b32.xlu1 %v4627_v32, %s5002_s13  ;;  %vm6684_vm4 = vcmp.lt.f32.partialorder %v5298_v8, 6.5  ;;  %v4652_v41 = vpack.i.bf16 %v1454_v40, %v1453_v30  ;;  %vm6685_vm5 = vmmov %vm6683_vm3  ;;  %v5764_v60 = vld [vmem:[#allocation2 + $0x27] sm:$0xff] }
 0x1f8   : > { %v5713_v6 = vld [vmem:[#allocation2 + $0x29] sm:$0xff]  ;;  %v1446_v63 = vsel %vm6685_vm5, %v1438_v11, 0.0  ;;  %v1465_v53 = vsel %vm6685_vm5, %v5669_v44, 0.0  ;;  %v1474_v51 = vsel %vm393_vm13, %v5764_v60, 0.0 }
 0x1f9   : > { %4638 = vrot.lane.b32.xlu0 %v4637_v27, %s5002_s13  ;;  %v5718_v55 = vld [vmem:[#allocation2 + $0x41] sm:$0xff]  ;;  %v1484_v13 = vsel %vm6683_vm3, %v5713_v6, 0.0  ;;  %v5740_v39 = vld [vmem:[#allocation2 + $0x30] sm:$0xff]  ;;  %vm6686_vm3 = vmmov %vm6684_vm4  ;;  %v1455_v27 = vsel %vm393_vm13, %v5693_v46, 0.0  ;;  %v1448_v30 = vsel %vm403_vm10, %v5713_v6, 0.0 }
 0x1fa   : > { %v1441_v18 = vld [vmem:[#allocation2 + $0x31] sm:$0xff]  ;;  %v5723_v7 = vld [vmem:[#allocation2 + $0x39] sm:$0xff]  ;;  %v1487_v25 = vsel %vm404_vm7, %v5718_v55, 0.0  ;;  %v1447_v15 = vsel %vm6686_vm3, %v5669_v44, 0.0  ;;  %v1462_v32 = vld [vmem:[#allocation2 + $0x49] sm:$0xff]  ;;  %v4667_v57 = vpack.i.bf16 %v5740_v39, %v5753_v21 }
 0x1fb   : > { %4648 = vrot.lane.b32.xlu1 %v4647_v38, %s5004_s22  ;;  %v1485_v14 = vsel %vm6684_vm4, %v1441_v18, 0.0  ;;  %v1486_v36 = vsel %vm403_vm10, %v5723_v7, 0.0  ;;  %vm6687_vm4 = vmmov %vm6686_vm3  ;;  %v4657_v11 = vpack.i.bf16 %v1447_v15, %v1446_v63  ;;  %v1488_v2 = vsel %vm405_vm11, %v1462_v32, 0.0  ;;  %v5773_v29 = vld [vmem:[#allocation2 + $0x2f] sm:$0xff]  ;;  %v5795_v38 = vld [vmem:[#allocation2 + $0x38] sm:$0xff] }
 0x1fc   : > { %v1729_v19 = vpack.c.bf16 %v1485_v14, %v1484_v13  ;;  %v1732_v37 = vpack.c.bf16 %v1487_v25, %v1486_v36  ;;  %v1466_v62 = vsel %vm6687_vm4, %v5713_v6, 0.0  ;;  %v1735_v26 = vpack.c.bf16 %v5399_v54, %v1488_v2  ;;  %v5797_v54 = vld [vmem:[#allocation2 + $0x40] sm:$0xff] }
 0x1fd   : > { %4643 = vrot.lane.b32.xlu0 %v4642_v9, %s5004_s22  ;;  %v4677_v23 = vpack.i.bf16 %v1466_v62, %v1465_v53  ;;  %v1475_v5 = vsel %vm394_vm14, %v5773_v29, 0.0  ;;  %v4687_v40 = vpack.i.bf16 %v5797_v54, %v5795_v38  ;;  %v1467_v25 = vsel %vm403_vm10, %v1441_v18, 0.0  ;;  %v5809_v13 = vld [vmem:[#allocation2 + $0x3f] sm:$0xff]  ;;  %v1471_v62 = vld [vmem:[#allocation2 + $0x4f] sm:$0xff] }
 0x1fe   : > { %4254 = vmatmul.mubr.msk.bf16.vlgmr.msra.gmra.mrb[24].mxu0 %vm407_vm0, %v1729_v19  ;;  %v4682_v17 = vpack.i.bf16 %v1475_v5, %v1474_v51  ;;  %v1468_v9 = vsel %vm404_vm7, %v5723_v7, 0.0  ;;  %v1449_v14 = vsel %vm404_vm7, %v1441_v18, 0.0  ;;  %v5814_v19 = vld [vmem:[#allocation2 + $0x37] sm:$0xff]  ;;  %v1477_v31 = vsel %vm396_vm9, %v5809_v13, 0.0 }
 0x1ff   : > { %4653 = vrot.lane.b32.xlu1 %v4652_v41, %s5003_s21  ;;  %4257 = vmatprep.mubr.msk.bf16.mxu0 %vm407_vm0, %v1732_v37  ;;  %v4692_v36 = vpack.i.bf16 %v1468_v9, %v1467_v25  ;;  %v1476_v37 = vsel %vm395_vm8, %v5814_v19, 0.0  ;;  %v4722_v18 = vpack.i.bf16 %v1449_v14, %v1448_v30  ;;  %v1458_v56 = vsel %vm396_vm9, %v5814_v19, 0.0 }
 0x200   : > { %4262 = vmatpush3.bf16.msra.mxu0 %v5633_v61  ;;  %v1456_v61 = vsel %vm394_vm14, %v5764_v60, 0.0  ;;  %v4697_v41 = vpack.i.bf16 %v1477_v31, %v1476_v37  ;;  %v1457_v6 = vsel %vm395_vm8, %v5773_v29, 0.0  ;;  %vm6688_vm7 = vcmp.lt.f32.partialorder %v5337_v24, 6.5 }
 0x201   : > { %4668 = vrot.lane.b32.xlu0 %v4667_v57, %s5003_s21  ;;  %4263 = vmatprep.subr.bf16.mxu0 %v4844_v0  ;;  %v4662_v44 = vpack.i.bf16 %v1456_v61, %v1455_v27  ;;  %v1470_v63 = vsel %vm6688_vm7, %v1462_v32, 0.0  ;;  %v4727_v15 = vpack.i.bf16 %v1458_v56, %v1457_v6  ;;  %vm6689_vm10 = vmmov %vm6688_vm7  ;;  %v1479_v32 = vsel %vm398_vm1, %v1471_v62, 0.0 }
 0x202   : > { %v1451_v2 = vsel %vm6689_vm10, %v5718_v55, 0.0  ;;  %v966_v51 = vsub.s32 1, %v5153_v20 }
 0x203   : > { %4658 = vrot.lane.b32.xlu1 %v4657_v11, %s5004_s22  ;;  %v1450_v11 = vsel %vm405_vm11, %v5723_v7, 0.0  ;;  %v1459_v7 = vsel %vm397_vm15, %v5809_v13, 0.0 }
 0x204   : > { %4264 = vmatpush3.bf16.msra.mxu0 %v4844_v0  ;;  %v1469_v0 = vsel %vm405_vm11, %v5718_v55, 0.0  ;;  %v4732_v61 = vpack.i.bf16 %v1451_v2, %v1450_v11  ;;  %vm5015_vm11 = vmmov 0  }
 0x205   : > { %4678 = vrot.lane.b32.xlu0 %v4677_v23, %s5002_s13  ;;  %v4702_v53 = vpack.i.bf16 %v1470_v63, %v1469_v0 }
 0x206   : > { %4258 = vmatmul.mubr.msk.bf16.gmra.mrb[28].mxu0 %vm407_vm0, %v1735_v26  ;;  %v5857_v26 = vld [vmem:[#allocation2 + $0x48] sm:$0xff] }
 0x207   : > { %4663 = vrot.lane.b32.xlu1 %v4662_v44, %s5003_s21  ;;  %v4717_v44 = vpack.i.bf16 %v5425_v28, %v5857_v26 }
 0x209   : > { %4683 = vrot.lane.b32.xlu0 %v4682_v17, %s5004_s22 }
 0x20b   : > { %4673 = vrot.lane.b32.xlu1 %v4667_v57, %s5002_s13  ;;  %v1452_v57 = vld [vmem:[#allocation2 + $0x47] sm:$0xff] }
 0x20c   : > { %v1478_v27 = vsel %vm397_vm15, %v1452_v57, 0.0  ;;  %v1460_v23 = vsel %vm398_vm1, %v1452_v57, 0.0 }
 0x20d   : > { %4688 = vrot.lane.b32.xlu0 %v4687_v40, %s5003_s21  ;;  %v4712_v55 = vpack.i.bf16 %v1479_v32, %v1478_v27  ;;  %v4737_v5 = vpack.i.bf16 %v1460_v23, %v1459_v7 }
 0x20f   : > { %4708 = vrot.lane.b32.xlu1 %v4687_v40, %s5002_s13  ;;  %v5868_v40 = vld [vmem:[%s6668_s6] sm:$0xff] }
 0x210   : > { %v5871_v25 = vrot.slane %v5868_v40, %v966_v51 }
 0x211   : > { %4693 = vrot.lane.b32.xlu0 %v4692_v36, %s5002_s13 }
 0x213   : > { %4723 = vrot.lane.b32.xlu1 %v4722_v18, %s5004_s22 }
 0x215   : > { %4698 = vrot.lane.b32.xlu0 %v4697_v41, %s5004_s22 }
 0x217   : > { %4728 = vrot.lane.b32.xlu1 %v4727_v15, %s5003_s21 }
 0x219   : > { %4703 = vrot.lane.b32.xlu0 %v4702_v53, %s5002_s13 }
 0x21b   : > { %4733 = vrot.lane.b32.xlu1 %v4732_v61, %s5004_s22 }
 0x21d   : > { %4713 = vrot.lane.b32.xlu0 %v4712_v55, %s5004_s22 }
 0x21f   : > { %4738 = vrot.lane.b32.xlu1 %v4737_v5, %s5003_s21 }
 0x221   : > { %4718 = vrot.lane.b32.xlu0 %v4717_v44, %s5003_s21 }
 0x24e   : > { %v4035_v17 = vpop.f32.mrb[0].mxu1 }
 0x24f   : > { %v4036_v9 = vpop.f32.mrb[1].mxu1 }
 0x250   : > { %v4037_v14 = vadd.f32 %v4036_v9, %v4035_v17  ;;  %v4038_v36 = vpop.f32.mrb[2].mxu1 }
 0x251   : > { %v4039_v30 = vpop.f32.mrb[3].mxu1 }
 0x252   : > { %v1123_v37 = vadd.f32 %v4037_v14, %v5871_v25  ;;  %v4040_v28 = vadd.f32 %v4039_v30, %v4038_v36  ;;  %v1421_v14 = vsel %vm392_vm6, %v5716_v34, 0.0  ;;  %vm2236_vm6 = vcmask 64512  }
 0x254   : > { %v5875_v31 = vadd.f32 %v5602_v45, %v1123_v37  ;;  %v1126_v18 = vadd.f32 %v4040_v28, %v5871_v25 }
 0x256   : > { %v5879_v56 = vadd.f32 %v5606_v47, %v1126_v18  ;;  %v6681_v6 = vmax.f32 %v5875_v31, 0.0 }
 0x257   : > { %v4041_v41 = vpop.f32.mrb[4].mxu1 }
 0x258   : > { %v6678_v0 = vmax.f32 %v5879_v56, 0.0  ;;  %v4042_v63 = vpop.f32.mrb[5].mxu1 }
 0x259   : > { %v4043_v15 = vadd.f32 %v4042_v63, %v4041_v41  ;;  %v4044_v57 = vpop.f32.mrb[6].mxu1 }
 0x25a   : > { %v1998_v62 = vpack.c.bf16 %v6678_v0, %v6681_v6  ;;  %v4045_v45 = vpop.f32.mrb[7].mxu1 }
 0x25b   : > { %v1131_v11 = vadd.f32 %v4043_v15, %v5871_v25  ;;  %v4046_v2 = vadd.f32 %v4045_v45, %v4044_v57 }
 0x25c   : > { %4265 = vmatprep.mubr.msk.bf16.mxu0 %vm407_vm0, %v1998_v62 }
 0x25d   : > { %v5890_v47 = vadd.f32 %v5600_v43, %v1131_v11  ;;  %v1134_v53 = vadd.f32 %v4046_v2, %v5871_v25 }
 0x25f   : > { %v5894_v27 = vadd.f32 %v5604_v4, %v1134_v53  ;;  %v6680_v32 = vmax.f32 %v5890_v47, 0.0 }
 0x261   : > { %v6679_v61 = vmax.f32 %v5894_v27, 0.0 }
 0x263   : > { %v1999_v7 = vpack.c.bf16 %v6679_v61, %v6680_v32 }
 0x265   : > { %4266 = vmatmul.mubr.msk.bf16.vlgmr.msra.gmra.mrb[32].mxu0 %vm407_vm0, %v1999_v7  ;;  %v4624_v23 = vpop.permute.xlu1 %4623 }
 0x266   : > { %v4626_v5 = vunpack.i.h.bf16 %v4624_v23  ;;  %v4625_v44 = vunpack.i.l.bf16 %v4624_v23 }
 0x267   : > { %v4629_v55 = vpop.permute.xlu0 %4628 }
 0x268   : > { %v1677_v37 = vsel %vm407_vm0, %v1421_v14, %v4626_v5  ;;  %v1676_v28 = vsel %vm407_vm0, %v5510_v16, %v4625_v44  ;;  %v4631_v18 = vunpack.i.h.bf16 %v4629_v55  ;;  %v4630_v41 = vunpack.i.l.bf16 %v4629_v55 }
 0x269   : > { %v4634_v43 = vpop.permute.xlu1 %4633 }
 0x26a   : > { %v4636_v57 = vunpack.i.h.bf16 %v4634_v43 }
 0x26b   : > { %v4639_v51 = vpop.permute.xlu0 %4638 }
 0x26c   : > { %v4641_v17 = vunpack.i.h.bf16 %v4639_v51  ;;  %v4640_v4 = vunpack.i.l.bf16 %v4639_v51 }
 0x26d   : > { %v4649_v9 = vpop.permute.xlu1 %4648 }
 0x26e   : > { %v4651_v36 = vunpack.i.h.bf16 %v4649_v9  ;;  %v4650_v30 = vunpack.i.l.bf16 %v4649_v9  ;;  %v1701_v62 = vsel %vm407_vm0, %v5675_v58, %v4641_v17  ;;  %v1700_v10 = vsel %vm407_vm0, %v5662_v12, %v4640_v4 }
 0x26f   : > { %v4047_v63 = vpop.f32.mrb[8].mxu1  ;;  %v4644_v15 = vpop.permute.xlu0 %4643 }
 0x270   : > { %v4646_v45 = vunpack.i.h.bf16 %v4644_v15  ;;  %v4645_v11 = vunpack.i.l.bf16 %v4644_v15  ;;  %v4048_v2 = vpop.f32.mrb[9].mxu1  ;;  %v1684_v34 = vsel %vm910_vm2, %v1676_v28, %v4650_v30  ;;  %v1685_v53 = vsel %vm910_vm2, %v1677_v37, %v4651_v36 }
 0x271   : > { %v4049_v7 = vadd.f32 %v4048_v2, %v4047_v63  ;;  %v4050_v16 = vpop.f32.mrb[10].mxu1  ;;  %v4654_v23 = vpop.permute.xlu1 %4653  ;;  %v4635_v30 = vunpack.i.l.bf16 %v4634_v43  ;;  %v1422_v43 = vsel %vm393_vm13, %v5691_v59, 0.0  ;;  %vm3742_vm13 = vcmask 253952  }
 0x272   : > { %v4656_v55 = vunpack.i.h.bf16 %v4654_v23  ;;  %v4655_v5 = vunpack.i.l.bf16 %v4654_v23  ;;  %v4051_v44 = vpop.f32.mrb[11].mxu1  ;;  %v1708_v51 = vsel %vm910_vm2, %v1700_v10, %v4645_v11  ;;  %v1709_v58 = vsel %vm910_vm2, %v1701_v62, %v4646_v45 }
 0x273   : > { %v1139_v17 = vadd.f32 %v4049_v7, %v5871_v25  ;;  %v4052_v9 = vadd.f32 %v4051_v44, %v4050_v16  ;;  %v4669_v14 = vpop.permute.xlu0 %4668  ;;  %v1716_v12 = vsel %vm919_vm12, %v1708_v51, %v4630_v41  ;;  %v1717_v4 = vsel %vm919_vm12, %v1709_v58, %v4631_v18 }
 0x274   : > { %v1692_v36 = vsel %vm919_vm12, %v1684_v34, %v4655_v5  ;;  %v1693_v37 = vsel %vm919_vm12, %v1685_v53, %v4656_v55  ;;  %v1725_v45 = vpack.c.bf16 %v1717_v4, %v1716_v12  ;;  %v1423_v11 = vsel %vm394_vm14, %v5693_v46, 0.0 }
 0x275   : > { %v5923_v28 = vadd.f32 %v5610_v49, %v1139_v17  ;;  %v1724_v63 = vpack.c.bf16 %v1693_v37, %v1692_v36  ;;  %v1142_v15 = vadd.f32 %v4052_v9, %v5871_v25  ;;  %v4659_v62 = vpop.permute.xlu1 %4658  ;;  %v1679_v18 = vsel %vm407_vm0, %v1423_v11, %v4636_v57 }
 0x276   : > { %v4661_v41 = vunpack.i.h.bf16 %v4659_v62  ;;  %v4660_v2 = vunpack.i.l.bf16 %v4659_v62  ;;  %1892 = vmatprep.mubr.bf16.mxu1 %v1725_v45  ;;  %v1678_v53 = vsel %vm407_vm0, %v1422_v43, %v4635_v30  ;;  %v4671_v7 = vunpack.i.h.bf16 %v4669_v14 }
 0x277   : > { %v5934_v49 = vadd.f32 %v5615_v52, %v1142_v15  ;;  %v4053_v10 = vpop.f32.mrb[12].mxu1  ;;  %v4679_v34 = vpop.permute.xlu0 %4678  ;;  %v4670_v16 = vunpack.i.l.bf16 %v4669_v14  ;;  %1893 = vmatmul.mubr.bf16.vlgmr.msra.gmra.mrb[16].mxu1 %v1724_v63  ;;  %v6677_v23 = vmax.f32 %v5923_v28, 0.0  ;;  %vm3717_vm14 = vcmask 516096  }
 0x278   : > { %v4681_v8 = vunpack.i.h.bf16 %v4679_v34  ;;  %v4054_v46 = vpop.f32.mrb[13].mxu1  ;;  %v4680_v59 = vunpack.i.l.bf16 %v4679_v34  ;;  %v1686_v58 = vsel %vm910_vm2, %v1678_v53, %v4660_v2  ;;  %v1687_v17 = vsel %vm910_vm2, %v1679_v18, %v4661_v41 }
 0x279   : > { %v6674_v33 = vmax.f32 %v5934_v49, 0.0  ;;  %v4055_v55 = vadd.f32 %v4054_v46, %v4053_v10  ;;  %v4056_v57 = vpop.f32.mrb[14].mxu1  ;;  %v4664_v5 = vpop.permute.xlu1 %4663 }
 0x27a   : > { %v4666_v52 = vunpack.i.h.bf16 %v4664_v5  ;;  %v4665_v44 = vunpack.i.l.bf16 %v4664_v5  ;;  %v4057_v51 = vpop.f32.mrb[15].mxu1  ;;  %v1703_v14 = vsel %vm407_vm0, %v5753_v21, %v4681_v8  ;;  %v1702_v62 = vsel %vm407_vm0, %v5667_v42, %v4680_v59 }
 0x27b   : > { %v2000_v9 = vpack.c.bf16 %v6674_v33, %v6677_v23  ;;  %v1147_v12 = vadd.f32 %v4055_v55, %v5871_v25  ;;  %v4058_v4 = vadd.f32 %v4057_v51, %v4056_v57  ;;  %v4684_v30 = vpop.permute.xlu0 %4683  ;;  %v1425_v5 = vsel %vm396_vm9, %v5773_v29, 0.0 }
 0x27c   : > { %v4686_v36 = vunpack.i.h.bf16 %v4684_v30  ;;  %v4685_v37 = vunpack.i.l.bf16 %v4684_v30  ;;  %v1694_v63 = vsel %vm919_vm12, %v1686_v58, %v4665_v44  ;;  %v1695_v15 = vsel %vm919_vm12, %v1687_v17, %v4666_v52 }
 0x27d   : > { %v5953_v45 = vadd.f32 %v5608_v48, %v1147_v12  ;;  %v1150_v11 = vadd.f32 %v4058_v4, %v5871_v25  ;;  %4269 = vmatprep.mubr.msk.bf16.mxu0 %vm407_vm0, %v2000_v9  ;;  %v4674_v21 = vpop.permute.xlu1 %4673  ;;  %v1727_v41 = vpack.c.bf16 %v1695_v15, %v1694_v63  ;;  %vm3490_vm9 = vcmask 195584  }
 0x27e   : > { %v1710_v2 = vsel %vm910_vm2, %v1702_v62, %v4685_v37  ;;  %v1711_v43 = vsel %vm910_vm2, %v1703_v14, %v4686_v36  ;;  %v4676_v52 = vunpack.i.h.bf16 %v4674_v21 }
 0x27f   : > { %v5960_v18 = vadd.f32 %v5613_v50, %v1150_v11  ;;  %v4689_v10 = vpop.permute.xlu0 %4688  ;;  %v1718_v34 = vsel %vm919_vm12, %v1710_v2, %v4670_v16  ;;  %v1719_v42 = vsel %vm919_vm12, %v1711_v43, %v4671_v7  ;;  %v6676_v48 = vmax.f32 %v5953_v45, 0.0 }
 0x280   : > { %v1728_v8 = vpack.c.bf16 %v1719_v42, %v1718_v34  ;;  %v4675_v50 = vunpack.i.l.bf16 %v4674_v21  ;;  %v1424_v16 = vsel %vm395_vm8, %v5764_v60, 0.0  ;;  %v4691_v12 = vunpack.i.h.bf16 %v4689_v10 }
 0x281   : > { %v6675_v25 = vmax.f32 %v5960_v18, 0.0  ;;  %v4709_v53 = vpop.permute.xlu1 %4708  ;;  %v4690_v4 = vunpack.i.l.bf16 %v4689_v10  ;;  %v1681_v63 = vsel %vm407_vm0, %v1425_v5, %v4676_v52  ;;  %vm3481_vm8 = vcmask 130048  }
 0x282   : > { %1900 = vmatprep.mubr.bf16.mxu1 %v1728_v8  ;;  %v1680_v58 = vsel %vm407_vm0, %v1424_v16, %v4675_v50  ;;  %v4711_v10 = vunpack.i.h.bf16 %v4709_v53  ;;  %v4710_v34 = vunpack.i.l.bf16 %v4709_v53 }
 0x283   : > { %v2001_v46 = vpack.c.bf16 %v6675_v25, %v6676_v48  ;;  %v4694_v59 = vpop.permute.xlu0 %4693  ;;  %1901 = vmatmul.mubr.bf16.gmra.mrb[20].mxu1 %v1727_v41 }
 0x284   : > { %v4696_v55 = vunpack.i.h.bf16 %v4694_v59  ;;  %v4695_v57 = vunpack.i.l.bf16 %v4694_v59 }
 0x285   : > { %4270 = vmatmul.mubr.msk.bf16.gmra.mrb[36].mxu0 %vm407_vm0, %v2001_v46  ;;  %v4724_v7 = vpop.permute.xlu1 %4723 }
 0x286   : > { %v4725_v44 = vunpack.i.l.bf16 %v4724_v7  ;;  %v4726_v17 = vunpack.i.h.bf16 %v4724_v7  ;;  %v1705_v30 = vsel %vm407_vm0, %v5795_v38, %v4696_v55  ;;  %v1704_v35 = vsel %vm407_vm0, %v5740_v39, %v4695_v57 }
 0x287   : > { %v4699_v51 = vpop.permute.xlu0 %4698  ;;  %v1427_v57 = vsel %vm398_vm1, %v5809_v13, 0.0  ;;  %v1426_v7 = vsel %vm397_vm15, %v5814_v19, 0.0 }
 0x288   : > { %v4701_v9 = vunpack.i.h.bf16 %v4699_v51  ;;  %v4700_v14 = vunpack.i.l.bf16 %v4699_v51  ;;  %v1688_v21 = vsel %vm910_vm2, %v1680_v58, %v4725_v44  ;;  %v1689_v41 = vsel %vm910_vm2, %v1681_v63, %v4726_v17 }
 0x289   : > { %v4729_v60 = vpop.permute.xlu1 %4728  ;;  %v1683_v53 = vsel %vm407_vm0, %v1427_v57, %v4711_v10  ;;  %v1682_v44 = vsel %vm407_vm0, %v1426_v7, %v4710_v34  ;;  %v1738_v7 = vsub.s32 3, %v5153_v20 }
 0x28a   : > { %v4731_v36 = vunpack.i.h.bf16 %v4729_v60  ;;  %v4730_v1 = vunpack.i.l.bf16 %v4729_v60  ;;  %v1712_v29 = vsel %vm910_vm2, %v1704_v35, %v4700_v14  ;;  %v1713_v37 = vsel %vm910_vm2, %v1705_v30, %v4701_v9 }
 0x28b   : > { %v4704_v15 = vpop.permute.xlu0 %4703  ;;  %v1720_v62 = vsel %vm919_vm12, %v1712_v29, %v4690_v4  ;;  %v1721_v11 = vsel %vm919_vm12, %v1713_v37, %v4691_v12 }
 0x28c   : > { %v1731_v38 = vpack.c.bf16 %v1721_v11, %v1720_v62  ;;  %v1696_v39 = vsel %vm919_vm12, %v1688_v21, %v4730_v1  ;;  %v1697_v43 = vsel %vm919_vm12, %v1689_v41, %v4731_v36  ;;  %v4706_v42 = vunpack.i.h.bf16 %v4704_v15  ;;  %v4856_v41 = vld [vmem:[%s6667_s5 + $0x8] sm:$0xff]  }
 0x28d   : > { %v4734_v2 = vpop.permute.xlu1 %4733  ;;  %v4705_v8 = vunpack.i.l.bf16 %v4704_v15  ;;  %v1730_v55 = vpack.c.bf16 %v1697_v43, %v1696_v39  ;;  %v2012_v39 = vsub.s32 4, %v5153_v20 }
 0x28e   : > { %1908 = vmatprep.mubr.bf16.mxu1 %v1731_v38  ;;  %v4736_v46 = vunpack.i.h.bf16 %v4734_v2  ;;  %v4735_v59 = vunpack.i.l.bf16 %v4734_v2  ;;  %v1707_v17 = vsel %vm407_vm0, %v5857_v26, %v4706_v42  ;;  %v4855_v38 = vld [vmem:[%s6667_s5] sm:$0xff]  }
 0x28f   : > { %v4714_v50 = vpop.permute.xlu0 %4713  ;;  %1909 = vmatmul.mubr.bf16.gmra.mrb[24].mxu1 %v1730_v55  ;;  %v1706_v24 = vsel %vm407_vm0, %v5797_v54, %v4705_v8  ;;  %4273 = vmatprep.subr.bf16.mxu0 %v4855_v38  ;;  %v2013_v2 = vrot.slane %v5868_v40, %v2012_v39 }
 0x290   : > { %v4716_v16 = vunpack.i.h.bf16 %v4714_v50  ;;  %v4715_v5 = vunpack.i.l.bf16 %v4714_v50  ;;  %v1690_v22 = vsel %vm910_vm2, %v1682_v44, %v4735_v59  ;;  %v1691_v19 = vsel %vm910_vm2, %v1683_v53, %v4736_v46  ;;  %4274 = vmatpush3.bf16.msra.mxu0 %v4855_v38 }
 0x291   : > { %v4739_v52 = vpop.permute.xlu1 %4738  ;;  %4275 = vmatprep.subr.bf16.mxu0 %v4856_v41 }
 0x292   : > { %v4741_v51 = vunpack.i.h.bf16 %v4739_v52  ;;  %v4740_v58 = vunpack.i.l.bf16 %v4739_v52  ;;  %v1714_v30 = vsel %vm910_vm2, %v1706_v24, %v4715_v5  ;;  %v1715_v35 = vsel %vm910_vm2, %v1707_v17, %v4716_v16 }
 0x293   : > { %v4719_v13 = vpop.permute.xlu0 %4718  ;;  %v1739_v5 = vrot.slane %v5868_v40, %v1738_v7 }
 0x294   : > { %v4721_v9 = vunpack.i.h.bf16 %v4719_v13  ;;  %v4720_v14 = vunpack.i.l.bf16 %v4719_v13  ;;  %v1698_v12 = vsel %vm919_vm12, %v1690_v22, %v4740_v58  ;;  %v1699_v4 = vsel %vm919_vm12, %v1691_v19, %v4741_v51  ;;  %4276 = vmatpush3.bf16.msra.mxu0 %v4856_v41 }
 0x295   : > { %v1733_v60 = vpack.c.bf16 %v1699_v4, %v1698_v12 }
 0x296   : > { %v1722_v26 = vsel %vm919_vm12, %v1714_v30, %v4720_v14  ;;  %v1723_v54 = vsel %vm919_vm12, %v1715_v35, %v4721_v9  ;;  %vm6621_vm12 = vmpackc.low %vm407_vm0, %vm407_vm0 }
 0x297   : > { %v1734_v36 = vpack.c.bf16 %v1723_v54, %v1722_v26 }
 0x299   : > { %1916 = vmatprep.mubr.bf16.mxu1 %v1734_v36 }
 0x29a   : > { %1917 = vmatmul.mubr.bf16.gmra.mrb[28].mxu1 %v1733_v60 }
 0x2d1   : > { %v4255_v1 = vpop.f32.mrb[24].mxu0 }
 0x2d2   : > { %v1959_v29 = vpop.f32.mrb[25].mxu0 }
 0x2d3   : > { %v4256_v37 = vpop.f32.mrb[26].mxu0 }
 0x2d4   : > { %v1962_v63 = vpop.f32.mrb[27].mxu0 }
 0x2d9   : > { %v6011_v15 = vpop.f32.mrb[28].mxu0 }
 0x2da   : > { %v6013_v62 = vpop.f32.mrb[29].mxu0 }
 0x2db   : > { %v6015_v11 = vpop.f32.mrb[30].mxu0 }
 0x2dc   : > { %v6017_v21 = vpop.f32.mrb[31].mxu0 }
 0x338   : > { %v4267_v43 = vpop.f32.mrb[32].mxu0 }
 0x339   : > { %v2081_v10 = vadd.f32 %v4267_v43, %v2013_v2  ;;  %v2072_v34 = vpop.f32.mrb[33].mxu0 }
 0x33a   : > { %v4268_v42 = vpop.f32.mrb[34].mxu0  ;;  %v2073_v59 = vadd.f32 %v2072_v34, %v2013_v2 }
 0x33b   : > { %v2084_v8 = vadd.f32 %v4268_v42, %v2013_v2  ;;  %v2075_v46 = vpop.f32.mrb[35].mxu0 }
 0x33c   : > { %v2076_v50 = vadd.f32 %v2075_v46, %v2013_v2 }
 0x33d   : > { %v6027_v55 = vpack.c.bf16 %v2084_v8, %v2081_v10 }
 0x33e   : > { %v6029_v57 = vpack.c.bf16 %v2076_v50, %v2073_v59 }
 0x340   : > { %4293 = vmatprep.mubr.msk.bf16.mxu1 %vm2236_vm6, %v6029_v57 }
 0x34a   : > { %v4088_v16 = vpop.f32.mrb[16].mxu1 }
 0x34b   : > { %v4089_v52 = vpop.f32.mrb[17].mxu1 }
 0x34c   : > { %v4090_v53 = vadd.f32 %v4089_v52, %v4088_v16  ;;  %v4091_v44 = vpop.f32.mrb[18].mxu1 }
 0x34d   : > { %v4092_v51 = vpop.f32.mrb[19].mxu1 }
 0x34e   : > { %v1895_v58 = vadd.f32 %v4090_v53, %v1739_v5  ;;  %v4093_v17 = vadd.f32 %v4092_v51, %v4091_v44 }
 0x350   : > { %v1960_v24 = vadd.f32 %v1959_v29, %v1895_v58  ;;  %v1898_v13 = vadd.f32 %v4093_v17, %v1739_v5 }
 0x352   : > { %v1963_v22 = vadd.f32 %v1962_v63, %v1898_v13  ;;  %v1990_v19 = vmax.f32 %v1960_v24, 0.0 }
 0x354   : > { %v1991_v9 = vmax.f32 %v1963_v22, 0.0 }
 0x356   : > { %v2002_v14 = vpack.c.bf16 %v1991_v9, %v1990_v19  ;;  %v4094_v12 = vpop.f32.mrb[20].mxu1 }
 0x357   : > { %v4095_v4 = vpop.f32.mrb[21].mxu1 }
 0x358   : > { %v4271_v30 = vpop.f32.mrb[36].mxu0  ;;  %v4096_v35 = vadd.f32 %v4095_v4, %v4094_v12  ;;  %v4097_v26 = vpop.f32.mrb[22].mxu1  ;;  %4277 = vmatprep.mubr.msk.bf16.mxu0 %vm407_vm0, %v2002_v14 }
 0x359   : > { %v2097_v60 = vadd.f32 %v4271_v30, %v2013_v2  ;;  %v2088_v54 = vpop.f32.mrb[37].mxu0  ;;  %v4098_v38 = vpop.f32.mrb[23].mxu1 }
 0x35a   : > { %v2089_v36 = vadd.f32 %v2088_v54, %v2013_v2  ;;  %v4272_v41 = vpop.f32.mrb[38].mxu0  ;;  %v1903_v39 = vadd.f32 %v4096_v35, %v1739_v5  ;;  %v4099_v43 = vadd.f32 %v4098_v38, %v4097_v26 }
 0x35b   : > { %v2100_v29 = vadd.f32 %v4272_v41, %v2013_v2  ;;  %v2091_v10 = vpop.f32.mrb[39].mxu0  ;;  %v2198_v41 = vsub.s32 5, %v5153_v20 }
 0x35c   : > { %v2092_v63 = vadd.f32 %v2091_v10, %v2013_v2  ;;  %v1968_v34 = vadd.f32 %v4255_v1, %v1903_v39  ;;  %v1906_v42 = vadd.f32 %v4099_v43, %v1739_v5 }
 0x35d   : > { %v6036_v8 = vpack.c.bf16 %v2100_v29, %v2097_v60  ;;  %v2199_v39 = vrot.slane %v5868_v40, %v2198_v41 }
 0x35e   : > { %v6038_v46 = vpack.c.bf16 %v2092_v63, %v2089_v36  ;;  %v1971_v59 = vadd.f32 %v4256_v37, %v1906_v42  ;;  %v1992_v50 = vmax.f32 %v1968_v34, 0.0 }
 0x360   : > { %v1993_v7 = vmax.f32 %v1971_v59, 0.0 }
 0x362   : > { %v2003_v16 = vpack.c.bf16 %v1993_v7, %v1992_v50  ;;  %v4100_v52 = vpop.f32.mrb[24].mxu1 }
 0x363   : > { %v4101_v53 = vpop.f32.mrb[25].mxu1 }
 0x364   : > { %4278 = vmatmul.mubr.msk.bf16.vlgmr.msra.gmra.mrb[40].mxu0 %vm407_vm0, %v2003_v16  ;;  %v4102_v44 = vadd.f32 %v4101_v53, %v4100_v52  ;;  %v4103_v51 = vpop.f32.mrb[26].mxu1 }
 0x365   : > { %v4104_v58 = vpop.f32.mrb[27].mxu1 }
 0x366   : > { %v1911_v17 = vadd.f32 %v4102_v44, %v1739_v5  ;;  %v4105_v24 = vadd.f32 %v4104_v58, %v4103_v51 }
 0x368   : > { %v1976_v1 = vadd.f32 %v6013_v62, %v1911_v17  ;;  %v1914_v2 = vadd.f32 %v4105_v24, %v1739_v5 }
 0x36a   : > { %v1979_v13 = vadd.f32 %v6017_v21, %v1914_v2  ;;  %v1994_v19 = vmax.f32 %v1976_v1, 0.0 }
 0x36c   : > { %v1995_v37 = vmax.f32 %v1979_v13, 0.0 }
 0x36d   : > { %v4106_v22 = vpop.f32.mrb[28].mxu1 }
 0x36e   : > { %v4107_v9 = vpop.f32.mrb[29].mxu1  ;;  %v2004_v4 = vpack.c.bf16 %v1995_v37, %v1994_v19 }
 0x36f   : > { %v4108_v14 = vadd.f32 %v4107_v9, %v4106_v22  ;;  %v4109_v12 = vpop.f32.mrb[30].mxu1  ;;  %v2210_v22 = vsub.s32 6, %v5153_v20 }
 0x370   : > { %v4110_v30 = vpop.f32.mrb[31].mxu1  ;;  %4281 = vmatprep.mubr.msk.bf16.mxu0 %vm407_vm0, %v2004_v4 }
 0x371   : > { %v1919_v35 = vadd.f32 %v4108_v14, %v1739_v5  ;;  %v4111_v60 = vadd.f32 %v4110_v30, %v4109_v12  ;;  %v2211_v19 = vrot.slane %v5868_v40, %v2210_v22 }
 0x373   : > { %v1984_v26 = vadd.f32 %v6011_v15, %v1919_v35  ;;  %v1922_v54 = vadd.f32 %v4111_v60, %v1739_v5 }
 0x375   : > { %v1987_v62 = vadd.f32 %v6015_v11, %v1922_v54  ;;  %v1996_v36 = vmax.f32 %v1984_v26, 0.0 }
 0x377   : > { %v1997_v38 = vmax.f32 %v1987_v62, 0.0 }
 0x379   : > { %v2005_v21 = vpack.c.bf16 %v1997_v38, %v1996_v36 }
 0x37b   : > { %4282 = vmatmul.mubr.msk.bf16.gmra.mrb[44].mxu0 %vm407_vm0, %v2005_v21 }
 0x437   : > { %v6049_v43 = vpop.f32.mrb[40].mxu0 }
 0x438   : > { %v6051_v29 = vpop.f32.mrb[41].mxu0  ;;  %v2202_v15 = vadd.f32 %v6049_v43, %v2199_v39 }
 0x439   : > { %v6053_v10 = vpop.f32.mrb[42].mxu0  ;;  %v2200_v63 = vadd.f32 %v2199_v39, %v6051_v29 }
 0x43a   : > { %v2203_v5 = vadd.f32 %v6053_v10, %v2199_v39  ;;  %v6057_v11 = vpop.f32.mrb[43].mxu0 }
 0x43b   : > { %v2201_v34 = vadd.f32 %v2199_v39, %v6057_v11 }
 0x43c   : > { %v6061_v42 = vpack.c.bf16 %v2203_v5, %v2202_v15 }
 0x43d   : > { %v6063_v59 = vpack.c.bf16 %v2201_v34, %v2200_v63 }
 0x43e   : > { %2529 = vrot.lane.b32.xlu1 %v6061_v42, %s5005_s23  ;;  %v2253_v7 = vsel %vm2236_vm6, %v6061_v42, 0 }
 0x43f   : > { %2527 = vrot.lane.b32.xlu0 %v6063_v59, %s5005_s23  ;;  %4462 = vmatprep.subr.msk.bf16.mxu1 %vm2236_vm6, %v6063_v59  ;;  %v2250_v50 = vsel %vm2236_vm6, %v6063_v59, 0 }
 0x440   : > { %4286 = vmatpush3.bf16.xpose.msra.mxu1 %v2250_v50 }
 0x441   : > { %4463 = vmatprep.subr.msk.bf16.mxu1 %vm2236_vm6, %v6061_v42 }
 0x448   : > { %4288 = vmatpush3.bf16.xpose.msra.mxu1 %v2253_v7 }
 0x44e   : > { %v4283_v16 = vpop.f32.mrb[44].mxu0 }
 0x44f   : > { %v2181_v52 = vpop.f32.mrb[45].mxu0  ;;  %v2206_v44 = vadd.f32 %v4283_v16, %v2199_v39 }
 0x450   : > { %v4284_v53 = vpop.f32.mrb[46].mxu0  ;;  %v2204_v17 = vadd.f32 %v2199_v39, %v2181_v52 }
 0x451   : > { %v2207_v51 = vadd.f32 %v4284_v53, %v2199_v39  ;;  %v2184_v58 = vpop.f32.mrb[47].mxu0 }
 0x452   : > { %v2205_v24 = vadd.f32 %v2199_v39, %v2184_v58 }
 0x453   : > { %v6075_v1 = vpack.c.bf16 %v2207_v51, %v2206_v44 }
 0x454   : > { %v6077_v2 = vpack.c.bf16 %v2205_v24, %v2204_v17 }
 0x455   : > { %2533 = vrot.lane.b32.xlu1 %v6075_v1, %s5005_s23  ;;  %v2259_v37 = vsel %vm2236_vm6, %v6075_v1, 0 }
 0x456   : > { %2531 = vrot.lane.b32.xlu0 %v6077_v2, %s5005_s23  ;;  %4464 = vmatprep.subr.msk.bf16.mxu1 %vm2236_vm6, %v6077_v2  ;;  %v2256_v13 = vsel %vm2236_vm6, %v6077_v2, 0 }
 0x457   : > { %4290 = vmatpush3.bf16.xpose.msra.mxu1 %v2256_v13 }
 0x458   : > { %4465 = vmatprep.subr.msk.bf16.mxu1 %vm2236_vm6, %v6075_v1 }
 0x459   : > { %2517 = vrot.lane.b32.xlu1 %v6027_v55, %s5005_s23 }
 0x45a   : > { %2515 = vrot.lane.b32.xlu0 %v6029_v57, %s5005_s23 }
 0x45d   : > { %2521 = vrot.lane.b32.xlu1 %v6036_v8, %s5005_s23 }
 0x45e   : > { %2519 = vrot.lane.b32.xlu0 %v6038_v46, %s5005_s23 }
 0x45f   : > { %4292 = vmatpush3.bf16.xpose.msra.mxu1 %v2259_v37 }
 0x461   : > { %2213 = vrot.lane.b32.xlu1 %v2211_v19, %s5002_s13  ;;  %s5006_s13 = smov 88  }
 0x466   : > { %4294 = vmatmul.mubr.msk.bf16.vlgmr.msra.gmra.mrb[32].mxu1 %vm2236_vm6, %v6027_v55 }
 0x467   : > { %4297 = vmatprep.mubr.msk.bf16.mxu1 %vm2236_vm6, %v6038_v46 }
 0x46e   : > { %4298 = vmatmul.mubr.msk.bf16.gmra.mrb[36].mxu1 %vm2236_vm6, %v6036_v8 }
 0x4b0   : > { %v2530_v14 = vpop.permute.xlu1 %2529 }
 0x4b1   : > { %v2528_v9 = vpop.permute.xlu0 %2527  ;;  %v2551_v12 = vsel %vm2236_vm6, %v2530_v14, 0 }
 0x4b2   : > { %4466 = vmatprep.subr.msk.bf16.mxu1 %vm2236_vm6, %v2528_v9  ;;  %v2548_v40 = vsel %vm2236_vm6, %v2528_v9, 0 }
 0x4b3   : > { %4318 = vmatpush3.bf16.xpose.msra.mxu1 %v2548_v40 }
 0x4b4   : > { %4467 = vmatprep.subr.msk.bf16.mxu1 %vm2236_vm6, %v2530_v14 }
 0x4bb   : > { %4320 = vmatpush3.bf16.xpose.msra.mxu1 %v2551_v12 }
 0x4c7   : > { %v2534_v4 = vpop.permute.xlu1 %2533 }
 0x4c8   : > { %v2532_v30 = vpop.permute.xlu0 %2531  ;;  %v2557_v62 = vsel %vm2236_vm6, %v2534_v4, 0 }
 0x4c9   : > { %4468 = vmatprep.subr.msk.bf16.mxu1 %vm2236_vm6, %v2532_v30  ;;  %v2554_v35 = vsel %vm2236_vm6, %v2532_v30, 0 }
 0x4ca   : > { %4322 = vmatpush3.bf16.xpose.msra.mxu1 %v2554_v35 }
 0x4cb   : > { %v2518_v60 = vpop.permute.xlu1 %2517  ;;  %4469 = vmatprep.subr.msk.bf16.mxu1 %vm2236_vm6, %v2534_v4 }
 0x4cc   : > { %v2516_v26 = vpop.permute.xlu0 %2515 }
 0x4cd   : > { %4325 = vmatprep.mubr.msk.bf16.mxu1 %vm2236_vm6, %v2516_v26 }
 0x4cf   : > { %v2522_v54 = vpop.permute.xlu1 %2521 }
 0x4d2   : > { %4324 = vmatpush3.bf16.xpose.msra.mxu1 %v2557_v62 }
 0x4d3   : > { %v2214_v36 = vpop.permute.xlu1 %2213 }
 0x4d4   : > { %v2216_v38 = vadd.f32 %v2214_v36, %v6051_v29  ;;  %v2217_v21 = vadd.f32 %v2214_v36, %v6057_v11  ;;  %v2220_v41 = vadd.f32 %v2214_v36, %v2181_v52  ;;  %v2221_v39 = vadd.f32 %v2214_v36, %v2184_v58 }
 0x4d5   : > { %v2218_v15 = vadd.f32 %v6049_v43, %v2214_v36  ;;  %v2219_v5 = vadd.f32 %v6053_v10, %v2214_v36  ;;  %v2222_v63 = vadd.f32 %v4283_v16, %v2214_v36  ;;  %v2223_v34 = vadd.f32 %v4284_v53, %v2214_v36  ;;  %v2520_v43 = vpop.permute.xlu0 %2519 }
 0x4d6   : > { %v6115_v50 = vpack.c.bf16 %v2217_v21, %v2216_v38  ;;  %v6117_v7 = vpack.c.bf16 %v2221_v39, %v2220_v41 }
 0x4d7   : > { %v6119_v44 = vpack.c.bf16 %v2219_v5, %v2218_v15  ;;  %v6121_v51 = vpack.c.bf16 %v2223_v34, %v2222_v63 }
 0x4d8   : > { %2716 = vrot.lane.b32.xlu1 %v6115_v50, %s5006_s13  ;;  %2422 = vrot.lane.b32.xlu0 %v6115_v50, %s5003_s21 }
 0x4d9   : > { %4326 = vmatmul.mubr.msk.bf16.vlgmr.msra.gmra.mrb[40].mxu1 %vm2236_vm6, %v2518_v60 }
 0x4da   : > { %4329 = vmatprep.mubr.msk.bf16.mxu1 %vm2236_vm6, %v2520_v43 }
 0x4dc   : > { %2426 = vrot.lane.b32.xlu1 %v6117_v7, %s5003_s21  ;;  %2424 = vrot.lane.b32.xlu0 %v6119_v44, %s5003_s21 }
 0x4e0   : > { %2428 = vrot.lane.b32.xlu0 %v6121_v51, %s5003_s21  ;;  %s5007_s21 = smov 112  }
 0x4e1   : > { %4330 = vmatmul.mubr.msk.bf16.gmra.mrb[44].mxu1 %vm2236_vm6, %v2522_v54 }
 0x4e4   : > { %2718 = vrot.lane.b32.xlu0 %v6119_v44, %s5006_s13 }
 0x539   : > { %v6138_v29 = vpop.f32.mrb[32].mxu1 }
 0x53a   : > { %v6140_v10 = vpop.f32.mrb[33].mxu1  ;;  %v2332_v11 = vsel %vm910_vm2, %v6138_v29, -inf }
 0x53b   : > { %2333 = vmax.xlane.f32.xlu0 %v2332_v11  ;;  %v6144_v16 = vpop.f32.mrb[34].mxu1  ;;  %v2326_v58 = vsel %vm910_vm2, %v6140_v10, -inf }
 0x53c   : > { %v6146_v52 = vpop.f32.mrb[35].mxu1  ;;  %v2335_v13 = vsel %vm910_vm2, %v6144_v16, -inf }
 0x53d   : > { %v2329_v53 = vsel %vm910_vm2, %v6146_v52, -inf }
 0x53e   : > { %2330 = vmax.xlane.f32.xlu1 %v2329_v53 }
 0x53f   : > { %2327 = vmax.xlane.f32.xlu0 %v2326_v58 }
 0x541   : > { %v6152_v17 = vpop.f32.mrb[36].mxu1 }
 0x542   : > { %v6154_v24 = vpop.f32.mrb[37].mxu1  ;;  %v2344_v22 = vsel %vm910_vm2, %v6152_v17, -inf }
 0x543   : > { %2336 = vmax.xlane.f32.xlu0 %v2335_v13  ;;  %2345 = vmax.xlane.f32.xlu1 %v2344_v22  ;;  %v6160_v19 = vpop.f32.mrb[38].mxu1  ;;  %v2338_v9 = vsel %vm910_vm2, %v6154_v24, -inf }
 0x544   : > { %v6162_v37 = vpop.f32.mrb[39].mxu1  ;;  %v2347_v40 = vsel %vm910_vm2, %v6160_v19, -inf }
 0x545   : > { %v2341_v4 = vsel %vm910_vm2, %v6162_v37, -inf }
 0x547   : > { %2339 = vmax.xlane.f32.xlu1 %v2338_v9  ;;  %2348 = vmax.xlane.f32.xlu0 %v2347_v40 }
 0x54a   : > { %v6168_v14 = vpop.permute.xlu1 %2716  ;;  %v2423_v12 = vpop.permute.xlu0 %2422 }
 0x54b   : > { %4301 = vmatprep.subr.bf16.mxu0 %v2423_v12  ;;  %2342 = vmax.xlane.f32.xlu0 %v2341_v4 }
 0x54c   : > { %4302 = vmatpush3.bf16.msra.mxu0 %v2423_v12 }
 0x54e   : > { %v2425_v30 = vpop.permute.xlu0 %2424  ;;  %v2427_v35 = vpop.permute.xlu1 %2426 }
 0x54f   : > { %4303 = vmatprep.subr.bf16.mxu0 %v2425_v30 }
 0x550   : > { %4304 = vmatpush3.bf16.msra.mxu0 %v2425_v30 }
 0x551   : > { %4305 = vmatprep.subr.bf16.mxu0 %v2427_v35 }
 0x552   : > { %v2429_v60 = vpop.permute.xlu0 %2428 }
 0x554   : > { %4306 = vmatpush3.bf16.msra.mxu0 %v2427_v35 }
 0x555   : > { %4307 = vmatprep.subr.bf16.mxu0 %v2429_v60 }
 0x556   : > { %v6207_v13 = vpop.permute.xlu0 %2718 }
 0x558   : > { %4308 = vmatpush3.bf16.msra.mxu0 %v2429_v60 }
 0x559   : > { %4333 = vmatprep.subr.bf16.mxu0 %v6168_v14 }
 0x5ac   : > { %v6173_v26 = vpop.f32.mrb[40].mxu1 }
 0x5ad   : > { %v6175_v54 = vpop.f32.mrb[41].mxu1  ;;  %v2630_v62 = vsel %vm910_vm2, %v6173_v26, -inf }
 0x5ae   : > { %2631 = vmax.xlane.f32.xlu1 %v2630_v62  ;;  %v6179_v36 = vpop.f32.mrb[42].mxu1  ;;  %v2624_v41 = vsel %vm910_vm2, %v6175_v54, -inf }
 0x5af   : > { %v6181_v38 = vpop.f32.mrb[43].mxu1  ;;  %v2633_v21 = vsel %vm910_vm2, %v6179_v36, -inf }
 0x5b0   : > { %2634 = vmax.xlane.f32.xlu0 %v2633_v21  ;;  %v2627_v39 = vsel %vm910_vm2, %v6181_v38, -inf }
 0x5b2   : > { %2625 = vmax.xlane.f32.xlu1 %v2624_v41 }
 0x5b4   : > { %v6189_v15 = vpop.f32.mrb[44].mxu1  ;;  %2628 = vmax.xlane.f32.xlu0 %v2627_v39 }
 0x5b5   : > { %v6191_v5 = vpop.f32.mrb[45].mxu1  ;;  %v2642_v43 = vsel %vm910_vm2, %v6189_v15, -inf }
 0x5b6   : > { %v6193_v63 = vpop.f32.mrb[46].mxu1  ;;  %v2636_v11 = vsel %vm910_vm2, %v6191_v5, -inf }
 0x5b7   : > { %v6195_v34 = vpop.f32.mrb[47].mxu1  ;;  %v2645_v53 = vsel %vm910_vm2, %v6193_v63, -inf }
 0x5b8   : > { %2643 = vmax.xlane.f32.xlu0 %v2642_v43  ;;  %v2639_v58 = vsel %vm910_vm2, %v6195_v34, -inf }
 0x5bc   : > { %2637 = vmax.xlane.f32.xlu0 %v2636_v11 }
 0x5c0   : > { %2646 = vmax.xlane.f32.xlu0 %v2645_v53 }
 0x5c3   : > { %2722 = vrot.lane.b32.xlu1 %v6121_v51, %s5006_s13 }
 0x5c4   : > { %2640 = vmax.xlane.f32.xlu0 %v2639_v58 }
 0x5c7   : > { %2813 = vrot.lane.b32.xlu1 %v6063_v59, %s5007_s21 }
 0x5c8   : > { %v2334_v22 = vpop.xlane.xlu0 %2333 }
 0x5c9   : > { %v2352_v43 = vsub.f32 %v6138_v29, %v2334_v22 }
 0x5cb   : > { %v2331_v40 = vpop.xlane.xlu1 %2330 }
 0x5cc   : > { %v2328_v9 = vpop.xlane.xlu0 %2327 }
 0x5cd   : > { %v2350_v4 = vsub.f32 %v6140_v10, %v2328_v9  ;;  %v2362_v10 = vmul.f32 1.442695, %v2352_v43  ;;  %v2351_v9 = vsub.f32 %v6146_v52, %v2331_v40 }
 0x5cf   : > { %v2358_v35 = vmul.f32 1.442695, %v2350_v4 }
 0x5d0   : > { %v2337_v12 = vpop.xlane.xlu0 %2336  ;;  %v2346_v30 = vpop.xlane.xlu1 %2345 }
 0x5d1   : > { %v2356_v60 = vsub.f32 %v6152_v17, %v2346_v30  ;;  %4859 = vpow2.f32 %v2358_v35  ;;  %v2353_v53 = vsub.f32 %v6144_v16, %v2337_v12  ;;  %v2360_v30 = vmul.f32 1.442695, %v2351_v9 }
 0x5d3   : > { %v2370_v21 = vmul.f32 1.442695, %v2356_v60  ;;  %v2364_v4 = vmul.f32 1.442695, %v2353_v53 }
 0x5d4   : > { %v2349_v62 = vpop.xlane.xlu0 %2348 }
 0x5d5   : > { %v2357_v41 = vsub.f32 %v6160_v19, %v2349_v62  ;;  %4861 = vpow2.f32 %v2370_v21  ;;  %v2340_v19 = vpop.xlane.xlu1 %2339 }
 0x5d6   : > { %v2354_v16 = vsub.f32 %v6154_v24, %v2340_v19 }
 0x5d7   : > { %v2372_v39 = vmul.f32 1.442695, %v2357_v41 }
 0x5d8   : > { %v2343_v12 = vpop.xlane.xlu0 %2342  ;;  %v2366_v60 = vmul.f32 1.442695, %v2354_v16 }
 0x5d9   : > { %4863 = vpow2.f32 %v2372_v39  ;;  %v2355_v52 = vsub.f32 %v6162_v37, %v2343_v12 }
 0x5da   : > { %2720 = vrot.lane.b32.xlu0 %v6117_v7, %s5006_s13  ;;  %4865 = vpow2.f32 %v2362_v10 }
 0x5db   : > { %v6217_v11 = vpop.eup %4859  ;;  %4867 = vpow2.f32 %v2364_v4  ;;  %v2368_v62 = vmul.f32 1.442695, %v2355_v52 }
 0x5dc   : > { %v2374_v17 = vsel %vm910_vm2, %v6217_v11, 0.0  ;;  %4869 = vpow2.f32 %v2360_v30 }
 0x5dd   : > { %4871 = vpow2.f32 %v2366_v60 }
 0x5de   : > { %4873 = vpow2.f32 %v2368_v62 }
 0x5df   : > { %v6222_v58 = vpop.eup %4861 }
 0x5e0   : > { %v2392_v29 = vsel %vm910_vm2, %v6222_v58, 0.0 }
 0x5e3   : > { %v6227_v22 = vpop.eup %4863 }
 0x5e4   : > { %v2395_v35 = vsel %vm910_vm2, %v6227_v22, 0.0  ;;  %v6233_v40 = vpop.eup %4865 }
 0x5e5   : > { %v2380_v21 = vsel %vm910_vm2, %v6233_v40, 0.0  ;;  %v6237_v41 = vpop.eup %4867 }
 0x5e6   : > { %v2383_v24 = vsel %vm910_vm2, %v6237_v41, 0.0  ;;  %v6241_v39 = vpop.eup %4869 }
 0x5e7   : > { %v2377_v37 = vsel %vm910_vm2, %v6241_v39, 0.0  ;;  %v6245_v43 = vpop.eup %4871 }
 0x5e8   : > { %v2386_v10 = vsel %vm910_vm2, %v6245_v43, 0.0  ;;  %v6249_v53 = vpop.eup %4873 }
 0x5eb   : > { %2375 = vadd.xlane.f32.xlu1 %v2374_v17  ;;  %v2389_v17 = vsel %vm910_vm2, %v6249_v53, 0.0 }
 0x5ef   : > { %2393 = vadd.xlane.f32.xlu1 %v2392_v29 }
 0x5f3   : > { %2396 = vadd.xlane.f32.xlu1 %v2395_v35 }
 0x5f9   : > { %2381 = vadd.xlane.f32.xlu0 %v2380_v21 }
 0x5fd   : > { %2384 = vadd.xlane.f32.xlu0 %v2383_v24 }
 0x601   : > { %2378 = vadd.xlane.f32.xlu0 %v2377_v37 }
 0x605   : > { %2387 = vadd.xlane.f32.xlu0 %v2386_v10 }
 0x609   : > { %2390 = vadd.xlane.f32.xlu0 %v2389_v17 }
 0x63b   : > { %v2632_v9 = vpop.xlane.xlu1 %2631 }
 0x63c   : > { %v2650_v4 = vsub.f32 %v6173_v26, %v2632_v9 }
 0x63d   : > { %v2635_v19 = vpop.xlane.xlu0 %2634 }
 0x63e   : > { %v2660_v29 = vmul.f32 1.442695, %v2650_v4  ;;  %v2651_v30 = vsub.f32 %v6179_v36, %v2635_v19 }
 0x63f   : > { %v2626_v16 = vpop.xlane.xlu1 %2625 }
 0x640   : > { %4875 = vpow2.f32 %v2660_v29  ;;  %v2648_v12 = vsub.f32 %v6175_v54, %v2626_v16  ;;  %v2662_v35 = vmul.f32 1.442695, %v2651_v30 }
 0x641   : > { %v2629_v60 = vpop.xlane.xlu0 %2628 }
 0x642   : > { %v2656_v52 = vmul.f32 1.442695, %v2648_v12  ;;  %v2649_v62 = vsub.f32 %v6181_v38, %v2629_v60 }
 0x644   : > { %4877 = vpow2.f32 %v2656_v52  ;;  %v2658_v21 = vmul.f32 1.442695, %v2649_v62 }
 0x645   : > { %4879 = vpow2.f32 %v2662_v35  ;;  %v2644_v24 = vpop.xlane.xlu0 %2643 }
 0x646   : > { %4881 = vpow2.f32 %v2658_v21  ;;  %v2654_v26 = vsub.f32 %v6189_v15, %v2644_v24 }
 0x648   : > { %v2668_v37 = vmul.f32 1.442695, %v2654_v26 }
 0x649   : > { %v2638_v10 = vpop.xlane.xlu0 %2637 }
 0x64a   : > { %v6258_v17 = vpop.eup %4875  ;;  %4883 = vpow2.f32 %v2668_v37  ;;  %v2652_v36 = vsub.f32 %v6191_v5, %v2638_v10  ;;  %v2723_v10 = vpop.permute.xlu1 %2722 }
 0x64b   : > { %v2678_v54 = vsel %vm910_vm2, %v6258_v17, 0.0 }
 0x64c   : > { %v2664_v9 = vmul.f32 1.442695, %v2652_v36  ;;  %2679 = vadd.xlane.f32.xlu0 %v2678_v54 }
 0x64d   : > { %v2647_v38 = vpop.xlane.xlu0 %2646 }
 0x64e   : > { %v6263_v4 = vpop.eup %4877  ;;  %4885 = vpow2.f32 %v2664_v9  ;;  %v2655_v19 = vsub.f32 %v6193_v63, %v2647_v38  ;;  %v6297_v36 = vpop.permute.xlu1 %2813 }
 0x64f   : > { %v6266_v29 = vpop.eup %4879  ;;  %v2672_v15 = vsel %vm910_vm2, %v6263_v4, 0.0 }
 0x650   : > { %v6270_v30 = vpop.eup %4881  ;;  %v2670_v16 = vmul.f32 1.442695, %v2655_v19  ;;  %2673 = vadd.xlane.f32.xlu0 %v2672_v15  ;;  %v2681_v12 = vsel %vm910_vm2, %v6266_v29, 0.0 }
 0x651   : > { %v2675_v5 = vsel %vm910_vm2, %v6270_v30, 0.0  ;;  %v2641_v24 = vpop.xlane.xlu0 %2640 }
 0x652   : > { %4887 = vpow2.f32 %v2670_v16  ;;  %2676 = vadd.xlane.f32.xlu1 %v2675_v5  ;;  %v2653_v26 = vsub.f32 %v6195_v34, %v2641_v24 }
 0x654   : > { %v6276_v35 = vpop.eup %4883  ;;  %2682 = vadd.xlane.f32.xlu0 %v2681_v12  ;;  %v2666_v37 = vmul.f32 1.442695, %v2653_v26 }
 0x655   : > { %v2690_v63 = vsel %vm910_vm2, %v6276_v35, 0.0  ;;  %v2721_v54 = vpop.permute.xlu0 %2720 }
 0x656   : > { %4889 = vpow2.f32 %v2666_v37 }
 0x658   : > { %v6280_v60 = vpop.eup %4885  ;;  %2691 = vadd.xlane.f32.xlu0 %v2690_v63 }
 0x659   : > { %v2684_v52 = vsel %vm910_vm2, %v6280_v60, 0.0 }
 0x65c   : > { %v6284_v62 = vpop.eup %4887  ;;  %2685 = vadd.xlane.f32.xlu0 %v2684_v52 }
 0x65d   : > { %v2693_v21 = vsel %vm910_vm2, %v6284_v62, 0.0 }
 0x660   : > { %2694 = vadd.xlane.f32.xlu0 %v2693_v21  ;;  %v6299_v9 = vpop.eup %4889 }
 0x661   : > { %v2687_v34 = vsel %vm910_vm2, %v6299_v9, 0.0 }
 0x663   : > { %2817 = vrot.lane.b32.xlu1 %v6077_v2, %s5007_s21 }
 0x676   : > { %2815 = vrot.lane.b32.xlu0 %v6061_v42, %s5007_s21 }
 0x678   : > { %v2376_v38 = vpop.xlane.xlu1 %2375 }
 0x67a   : > { %2805 = vrot.lane.b32.xlu0 %v6029_v57, %s5007_s21 }
 0x67c   : > { %v2394_v16 = vpop.xlane.xlu1 %2393 }
 0x67e   : > { %2809 = vrot.lane.b32.xlu0 %v6038_v46, %s5007_s21 }
 0x680   : > { %v2397_v12 = vpop.xlane.xlu1 %2396 }
 0x686   : > { %v2382_v19 = vpop.xlane.xlu0 %2381 }
 0x687   : > { %2688 = vadd.xlane.f32.xlu1 %v2687_v34 }
 0x68a   : > { %v2385_v15 = vpop.xlane.xlu0 %2384 }
 0x68b   : > { %4891 = vrcp.f32 %v2385_v15 }
 0x68c   : > { %4893 = vrcp.f32 %v2376_v38 }
 0x68d   : > { %4895 = vrcp.f32 %v2382_v19 }
 0x68e   : > { %v2379_v5 = vpop.xlane.xlu0 %2378 }
 0x68f   : > { %4897 = vrcp.f32 %v2379_v5 }
 0x690   : > { %4899 = vrcp.f32 %v2397_v12 }
 0x692   : > { %v2388_v63 = vpop.xlane.xlu0 %2387 }
 0x693   : > { %4901 = vrcp.f32 %v2388_v63 }
 0x694   : > { %4903 = vrcp.f32 %v2394_v16 }
 0x695   : > { %v4892_v52 = vpop.eup %4891 }
 0x696   : > { %v2391_v21 = vpop.xlane.xlu0 %2390  ;;  %v4894_v24 = vpop.eup %4893  ;;  %v2409_v34 = vmul.f32 %v4892_v52, %v6237_v41 }
 0x697   : > { %4905 = vrcp.f32 %v2391_v21  ;;  %v4896_v26 = vpop.eup %4895  ;;  %v2406_v38 = vmul.f32 %v4894_v24, %v6217_v11 }
 0x698   : > { %2819 = vrot.lane.b32.xlu1 %v6075_v1, %s5007_s21  ;;  %v2408_v15 = vmul.f32 %v4896_v26, %v6233_v40 }
 0x699   : > { %v4898_v37 = vpop.eup %4897 }
 0x69a   : > { %v2407_v19 = vmul.f32 %v4898_v37, %v6241_v39  ;;  %v2415_v5 = vpack.c.bf16 %v2409_v34, %v2408_v15  ;;  %v4900_v12 = vpop.eup %4899 }
 0x69b   : > { %v2413_v40 = vmul.f32 %v4900_v12, %v6227_v22 }
 0x69c   : > { %2807 = vrot.lane.b32.xlu1 %v6027_v55, %s5007_s21  ;;  %v2414_v16 = vpack.c.bf16 %v2407_v19, %v2406_v38 }
 0x69d   : > { %v4902_v63 = vpop.eup %4901 }
 0x69e   : > { %4309 = vmatprep.mubr.msk.bf16.mxu0 %vm910_vm2, %v2414_v16  ;;  %v4904_v21 = vpop.eup %4903  ;;  %v2410_v41 = vmul.f32 %v4902_v63, %v6245_v43 }
 0x69f   : > { %4310 = vmatmul.mubr.msk.bf16.vlgmr.msra.gmra.mrb[48].mxu0 %vm910_vm2, %v2415_v5  ;;  %v2412_v52 = vmul.f32 %v4904_v21, %v6222_v58  ;;  %v2834_v21 = vsel %vm2236_vm6, %v6297_v36, 0 }
 0x6a0   : > { %4334 = vmatpush3.bf16.msra.mxu0 %v6168_v14  ;;  %2811 = vrot.lane.b32.xlu1 %v6036_v8, %s5007_s21  ;;  %s327_s21 = scalar_lea.vmem %s6669_s7, %s6707_s28 }
 0x6a1   : > { %v4906_v11 = vpop.eup %4905  ;;  %4335 = vmatprep.subr.bf16.mxu0 %v6207_v13  ;;  %v2417_v26 = vpack.c.bf16 %v2413_v40, %v2412_v52 }
 0x6a2   : > { %v2411_v39 = vmul.f32 %v4906_v11, %v6249_v53 }
 0x6a4   : > { %4336 = vmatpush3.bf16.msra.mxu0 %v6207_v13  ;;  %v2416_v24 = vpack.c.bf16 %v2411_v39, %v2410_v41 }
 0x6a5   : > { %4337 = vmatprep.subr.bf16.mxu0 %v2721_v54 }
 0x6a6   : > { %4313 = vmatprep.mubr.msk.bf16.mxu0 %vm910_vm2, %v2416_v24 }
 0x6a7   : > { %4314 = vmatmul.mubr.msk.bf16.gmra.mrb[52].mxu0 %vm910_vm2, %v2417_v26 }
 0x6a8   : > { %4338 = vmatpush3.bf16.msra.mxu0 %v2721_v54 }
 0x6a9   : > { %4339 = vmatprep.subr.bf16.mxu0 %v2723_v10 }
 0x6ac   : > { %4340 = vmatpush3.bf16.msra.mxu0 %v2723_v10 }
 0x6ad   : > { %4470 = vmatprep.subr.msk.bf16.mxu0 %vm2236_vm6, %v6297_v36 }
 0x6d9   : > { %v2680_v14 = vpop.xlane.xlu0 %2679 }
 0x6dd   : > { %v2674_v22 = vpop.xlane.xlu0 %2673 }
 0x6de   : > { %4907 = vrcp.f32 %v2674_v22 }
 0x6df   : > { %4909 = vrcp.f32 %v2680_v14  ;;  %v2677_v58 = vpop.xlane.xlu1 %2676 }
 0x6e0   : > { %4911 = vrcp.f32 %v2677_v58 }
 0x6e1   : > { %v2683_v13 = vpop.xlane.xlu0 %2682 }
 0x6e2   : > { %4913 = vrcp.f32 %v2683_v13 }
 0x6e5   : > { %v2692_v43 = vpop.xlane.xlu0 %2691 }
 0x6e8   : > { %v4908_v53 = vpop.eup %4907 }
 0x6e9   : > { %v4910_v37 = vpop.eup %4909  ;;  %v2686_v34 = vpop.xlane.xlu0 %2685  ;;  %v2704_v54 = vmul.f32 %v4908_v53, %v6263_v4 }
 0x6ea   : > { %v4912_v38 = vpop.eup %4911  ;;  %v2706_v15 = vmul.f32 %v4910_v37, %v6258_v17 }
 0x6eb   : > { %v2705_v10 = vmul.f32 %v4912_v38, %v6270_v30  ;;  %v2818_v30 = vpop.permute.xlu1 %2817 }
 0x6ec   : > { %v4914_v19 = vpop.eup %4913  ;;  %v2840_v17 = vsel %vm2236_vm6, %v2818_v30, 0 }
 0x6ed   : > { %v2707_v16 = vmul.f32 %v4914_v19, %v6266_v29  ;;  %v2695_v5 = vpop.xlane.xlu0 %2694  ;;  %v2712_v12 = vpack.c.bf16 %v2705_v10, %v2704_v54 }
 0x6ee   : > { %4915 = vrcp.f32 %v2695_v5 }
 0x6ef   : > { %v2713_v63 = vpack.c.bf16 %v2707_v16, %v2706_v15  ;;  %4341 = vmatprep.mubr.msk.bf16.mxu0 %vm910_vm2, %v2712_v12  ;;  %4917 = vrcp.f32 %v2686_v34 }
 0x6f0   : > { %4919 = vrcp.f32 %v2692_v43 }
 0x6f1   : > { %4342 = vmatmul.mubr.msk.bf16.vlgmr.msra.gmra.mrb[56].mxu0 %vm910_vm2, %v2713_v63  ;;  %v2816_v11 = vpop.permute.xlu0 %2815 }
 0x6f2   : > { %4350 = vmatpush3.bf16.xpose.msra.mxu0 %v2834_v21  ;;  %v2837_v4 = vsel %vm2236_vm6, %v2816_v11, 0 }
 0x6f3   : > { %4471 = vmatprep.subr.msk.bf16.mxu0 %vm2236_vm6, %v2816_v11 }
 0x6f5   : > { %v2806_v53 = vpop.permute.xlu0 %2805 }
 0x6f8   : > { %v4916_v41 = vpop.eup %4915 }
 0x6f9   : > { %v4918_v39 = vpop.eup %4917  ;;  %v2711_v26 = vmul.f32 %v4916_v41, %v6284_v62  ;;  %v2810_v34 = vpop.permute.xlu0 %2809 }
 0x6fa   : > { %4352 = vmatpush3.bf16.xpose.msra.mxu0 %v2837_v4  ;;  %v4920_v52 = vpop.eup %4919  ;;  %v2708_v14 = vmul.f32 %v4918_v39, %v6280_v60 }
 0x6fb   : > { %4472 = vmatprep.subr.msk.bf16.mxu0 %vm2236_vm6, %v2818_v30  ;;  %v2710_v58 = vmul.f32 %v4920_v52, %v6276_v35 }
 0x6fd   : > { %v2715_v43 = vpack.c.bf16 %v2711_v26, %v2710_v58 }
 0x702   : > { %4354 = vmatpush3.bf16.xpose.msra.mxu0 %v2840_v17 }
 0x714   : > { %v2689_v29 = vpop.xlane.xlu1 %2688 }
 0x715   : > { %4921 = vrcp.f32 %v2689_v29 }
 0x718   : > { %v2820_v36 = vpop.permute.xlu1 %2819 }
 0x719   : > { %v2843_v40 = vsel %vm2236_vm6, %v2820_v36, 0  ;;  %4473 = vmatprep.subr.msk.bf16.mxu0 %vm2236_vm6, %v2820_v36 }
 0x71a   : > { %4356 = vmatpush3.bf16.xpose.msra.mxu0 %v2843_v40 }
 0x71c   : > { %v2808_v37 = vpop.permute.xlu1 %2807 }
 0x71f   : > { %v4922_v24 = vpop.eup %4921 }
 0x720   : > { %v2709_v22 = vmul.f32 %v4922_v24, %v6299_v9  ;;  %v2812_v60 = vpop.permute.xlu1 %2811 }
 0x722   : > { %v2714_v13 = vpack.c.bf16 %v2709_v22, %v2708_v14 }
 0x724   : > { %4345 = vmatprep.mubr.msk.bf16.mxu0 %vm910_vm2, %v2714_v13 }
 0x725   : > { %4346 = vmatmul.mubr.msk.bf16.gmra.mrb[60].mxu0 %vm910_vm2, %v2715_v43 }
 0x726   : > { %4357 = vmatprep.mubr.msk.bf16.mxu0 %vm2236_vm6, %v2806_v53 }
 0x72d   : > { %4358 = vmatmul.mubr.msk.bf16.vlgmr.msra.gmra.mrb[64].mxu0 %vm2236_vm6, %v2808_v37 }
 0x72e   : > { %4361 = vmatprep.mubr.msk.bf16.mxu0 %vm2236_vm6, %v2810_v34 }
 0x735   : > { %4362 = vmatmul.mubr.msk.bf16.gmra.mrb[68].mxu0 %vm2236_vm6, %v2812_v60 }
 0x772   : > { %v6350_v62 = vpop.f32.mrb[48].mxu0 }
 0x773   : > { %v6352_v35 = vpop.f32.mrb[49].mxu0 }
 0x774   : > { %v6354_v9 = vpop.f32.mrb[50].mxu0 }
 0x775   : > { %v6356_v38 = vpop.f32.mrb[51].mxu0 }
 0x77a   : > { %v6358_v54 = vpop.f32.mrb[52].mxu0 }
 0x77b   : > { %v6360_v10 = vpop.f32.mrb[53].mxu0 }
 0x77c   : > { %v6362_v19 = vpop.f32.mrb[54].mxu0 }
 0x77d   : > { %v6364_v15 = vpop.f32.mrb[55].mxu0 }
 0x7c4   : > { %v6366_v16 = vpop.f32.mrb[56].mxu0 }
 0x7c5   : > { %v6368_v5 = vpop.f32.mrb[57].mxu0 }
 0x7c6   : > { %v6370_v12 = vpop.f32.mrb[58].mxu0 }
 0x7c7   : > { %v4747_v63 = vpack.i.bf16 %v6370_v12, %v6366_v16  ;;  %v6374_v21 = vpop.f32.mrb[59].mxu0 }
 0x7c8   : > { %v4742_v11 = vpack.i.bf16 %v6374_v21, %v6368_v5 }
 0x7f8   : > { %v6378_v4 = vpop.f32.mrb[60].mxu0 }
 0x7f9   : > { %v6380_v30 = vpop.f32.mrb[61].mxu0 }
 0x7fa   : > { %v6382_v17 = vpop.f32.mrb[62].mxu0 }
 0x7fb   : > { %v6386_v36 = vpop.f32.mrb[63].mxu0 }
 0x800   : > { %v4359_v41 = vpop.f32.mrb[64].mxu0 }
 0x801   : > { %v2879_v39 = vpop.f32.mrb[65].mxu0  ;;  %v2916_v52 = vsel %vm910_vm2, %v4359_v41, -inf }
 0x802   : > { %2917 = vmax.xlane.f32.xlu0 %v2916_v52  ;;  %v4360_v24 = vpop.f32.mrb[66].mxu0  ;;  %v2910_v22 = vsel %vm910_vm2, %v2879_v39, -inf }
 0x803   : > { %v2882_v26 = vpop.f32.mrb[67].mxu0  ;;  %v2919_v43 = vsel %vm910_vm2, %v4360_v24, -inf }
 0x804   : > { %v2913_v14 = vsel %vm910_vm2, %v2882_v26, -inf }
 0x805   : > { %2914 = vmax.xlane.f32.xlu1 %v2913_v14 }
 0x806   : > { %2911 = vmax.xlane.f32.xlu0 %v2910_v22 }
 0x808   : > { %v4363_v58 = vpop.f32.mrb[68].mxu0 }
 0x809   : > { %v2895_v13 = vpop.f32.mrb[69].mxu0  ;;  %v2928_v53 = vsel %vm910_vm2, %v4363_v58, -inf }
 0x80a   : > { %2920 = vmax.xlane.f32.xlu0 %v2919_v43  ;;  %2929 = vmax.xlane.f32.xlu1 %v2928_v53  ;;  %v4364_v37 = vpop.f32.mrb[70].mxu0  ;;  %v2922_v52 = vsel %vm910_vm2, %v2895_v13, -inf }
 0x80b   : > { %v6395_v34 = vpop.f32.mrb[71].mxu0  ;;  %v2931_v14 = vsel %vm910_vm2, %v4364_v37, -inf }
 0x80c   : > { %v2925_v60 = vsel %vm910_vm2, %v6395_v34, -inf }
 0x80e   : > { %2923 = vmax.xlane.f32.xlu1 %v2922_v52  ;;  %2926 = vmax.xlane.f32.xlu0 %v2925_v60 }
 0x812   : > { %2932 = vmax.xlane.f32.xlu0 %v2931_v14 }
 0x81f   : > { %3002 = vrot.lane.b32.xlu1 %v6115_v50, %s5008_s24 }
 0x823   : > { %3006 = vrot.lane.b32.xlu1 %v6117_v7, %s5008_s24 }
 0x827   : > { %3008 = vrot.lane.b32.xlu1 %v6121_v51, %s5008_s24 }
 0x828   : > { %3004 = vrot.lane.b32.xlu0 %v6119_v44, %s5008_s24 }
 0x82b   : > { %3099 = vrot.lane.b32.xlu1 %v6063_v59, %s5009_s25 }
 0x88f   : > { %v2918_v22 = vpop.xlane.xlu0 %2917 }
 0x890   : > { %v2936_v43 = vsub.f32 %v4359_v41, %v2918_v22 }
 0x892   : > { %v2946_v53 = vmul.f32 1.442695, %v2936_v43  ;;  %v2915_v60 = vpop.xlane.xlu1 %2914 }
 0x893   : > { %v2912_v52 = vpop.xlane.xlu0 %2911  ;;  %v2935_v25 = vsub.f32 %v2882_v26, %v2915_v60 }
 0x894   : > { %4923 = vpow2.f32 %v2946_v53  ;;  %v2934_v14 = vsub.f32 %v2879_v39, %v2912_v52 }
 0x895   : > { %v2944_v32 = vmul.f32 1.442695, %v2935_v25 }
 0x896   : > { %v2942_v33 = vmul.f32 1.442695, %v2934_v14 }
 0x897   : > { %v2930_v48 = vpop.xlane.xlu1 %2929  ;;  %v2921_v23 = vpop.xlane.xlu0 %2920 }
 0x898   : > { %4925 = vpow2.f32 %v2942_v33  ;;  %v2937_v0 = vsub.f32 %v4360_v24, %v2921_v23  ;;  %v2940_v6 = vsub.f32 %v4363_v58, %v2930_v48 }
 0x89a   : > { %v2948_v61 = vmul.f32 1.442695, %v2937_v0  ;;  %v2954_v41 = vmul.f32 1.442695, %v2940_v6 }
 0x89b   : > { %v2924_v3 = vpop.xlane.xlu1 %2923  ;;  %v2927_v40 = vpop.xlane.xlu0 %2926 }
 0x89c   : > { %4927 = vpow2.f32 %v2948_v61  ;;  %v2938_v22 = vsub.f32 %v2895_v13, %v2924_v3 }
 0x89d   : > { %4929 = vpow2.f32 %v2944_v32 }
 0x89e   : > { %v6407_v59 = vpop.eup %4923  ;;  %4931 = vpow2.f32 %v2954_v41  ;;  %v2950_v0 = vmul.f32 1.442695, %v2938_v22 }
 0x89f   : > { %v3003_v43 = vpop.permute.xlu1 %3002  ;;  %v2933_v53 = vpop.xlane.xlu0 %2932  ;;  %v2964_v39 = vsel %vm910_vm2, %v6407_v59, 0.0 }
 0x8a0   : > { %4365 = vmatprep.subr.bf16.mxu1 %v3003_v43  ;;  %2965 = vadd.xlane.f32.xlu1 %v2964_v39  ;;  %v2941_v33 = vsub.f32 %v4364_v37, %v2933_v53  ;;  %4933 = vpow2.f32 %v2950_v0 }
 0x8a1   : > { %4366 = vmatpush3.bf16.msra.mxu1 %v3003_v43  ;;  %v2939_v43 = vsub.f32 %v6395_v34, %v2927_v40 }
 0x8a2   : > { %v6411_v23 = vpop.eup %4925  ;;  %v2956_v6 = vmul.f32 1.442695, %v2941_v33 }
 0x8a3   : > { %v3007_v48 = vpop.permute.xlu1 %3006  ;;  %v3005_v61 = vpop.permute.xlu0 %3004  ;;  %v2958_v32 = vsel %vm910_vm2, %v6411_v23, 0.0  ;;  %v2952_v53 = vmul.f32 1.442695, %v2939_v43 }
 0x8a4   : > { %2959 = vadd.xlane.f32.xlu1 %v2958_v32  ;;  %4367 = vmatprep.subr.bf16.mxu1 %v3005_v61  ;;  %4935 = vpow2.f32 %v2956_v6 }
 0x8a5   : > { %4368 = vmatpush3.bf16.msra.mxu1 %v3005_v61  ;;  %4937 = vpow2.f32 %v2952_v53 }
 0x8a6   : > { %4369 = vmatprep.subr.bf16.mxu1 %v3007_v48  ;;  %v4928_v3 = vpop.eup %4927 }
 0x8a7   : > { %v3009_v25 = vpop.permute.xlu1 %3008  ;;  %v2967_v24 = vsel %vm910_vm2, %v4928_v3, 0.0  ;;  %v4930_v26 = vpop.eup %4929 }
 0x8a8   : > { %2968 = vadd.xlane.f32.xlu0 %v2967_v24  ;;  %v2961_v58 = vsel %vm910_vm2, %v4930_v26, 0.0  ;;  %v6417_v13 = vpop.eup %4931 }
 0x8a9   : > { %4370 = vmatpush3.bf16.msra.mxu1 %v3007_v48  ;;  %v2976_v60 = vsel %vm910_vm2, %v6417_v13, 0.0 }
 0x8aa   : > { %4371 = vmatprep.subr.bf16.mxu1 %v3009_v25  ;;  %v6422_v52 = vpop.eup %4933 }
 0x8ab   : > { %v3100_v37 = vpop.permute.xlu1 %3099  ;;  %v2970_v14 = vsel %vm910_vm2, %v6422_v52, 0.0 }
 0x8ac   : > { %2962 = vadd.xlane.f32.xlu0 %v2961_v58 }
 0x8ad   : > { %4372 = vmatpush3.bf16.msra.mxu1 %v3009_v25 }
 0x8ae   : > { %4474 = vmatprep.subr.msk.bf16.mxu1 %vm2236_vm6, %v3100_v37  ;;  %v6426_v41 = vpop.eup %4935 }
 0x8af   : > { %v2979_v22 = vsel %vm910_vm2, %v6426_v41, 0.0  ;;  %v4938_v39 = vpop.eup %4937 }
 0x8b0   : > { %2977 = vadd.xlane.f32.xlu0 %v2976_v60 }
 0x8b4   : > { %2971 = vadd.xlane.f32.xlu0 %v2970_v14  ;;  %v3120_v14 = vsel %vm2236_vm6, %v3100_v37, 0 }
 0x8b5   : > { %3103 = vrot.lane.b32.xlu1 %v6077_v2, %s5009_s25  ;;  %v2973_v2 = vsel %vm910_vm2, %v4938_v39, 0.0 }
 0x8b8   : > { %2980 = vadd.xlane.f32.xlu0 %v2979_v22 }
 0x8ce   : > { %3101 = vrot.lane.b32.xlu0 %v6061_v42, %s5009_s25 }
 0x8d2   : > { %3091 = vrot.lane.b32.xlu0 %v6029_v57, %s5009_s25 }
 0x8d6   : > { %3095 = vrot.lane.b32.xlu0 %v6038_v46, %s5009_s25 }
 0x8d9   : > { %2974 = vadd.xlane.f32.xlu1 %v2973_v2 }
 0x8ea   : > { %3105 = vrot.lane.b32.xlu1 %v6075_v1, %s5009_s25 }
 0x8ee   : > { %3093 = vrot.lane.b32.xlu1 %v6027_v55, %s5009_s25 }
 0x8f2   : > { %3097 = vrot.lane.b32.xlu1 %v6036_v8, %s5009_s25 }
 0x92d   : > { %v2966_v42 = vpop.xlane.xlu1 %2965 }
 0x931   : > { %v2960_v40 = vpop.xlane.xlu1 %2959 }
 0x935   : > { %v2969_v34 = vpop.xlane.xlu0 %2968  ;;  %v3104_v22 = vpop.permute.xlu1 %3103 }
 0x936   : > { %4939 = vrcp.f32 %v2969_v34 }
 0x937   : > { %4941 = vrcp.f32 %v2960_v40 }
 0x938   : > { %4943 = vrcp.f32 %v2966_v42 }
 0x939   : > { %v2963_v57 = vpop.xlane.xlu0 %2962 }
 0x93a   : > { %4945 = vrcp.f32 %v2963_v57 }
 0x93d   : > { %v2978_v46 = vpop.xlane.xlu0 %2977 }
 0x940   : > { %v4940_v0 = vpop.eup %4939 }
 0x941   : > { %v2972_v33 = vpop.xlane.xlu0 %2971  ;;  %v4942_v48 = vpop.eup %4941  ;;  %v2993_v32 = vmul.f32 %v4940_v0, %v4928_v3 }
 0x942   : > { %v4944_v61 = vpop.eup %4943  ;;  %v2990_v55 = vmul.f32 %v4942_v48, %v6411_v23 }
 0x943   : > { %v2992_v8 = vmul.f32 %v4944_v61, %v6407_v59  ;;  %v3126_v59 = vsel %vm2236_vm6, %v3104_v22, 0 }
 0x944   : > { %v4946_v1 = vpop.eup %4945 }
 0x945   : > { %v2981_v6 = vpop.xlane.xlu0 %2980  ;;  %v2991_v25 = vmul.f32 %v4946_v1, %v4930_v26  ;;  %v2999_v58 = vpack.c.bf16 %v2993_v32, %v2992_v8 }
 0x946   : > { %4947 = vrcp.f32 %v2981_v6 }
 0x947   : > { %v2998_v24 = vpack.c.bf16 %v2991_v25, %v2990_v55  ;;  %4949 = vrcp.f32 %v2972_v33 }
 0x948   : > { %4951 = vrcp.f32 %v2978_v46 }
 0x949   : > { %4373 = vmatprep.mubr.msk.bf16.mxu1 %vm910_vm2, %v2998_v24  ;;  %v3102_v60 = vpop.permute.xlu0 %3101 }
 0x94a   : > { %4374 = vmatmul.mubr.msk.bf16.vlgmr.msra.gmra.mrb[48].mxu1 %vm910_vm2, %v2999_v58  ;;  %v3123_v3 = vsel %vm2236_vm6, %v3102_v60, 0 }
 0x94b   : > { %4382 = vmatpush3.bf16.xpose.msra.mxu1 %v3120_v14 }
 0x94c   : > { %4475 = vmatprep.subr.msk.bf16.mxu1 %vm2236_vm6, %v3102_v60 }
 0x94d   : > { %v3092_v48 = vpop.permute.xlu0 %3091 }
 0x950   : > { %v4948_v43 = vpop.eup %4947 }
 0x951   : > { %v4950_v53 = vpop.eup %4949  ;;  %v2997_v40 = vmul.f32 %v4948_v43, %v6426_v41  ;;  %v3096_v1 = vpop.permute.xlu0 %3095 }
 0x952   : > { %v4952_v2 = vpop.eup %4951  ;;  %v2994_v34 = vmul.f32 %v4950_v53, %v6422_v52 }
 0x953   : > { %4384 = vmatpush3.bf16.xpose.msra.mxu1 %v3123_v3  ;;  %v2996_v0 = vmul.f32 %v4952_v2, %v6417_v13 }
 0x954   : > { %4476 = vmatprep.subr.msk.bf16.mxu1 %vm2236_vm6, %v3104_v22 }
 0x955   : > { %v3001_v33 = vpack.c.bf16 %v2997_v40, %v2996_v0 }
 0x95b   : > { %4386 = vmatpush3.bf16.xpose.msra.mxu1 %v3126_v59 }
 0x966   : > { %v2975_v23 = vpop.xlane.xlu1 %2974 }
 0x967   : > { %4953 = vrcp.f32 %v2975_v23 }
 0x96a   : > { %v3106_v26 = vpop.permute.xlu1 %3105 }
 0x96b   : > { %v3129_v37 = vsel %vm2236_vm6, %v3106_v26, 0  ;;  %4477 = vmatprep.subr.msk.bf16.mxu1 %vm2236_vm6, %v3106_v26 }
 0x96c   : > { %4388 = vmatpush3.bf16.xpose.msra.mxu1 %v3129_v37 }
 0x96e   : > { %v3094_v61 = vpop.permute.xlu1 %3093 }
 0x971   : > { %v4954_v42 = vpop.eup %4953 }
 0x972   : > { %v2995_v57 = vmul.f32 %v4954_v42, %v4938_v39  ;;  %v3098_v41 = vpop.permute.xlu1 %3097 }
 0x974   : > { %v3000_v46 = vpack.c.bf16 %v2995_v57, %v2994_v34 }
 0x976   : > { %4377 = vmatprep.mubr.msk.bf16.mxu1 %vm910_vm2, %v3000_v46 }
 0x977   : > { %4378 = vmatmul.mubr.msk.bf16.gmra.mrb[52].mxu1 %vm910_vm2, %v3001_v33 }
 0x978   : > { %4389 = vmatprep.mubr.msk.bf16.mxu1 %vm2236_vm6, %v3092_v48 }
 0x97f   : > { %4390 = vmatmul.mubr.msk.bf16.vlgmr.msra.gmra.mrb[56].mxu1 %vm2236_vm6, %v3094_v61 }
 0x980   : > { %4393 = vmatprep.mubr.msk.bf16.mxu1 %vm2236_vm6, %v3096_v1 }
 0x987   : > { %4394 = vmatmul.mubr.msk.bf16.gmra.mrb[60].mxu1 %vm2236_vm6, %v3098_v41 }
 0xa1d   : > { %v6466_v52 = vpop.f32.mrb[48].mxu1 }
 0xa1e   : > { %v6468_v13 = vpop.f32.mrb[49].mxu1 }
 0xa1f   : > { %v6470_v39 = vpop.f32.mrb[50].mxu1 }
 0xa20   : > { %v6474_v6 = vpop.f32.mrb[51].mxu1 }
 0xa21   : > { %v4752_v55 = vpack.i.bf16 %v6474_v6, %v6468_v13 }
 0xa4a   : > { %v6478_v25 = vpop.f32.mrb[52].mxu1 }
 0xa4b   : > { %v6480_v8 = vpop.f32.mrb[53].mxu1 }
 0xa4c   : > { %v6482_v24 = vpop.f32.mrb[54].mxu1 }
 0xa4d   : > { %v6486_v60 = vpop.f32.mrb[55].mxu1 }
 0xa52   : > { %v4391_v3 = vpop.f32.mrb[56].mxu1 }
 0xa53   : > { %v3165_v22 = vpop.f32.mrb[57].mxu1  ;;  %v3202_v43 = vsel %vm910_vm2, %v4391_v3, -inf }
 0xa54   : > { %v4392_v59 = vpop.f32.mrb[58].mxu1  ;;  %v3196_v23 = vsel %vm910_vm2, %v3165_v22, -inf }
 0xa55   : > { %3197 = vmax.xlane.f32.xlu0 %v3196_v23  ;;  %v3168_v26 = vpop.f32.mrb[59].mxu1  ;;  %v3205_v40 = vsel %vm910_vm2, %v4392_v59, -inf }
 0xa56   : > { %v3199_v37 = vsel %vm910_vm2, %v3168_v26, -inf }
 0xa57   : > { %3200 = vmax.xlane.f32.xlu1 %v3199_v37 }
 0xa59   : > { %3203 = vmax.xlane.f32.xlu0 %v3202_v43 }
 0xa5a   : > { %v4395_v53 = vpop.f32.mrb[60].mxu1 }
 0xa5b   : > { %v3181_v2 = vpop.f32.mrb[61].mxu1  ;;  %v3214_v0 = vsel %vm910_vm2, %v4395_v53, -inf }
 0xa5c   : > { %v4396_v42 = vpop.f32.mrb[62].mxu1  ;;  %v3208_v34 = vsel %vm910_vm2, %v3181_v2, -inf }
 0xa5d   : > { %3206 = vmax.xlane.f32.xlu0 %v3205_v40  ;;  %3209 = vmax.xlane.f32.xlu1 %v3208_v34  ;;  %v3184_v57 = vpop.f32.mrb[63].mxu1  ;;  %v3217_v33 = vsel %vm910_vm2, %v4396_v42, -inf }
 0xa5e   : > { %v3211_v46 = vsel %vm910_vm2, %v3184_v57, -inf }
 0xa61   : > { %3215 = vmax.xlane.f32.xlu1 %v3214_v0  ;;  %3212 = vmax.xlane.f32.xlu0 %v3211_v46 }
 0xa65   : > { %3218 = vmax.xlane.f32.xlu0 %v3217_v33 }
 0xa72   : > { %3288 = vrot.lane.b32.xlu1 %v6115_v50, %s5010_s26 }
 0xa76   : > { %3290 = vrot.lane.b32.xlu1 %v6119_v44, %s5010_s26 }
 0xae2   : > { %v3198_v48 = vpop.xlane.xlu0 %3197 }
 0xae3   : > { %v3220_v61 = vsub.f32 %v3165_v22, %v3198_v48 }
 0xae4   : > { %v3201_v1 = vpop.xlane.xlu1 %3200 }
 0xae5   : > { %v3228_v37 = vmul.f32 1.442695, %v3220_v61  ;;  %v3221_v40 = vsub.f32 %v3168_v26, %v3201_v1 }
 0xae6   : > { %v3204_v41 = vpop.xlane.xlu0 %3203 }
 0xae7   : > { %v3222_v23 = vsub.f32 %v4391_v3, %v3204_v41  ;;  %v3230_v14 = vmul.f32 1.442695, %v3221_v40 }
 0xae9   : > { %v3232_v43 = vmul.f32 1.442695, %v3222_v23 }
 0xaea   : > { %v3210_v34 = vpop.xlane.xlu1 %3209  ;;  %v3207_v0 = vpop.xlane.xlu0 %3206 }
 0xaeb   : > { %4955 = vpow2.f32 %v3232_v43  ;;  %v3223_v46 = vsub.f32 %v4392_v59, %v3207_v0  ;;  %v3224_v44 = vsub.f32 %v3181_v2, %v3210_v34 }
 0xaec   : > { %4957 = vpow2.f32 %v3228_v37 }
 0xaed   : > { %v3234_v33 = vmul.f32 1.442695, %v3223_v46  ;;  %v3236_v26 = vmul.f32 1.442695, %v3224_v44 }
 0xaee   : > { %v3216_v58 = vpop.xlane.xlu1 %3215  ;;  %v3213_v50 = vpop.xlane.xlu0 %3212 }
 0xaef   : > { %v3226_v29 = vsub.f32 %v4395_v53, %v3216_v58  ;;  %4959 = vpow2.f32 %v3234_v33 }
 0xaf0   : > { %4961 = vpow2.f32 %v3230_v14 }
 0xaf1   : > { %v3240_v22 = vmul.f32 1.442695, %v3226_v29  ;;  %v3225_v29 = vsub.f32 %v3184_v57, %v3213_v50 }
 0xaf2   : > { %v3289_v48 = vpop.permute.xlu1 %3288  ;;  %v3219_v32 = vpop.xlane.xlu0 %3218 }
 0xaf3   : > { %4397 = vmatprep.subr.bf16.mxu0 %v3289_v48  ;;  %4963 = vpow2.f32 %v3240_v22  ;;  %v3227_v61 = vsub.f32 %v4396_v42, %v3219_v32  ;;  %v3238_v32 = vmul.f32 1.442695, %v3225_v29 }
 0xaf4   : > { %4398 = vmatpush3.bf16.msra.mxu0 %v3289_v48  ;;  %4965 = vpow2.f32 %v3236_v26 }
 0xaf5   : > { %v6502_v3 = vpop.eup %4955  ;;  %v3242_v14 = vmul.f32 1.442695, %v3227_v61 }
 0xaf6   : > { %v3291_v59 = vpop.permute.xlu1 %3290  ;;  %v3250_v1 = vsel %vm910_vm2, %v6502_v3, 0.0  ;;  %v4958_v41 = vpop.eup %4957 }
 0xaf7   : > { %4399 = vmatprep.subr.bf16.mxu0 %v3291_v59  ;;  %3251 = vadd.xlane.f32.xlu1 %v3250_v1  ;;  %v3244_v53 = vsel %vm910_vm2, %v4958_v41, 0.0  ;;  %4967 = vpow2.f32 %v3242_v14 }
 0xaf8   : > { %4400 = vmatpush3.bf16.msra.mxu0 %v3291_v59  ;;  %4969 = vpow2.f32 %v3238_v32 }
 0xaf9   : > { %v4960_v58 = vpop.eup %4959 }
 0xafa   : > { %v3253_v2 = vsel %vm910_vm2, %v4960_v58, 0.0  ;;  %v4962_v23 = vpop.eup %4961 }
 0xafb   : > { %3245 = vadd.xlane.f32.xlu1 %v3244_v53  ;;  %3254 = vadd.xlane.f32.xlu0 %v3253_v2  ;;  %v3247_v42 = vsel %vm910_vm2, %v4962_v23, 0.0 }
 0xafd   : > { %v6509_v37 = vpop.eup %4963 }
 0xafe   : > { %v3262_v43 = vsel %vm910_vm2, %v6509_v37, 0.0  ;;  %v4966_v57 = vpop.eup %4965 }
 0xaff   : > { %3248 = vadd.xlane.f32.xlu0 %v3247_v42  ;;  %v3256_v40 = vsel %vm910_vm2, %v4966_v57, 0.0 }
 0xb01   : > { %v4968_v34 = vpop.eup %4967 }
 0xb02   : > { %v3265_v0 = vsel %vm910_vm2, %v4968_v34, 0.0  ;;  %v4970_v46 = vpop.eup %4969 }
 0xb03   : > { %3263 = vadd.xlane.f32.xlu0 %v3262_v43  ;;  %v3259_v33 = vsel %vm910_vm2, %v4970_v46, 0.0 }
 0xb07   : > { %3257 = vadd.xlane.f32.xlu0 %v3256_v40 }
 0xb0b   : > { %3266 = vadd.xlane.f32.xlu0 %v3265_v0 }
 0xb0c   : > { %3294 = vrot.lane.b32.xlu1 %v6121_v51, %s5010_s26  ;;  %v6690_v51 = vpack.i.bf16 %v6470_v39, %v6466_v52 }
 0xb0f   : > { %3260 = vadd.xlane.f32.xlu0 %v3259_v33 }
 0xb10   : > { %4743 = vrot.lane.b32.xlu1 %v4742_v11, %s5011_s29 }
 0xb14   : > { %4748 = vrot.lane.b32.xlu1 %v4747_v63, %s5011_s29 }
 0xb18   : > { %4753 = vrot.lane.b32.xlu1 %v4752_v55, %s5012_s30 }
 0xb1c   : > { %4758 = vrot.lane.b32.xlu1 %v6690_v51, %s5012_s30 }
 0xb25   : > { %3292 = vrot.lane.b32.xlu0 %v6117_v7, %s5010_s26 }
 0xb84   : > { %v3252_v5 = vpop.xlane.xlu1 %3251 }
 0xb88   : > { %v3246_v21 = vpop.xlane.xlu1 %3245  ;;  %v3255_v11 = vpop.xlane.xlu0 %3254 }
 0xb89   : > { %4971 = vrcp.f32 %v3246_v21 }
 0xb8c   : > { %v3249_v16 = vpop.xlane.xlu0 %3248  ;;  %v3295_v26 = vpop.permute.xlu1 %3294 }
 0xb8d   : > { %4973 = vrcp.f32 %v3249_v16 }
 0xb8e   : > { %4975 = vrcp.f32 %v3255_v11  ;;  %v6692_v11 = vpack.i.bf16 %v6386_v36, %v6380_v30 }
 0xb8f   : > { %4977 = vrcp.f32 %v3252_v5  ;;  %v6691_v5 = vpack.i.bf16 %v6382_v17, %v6378_v4  ;;  %v6694_v4 = vpack.i.bf16 %v6486_v60, %v6480_v8 }
 0xb90   : > { %v3264_v12 = vpop.xlane.xlu0 %3263  ;;  %v4744_v17 = vpop.permute.xlu1 %4743 }
 0xb93   : > { %v4972_v50 = vpop.eup %4971 }
 0xb94   : > { %v3258_v63 = vpop.xlane.xlu0 %3257  ;;  %v3276_v55 = vmul.f32 %v4972_v50, %v4958_v41 }
 0xb95   : > { %4979 = vrcp.f32 %v3258_v63 }
 0xb97   : > { %v4974_v13 = vpop.eup %4973 }
 0xb98   : > { %v3267_v6 = vpop.xlane.xlu0 %3266  ;;  %v3277_v44 = vmul.f32 %v4974_v13, %v4962_v23  ;;  %v4976_v39 = vpop.eup %4975  ;;  %v6693_v13 = vpack.i.bf16 %v6482_v24, %v6478_v25 }
 0xb99   : > { %v4978_v48 = vpop.eup %4977  ;;  %v3279_v61 = vmul.f32 %v4976_v39, %v4960_v58 }
 0xb9a   : > { %v3284_v52 = vpack.c.bf16 %v3277_v44, %v3276_v55  ;;  %v3278_v1 = vmul.f32 %v4978_v48, %v6502_v3  ;;  %v4857_v3 = vld [vmem:[%s6666_s4 + $0x10] sm:$0xff]   ;;  %v4746_v55 = vunpack.i.h.bf16 %v4744_v17  ;;  %v4745_v44 = vunpack.i.l.bf16 %v4744_v17 }
 0xb9c   : > { %4405 = vmatprep.mubr.msk.bf16.mxu0 %vm910_vm2, %v3284_v52  ;;  %v3261_v7 = vpop.xlane.xlu0 %3260  ;;  %v3285_v29 = vpack.c.bf16 %v3279_v61, %v3278_v1  ;;  %v3474_v24 = vsel %vm2236_vm6, %v6356_v38, %v4746_v55  ;;  %v3473_v8 = vsel %vm2236_vm6, %v6352_v35, %v4745_v44 }
 0xb9d   : > { %4981 = vrcp.f32 %v3261_v7 }
 0xb9e   : > { %4983 = vrcp.f32 %v3267_v6  ;;  %v4749_v6 = vpop.permute.xlu1 %4748 }
 0xb9f   : > { %4985 = vrcp.f32 %v3264_v12  ;;  %v4980_v59 = vpop.eup %4979  ;;  %v4751_v52 = vunpack.i.h.bf16 %v4749_v6  ;;  %v4750_v7 = vunpack.i.l.bf16 %v4749_v6 }
 0xba0   : > { %v3293_v22 = vpop.permute.xlu0 %3292  ;;  %v3280_v53 = vmul.f32 %v4980_v59, %v4966_v57  ;;  %v4858_v57 = vld [vmem:[%s6666_s4 + $0x18] sm:$0xff]  }
 0xba1   : > { %4401 = vmatprep.subr.bf16.mxu0 %v3293_v22  ;;  %v3475_v61 = vsel %vm2236_vm6, %v6350_v62, %v4750_v7 }
 0xba2   : > { %4402 = vmatpush3.bf16.msra.mxu0 %v3293_v22  ;;  %v4754_v30 = vpop.permute.xlu1 %4753 }
 0xba3   : > { %4403 = vmatprep.subr.bf16.mxu0 %v3295_v26  ;;  %v4756_v48 = vunpack.i.h.bf16 %v4754_v30  ;;  %v4755_v25 = vunpack.i.l.bf16 %v4754_v30 }
 0xba5   : > { %v3482_v35 = vsel %vm3481_vm8, %v3473_v8, %v4755_v25  ;;  %v6604_v25 = vld [vmem:[%s6668_s6 + $0x8] sm:$0x3]  ;;  %v3510_v8 = vsub.s32 7, %v5153_v20  ;;  %v6698_v20 = vmax.f32 %v5894_v27, 0.0 }
 0xba6   : > { %4404 = vmatpush3.bf16.msra.mxu0 %v3295_v26  ;;  %v4759_v36 = vpop.permute.xlu1 %4758  ;;  %v3476_v26 = vsel %vm2236_vm6, %v6354_v9, %v4751_v52 }
 0xba7   : > { %v4982_v41 = vpop.eup %4981  ;;  %4413 = vmatprep.subr.bf16.mxu0 %v4857_v3  ;;  %v4761_v39 = vunpack.i.h.bf16 %v4759_v36  ;;  %v4760_v22 = vunpack.i.l.bf16 %v4759_v36 }
 0xba8   : > { %v4984_v14 = vpop.eup %4983  ;;  %v3281_v2 = vmul.f32 %v4982_v41, %v4970_v46 }
 0xba9   : > { %4406 = vmatmul.mubr.msk.bf16.vlgmr.msra.gmra.mrb[72].mxu0 %vm910_vm2, %v3285_v29  ;;  %v4986_v23 = vpop.eup %4985  ;;  %v3283_v42 = vmul.f32 %v4984_v14, %v4968_v34  ;;  %v3484_v29 = vsel %vm3481_vm8, %v3475_v61, %v4760_v22  ;;  %v3485_v14 = vsel %vm3481_vm8, %v3476_v26, %v4761_v39  ;;  %v5014_v22 = vmov 0.0|0.0  }
 0xbaa   : > { %v3286_v32 = vpack.c.bf16 %v3281_v2, %v3280_v53  ;;  %v3282_v43 = vmul.f32 %v4986_v23, %v6509_v37  ;;  %4414 = vmatpush3.bf16.msra.mxu0 %v4857_v3  ;;  %v3483_v2 = vsel %vm3481_vm8, %v3474_v24, %v4756_v48  ;;  %4444 = vmatprep.subr.bf16.mxu1 %v5014_v22  ;;  %v6695_v48 = vmov 0.0  }
 0xbab   : > { %4415 = vmatprep.subr.bf16.mxu0 %v4858_v57  ;;  %4441 = vmatprep.mubr.msk.f32.mxu1 %vm5015_vm11, %v6695_v48  ;;  %v5016_v24 = vmov 0  }
 0xbac   : > { %4409 = vmatprep.mubr.msk.bf16.mxu0 %vm910_vm2, %v3286_v32  ;;  %v3287_v58 = vpack.c.bf16 %v3283_v42, %v3282_v43  ;;  %4802 = vset.pattern.permute.xlu0 %v5016_v24 }
 0xbae   : > { %4416 = vmatpush3.bf16.msra.mxu0 %v4858_v57 }
 0xbb1   : > { %4410 = vmatmul.mubr.msk.bf16.gmra.mrb[76].mxu0 %vm910_vm2, %v3287_v58 }
 0xc7c   : > { %v4407_v40 = vpop.f32.mrb[72].mxu0 }
 0xc7d   : > { %v3346_v34 = vpop.f32.mrb[73].mxu0 }
 0xc7e   : > { %v4408_v0 = vpop.f32.mrb[74].mxu0 }
 0xc7f   : > { %v4767_v46 = vpack.i.bf16 %v4408_v0, %v4407_v40  ;;  %v3349_v37 = vpop.f32.mrb[75].mxu0 }
 0xc80   : > { %v4762_v33 = vpack.i.bf16 %v3349_v37, %v3346_v34 }
 0xc81   : > { %4768 = vrot.lane.b32.xlu1 %v4767_v46, %s5013_s12 }
 0xc82   : > { %4763 = vrot.lane.b32.xlu0 %v4762_v33, %s5013_s12 }
 0xc84   : > { %v4411_v51 = vpop.f32.mrb[76].mxu0 }
 0xc85   : > { %4778 = vrot.lane.b32.xlu1 %v6691_v5, %s5011_s29  ;;  %v3362_v21 = vpop.f32.mrb[77].mxu0 }
 0xc86   : > { %4773 = vrot.lane.b32.xlu0 %v6692_v11, %s5011_s29  ;;  %v4412_v16 = vpop.f32.mrb[78].mxu0 }
 0xc87   : > { %v4797_v12 = vpack.i.bf16 %v4412_v16, %v4411_v51  ;;  %v3365_v63 = vpop.f32.mrb[79].mxu0 }
 0xc88   : > { %v4792_v50 = vpack.i.bf16 %v3365_v63, %v3362_v21 }
 0xc89   : > { %4788 = vrot.lane.b32.xlu1 %v6693_v13, %s5012_s30 }
 0xc8a   : > { %4783 = vrot.lane.b32.xlu0 %v6694_v4, %s5012_s30 }
 0xc8d   : > { %4798 = vrot.lane.b32.xlu1 %v4797_v12, %s5013_s12 }
 0xc8e   : > { %4793 = vrot.lane.b32.xlu0 %v4792_v50, %s5013_s12 }
 0xc92   : > { %3611 = vperm.xlu0 %4802, %v6604_v25  }
 0xcf3   : > { %v4769_v60 = vpop.permute.xlu1 %4768 }
 0xcf4   : > { %v4771_v59 = vunpack.i.h.bf16 %v4769_v60  ;;  %v4770_v1 = vunpack.i.l.bf16 %v4769_v60  ;;  %v4764_v41 = vpop.permute.xlu0 %4763  ;;  %v4992_v60 = vld [vmem:[%s6668_s6] sm:$0xff] }
 0xcf5   : > { %v4766_v38 = vunpack.i.h.bf16 %v4764_v41  ;;  %v4765_v53 = vunpack.i.l.bf16 %v4764_v41  ;;  %v3511_v26 = vrot.slane %v4992_v60, %v3510_v8 }
 0xcf6   : > { %v3494_v23 = vsel %vm3490_vm9, %v3485_v14, %v4771_v59  ;;  %v3493_v9 = vsel %vm3490_vm9, %v3484_v29, %v4770_v1 }
 0xcf7   : > { %v3500_v32 = vpack.c.bf16 %v3494_v23, %v3493_v9  ;;  %v3492_v62 = vsel %vm3490_vm9, %v3483_v2, %v4766_v38  ;;  %v3491_v42 = vsel %vm3490_vm9, %v3482_v35, %v4765_v53  ;;  %v4779_v43 = vpop.permute.xlu1 %4778  ;;  %v6696_v53 = vmax.f32 %v5875_v31, 0.0 }
 0xcf8   : > { %v3499_v58 = vpack.c.bf16 %v3492_v62, %v3491_v42  ;;  %v4774_v3 = vpop.permute.xlu0 %4773  ;;  %v4781_v57 = vunpack.i.h.bf16 %v4779_v43  ;;  %v4780_v40 = vunpack.i.l.bf16 %v4779_v43  ;;  %v6697_v23 = vmax.f32 %v5890_v47, 0.0 }
 0xcf9   : > { %v4776_v0 = vunpack.i.h.bf16 %v4774_v3  ;;  %v4775_v46 = vunpack.i.l.bf16 %v4774_v3  ;;  %v6699_v62 = vmax.f32 %v5879_v56, 0.0 }
 0xcfa   : > { %4417 = vmatprep.mubr.msk.bf16.mxu0 %vm407_vm0, %v3499_v58  ;;  %v3480_v11 = vsel %vm2236_vm6, %v6362_v19, %v4781_v57  ;;  %v3479_v16 = vsel %vm2236_vm6, %v6358_v54, %v4780_v40 }
 0xcfb   : > { %v4789_v34 = vpop.permute.xlu1 %4788  ;;  %4418 = vmatmul.mubr.msk.bf16.vlgmr.msra.gmra.mrb[80].mxu0 %vm407_vm0, %v3500_v32  ;;  %v3478_v63 = vsel %vm2236_vm6, %v6364_v15, %v4776_v0  ;;  %v3477_v50 = vsel %vm2236_vm6, %v6360_v10, %v4775_v46 }
 0xcfc   : > { %v4784_v37 = vpop.permute.xlu0 %4783  ;;  %v4791_v33 = vunpack.i.h.bf16 %v4789_v34  ;;  %v4790_v51 = vunpack.i.l.bf16 %v4789_v34 }
 0xcfd   : > { %v4786_v5 = vunpack.i.h.bf16 %v4784_v37  ;;  %v4785_v21 = vunpack.i.l.bf16 %v4784_v37 }
 0xcfe   : > { %v3488_v6 = vsel %vm3481_vm8, %v3479_v16, %v4790_v51  ;;  %v3489_v30 = vsel %vm3481_vm8, %v3480_v11, %v4791_v33  ;;  %v6702_v11 = vmax.f32 %v5923_v28, 0.0 }
 0xcff   : > { %v4799_v12 = vpop.permute.xlu1 %4798  ;;  %v3486_v19 = vsel %vm3481_vm8, %v3477_v50, %v4785_v21  ;;  %v3487_v54 = vsel %vm3481_vm8, %v3478_v63, %v4786_v5  ;;  %v6703_v63 = vmax.f32 %v5953_v45, 0.0 }
 0xd00   : > { %v4801_v13 = vunpack.i.h.bf16 %v4799_v12  ;;  %v4800_v4 = vunpack.i.l.bf16 %v4799_v12  ;;  %v4794_v17 = vpop.permute.xlu0 %4793 }
 0xd01   : > { %v4796_v36 = vunpack.i.h.bf16 %v4794_v17  ;;  %v4795_v55 = vunpack.i.l.bf16 %v4794_v17 }
 0xd02   : > { %v3498_v44 = vsel %vm3490_vm9, %v3489_v30, %v4801_v13  ;;  %v3497_v15 = vsel %vm3490_vm9, %v3488_v6, %v4800_v4  ;;  %v6704_v13 = vmax.f32 %v5960_v18, 0.0  ;;  %v6705_v6 = vmax.f32 %v5934_v49, 0.0 }
 0xd03   : > { %v3502_v52 = vpack.c.bf16 %v3498_v44, %v3497_v15  ;;  %v3496_v10 = vsel %vm3490_vm9, %v3487_v54, %v4796_v36  ;;  %v3495_v7 = vsel %vm3490_vm9, %v3486_v19, %v4795_v55 }
 0xd04   : > { %v3501_v39 = vpack.c.bf16 %v3496_v10, %v3495_v7 }
 0xd06   : > { %4421 = vmatprep.mubr.msk.bf16.mxu0 %vm407_vm0, %v3501_v39 }
 0xd07   : > { %4422 = vmatmul.mubr.msk.bf16.gmra.mrb[84].mxu0 %vm407_vm0, %v3502_v52 }
 0xdce   : > { %v4419_v61 = vpop.f32.mrb[80].mxu0 }
 0xdcf   : > { %v3579_v59 = vadd.f32 %v4419_v61, %v3511_v26  ;;  %v3570_v1 = vpop.f32.mrb[81].mxu0 }
 0xdd0   : > { %v3571_v41 = vadd.f32 %v3570_v1, %v3511_v26  ;;  %v4420_v29 = vpop.f32.mrb[82].mxu0 }
 0xdd1   : > { %v3582_v14 = vadd.f32 %v4420_v29, %v3511_v26  ;;  %v3573_v38 = vpop.f32.mrb[83].mxu0  ;;  %v3603_v9 = vadd.f32 %v3579_v59, %v6697_v23 }
 0xdd2   : > { %v3601_v35 = vadd.f32 %v3571_v41, %v6696_v53  ;;  %v3574_v2 = vadd.f32 %v3573_v38, %v3511_v26 }
 0xdd3   : > { %v3604_v32 = vadd.f32 %v3582_v14, %v6698_v20  ;;  %v3722_v40 = vsel %vm407_vm0, %v3603_v9, 0.0 }
 0xdd4   : > { %v3602_v42 = vadd.f32 %v3574_v2, %v6699_v62  ;;  %v3719_v31 = vsel %vm407_vm0, %v3601_v35, 0.0 }
 0xdd5   : > { %v4449_v43 = vpack.c.bf16 %v3604_v32, %v3603_v9  ;;  %v3724_v27 = vsel %vm407_vm0, %v3604_v32, 0.0 }
 0xdd6   : > { %v4445_v3 = vpack.c.bf16 %v3602_v42, %v3601_v35  ;;  %v3720_v57 = vsel %vm407_vm0, %v3602_v42, 0.0 }
 0xdd7   : > { %v3721_v47 = vadd.f32 %v3720_v57, %v3719_v31 }
 0xdd8   : > { %4447 = vmatpush3.bf16.xpose.msk.msra.mxu1 %vm6621_vm12, %v4445_v3 }
 0xdd9   : > { %v3723_v56 = vadd.f32 %v3722_v40, %v3721_v47  ;;  %4448 = vmatprep.subr.bf16.mxu1 %v5014_v22 }
 0xdda   : > { %v4423_v34 = vpop.f32.mrb[84].mxu0 }
 0xddb   : > { %v3595_v0 = vadd.f32 %v4423_v34, %v3511_v26  ;;  %v3586_v46 = vpop.f32.mrb[85].mxu0  ;;  %v3725_v37 = vadd.f32 %v3724_v27, %v3723_v56 }
 0xddc   : > { %v3587_v33 = vadd.f32 %v3586_v46, %v3511_v26  ;;  %v4424_v51 = vpop.f32.mrb[86].mxu0 }
 0xddd   : > { %v3598_v5 = vadd.f32 %v4424_v51, %v3511_v26  ;;  %v3589_v21 = vpop.f32.mrb[87].mxu0  ;;  %v3607_v50 = vadd.f32 %v3595_v0, %v6703_v63 }
 0xdde   : > { %v3605_v16 = vadd.f32 %v3587_v33, %v6702_v11  ;;  %v3590_v12 = vadd.f32 %v3589_v21, %v3511_v26 }
 0xddf   : > { %v3608_v4 = vadd.f32 %v3598_v5, %v6704_v13  ;;  %v3730_v54 = vsel %vm407_vm0, %v3607_v50, 0.0 }
 0xde0   : > { %v3726_v17 = vsel %vm407_vm0, %v3605_v16, 0.0  ;;  %v3606_v30 = vadd.f32 %v3590_v12, %v6705_v6  ;;  %4451 = vmatpush3.bf16.xpose.msk.msra.mxu1 %vm6621_vm12, %v4449_v43 }
 0xde1   : > { %v3727_v36 = vadd.f32 %v3726_v17, %v3725_v37  ;;  %v4457_v55 = vpack.c.bf16 %v3608_v4, %v3607_v50  ;;  %4452 = vmatprep.subr.bf16.mxu1 %v5014_v22  ;;  %v3732_v44 = vsel %vm407_vm0, %v3608_v4, 0.0 }
 0xde2   : > { %v4453_v28 = vpack.c.bf16 %v3606_v30, %v3605_v16  ;;  %v3728_v19 = vsel %vm407_vm0, %v3606_v30, 0.0 }
 0xde3   : > { %v3729_v45 = vadd.f32 %v3728_v19, %v3727_v36 }
 0xde5   : > { %v3731_v18 = vadd.f32 %v3730_v54, %v3729_v45 }
 0xde7   : > { %v3733_v15 = vadd.f32 %v3732_v44, %v3731_v18 }
 0xde8   : > { %4455 = vmatpush3.bf16.xpose.msk.msra.mxu1 %vm6621_vm12, %v4453_v28 }
 0xde9   : > { %v3734_v49 = vrot.slane %v3733_v15, 4  ;;  %4456 = vmatprep.subr.bf16.mxu1 %v5014_v22  ;;  %v3612_v22 = vpop.permute.xlu0 %3611 }
 0xdea   : > { %v3613_v8 = vrot.slane %v3612_v22, 1 }
 0xdeb   : > { %v3735_v52 = vadd.f32 %v3734_v49, %v3733_v15 }
 0xded   : > { %v3736_v10 = vrot.slane %v3735_v52, 2 }
 0xdef   : > { %v3737_v7 = vadd.f32 %v3736_v10, %v3735_v52 }
 0xdf0   : > { %4459 = vmatpush3.bf16.xpose.msk.msra.mxu1 %vm6621_vm12, %v4457_v55 }
 0xdf1   : > { %v3738_v39 = vrot.slane %v3737_v7, 1 }
 0xdf3   : > { %v3739_v48 = vadd.f32 %v3738_v39, %v3737_v7 }
 0xdf5   : > { %v3741_v24 = vmul.f32 0.015625, %v3739_v48 }
 0xdf7   : > { %3743 = vst.msk [vmem:[%s330_s20] sm:$0x1] %vm3742_vm13, %v3741_v24  ;;  %4442 = vmatmul.mubr.msk.f32.vlgmr.msra.gmra.mrb[64].mxu1 %vm407_vm0, %v6604_v25 }
 0xeca   : > { %v3707_v60 = vpop.f32.mrb[64].mxu1 }
 0xecb   : > { %v3708_v26 = vadd.f32 %v3707_v60, %v3613_v8  ;;  %v4443_v61 = vpop.f32.mrb[65].mxu1 }
 0xecd   : > { %v4007_v59 = vmul.f32 -1.442695, %v3708_v26 }
 0xecf   : > { %4987 = vpow2.f32 %v4007_v59 }
 0xed9   : > { %v4988_v1 = vpop.eup %4987 }
 0xeda   : > { %v3714_v41 = vadd.f32 1.0, %v4988_v1 }
 0xedc   : > { %4989 = vrcp.f32 %v3714_v41 }
 0xee6   : > { %v4990_v29 = vpop.eup %4989 }
 0xee7   : > { %3718 = vst.msk [vmem:[%s327_s21] sm:$0x1] %vm3717_vm14, %v4990_v29 }
 0xee8 PF: > { %s19_s27 = sadd.s32 1, %s4999_s27  }
 0xee9   : > { %p16_p4 = scmp.ge.s32.totalorder %s19_s27, 4  }
 0xeeb   :  { %18 = sbr.rel (!%p16_p4) target bundleno = 1 (0x1), region = 96 }

</bundles_post_ra>
